<compile_context>
chip_gen: v6e
topology: v6e:2x2x1
jax: 0.10.0
libtpu: 0.0.40
codegen_flags: <defaults>
</compile_context>

<pallas_src>
import jax
import jax.numpy as jnp
from jax.experimental import pallas as pl
from jax.experimental.pallas import tpu as pltpu


# ----------------------------------------------------------------------------
# Parameter / kernel construction (mirrors LeniaStepConv2d.compute_kernel with
# kn = 0, i.e. kernel_core[0](r) = (4 r (1 - r))**4).
# ----------------------------------------------------------------------------
def compute_kernel_norm(r_pad: int, b: jnp.ndarray) -> jnp.ndarray:
    """Builds the normalized (K, K) Lenia kernel, K = 2*r_pad + 1."""
    S = 2 * r_pad + 1
    x = jnp.arange(S)
    xx = jnp.tile(x[None, :], (S, 1))
    yy = jnp.tile(x[:, None], (1, S))
    X = (xx - S // 2).astype(jnp.float32) / float(r_pad)
    Y = (yy - S // 2).astype(jnp.float32) / float(r_pad)
    D = jnp.sqrt(X ** 2 + Y ** 2)

    k = b.shape[0]
    kr = k * D
    b_idx = jnp.minimum(jnp.floor(kr).astype(jnp.int32), k - 1)
    b_vals = b[b_idx]

    r = jnp.minimum(kr % 1.0, 1.0)
    kfunc = (4.0 * r * (1.0 - r)) ** 4                       # kernel_core[0]
    kernel = (D < 1.0).astype(jnp.float32) * kfunc * b_vals
    return kernel / jnp.sum(kernel)


def build_full_circulant(kernel_norm: jnp.ndarray, H: int, W: int,
                         dtype=jnp.float32) -> jnp.ndarray:
    """Doubly-blocked circulant weights (H*W, H*W) folding BOTH circular wraps.

    Wfull[i*W + a, r*W + c] = kern[ky, kx] with ky = (i - r + R) mod H,
    kx = (a - c + R) mod W (zero if ky >= K or kx >= K), so that
        (x_flat @ Wfull)[n, r*W + c]
          = sum_{ky,kx} kern[ky,kx] * x[n, (r+ky-R) mod H, (c+kx-R) mod W],
    i.e. the full spherically-padded conv2d with no halo and no im2col.
    """
    K = kernel_norm.shape[0]
    R = (K - 1) // 2
    ky = (jnp.arange(H)[:, None] - jnp.arange(H)[None, :] + R) % H   # (H, H)
    kx = (jnp.arange(W)[:, None] - jnp.arange(W)[None, :] + R) % W   # (W, W)
    vy = ky < K
    vx = kx < K
    ky_c = jnp.where(vy, ky, 0)
    kx_c = jnp.where(vx, kx, 0)
    wfull = kernel_norm[ky_c[:, None, :, None], kx_c[None, :, None, :]]  # (H,W,H,W)
    wfull = wfull * (vy[:, None, :, None] & vx[None, :, None, :]).astype(
        kernel_norm.dtype)
    return wfull.reshape(H * W, H * W).astype(dtype)


# ----------------------------------------------------------------------------
# Pallas kernel: one lane-dense MXU matmul -> Gaussian growth -> Euler + clamp
# ----------------------------------------------------------------------------
def _lenia_kernel(params_ref, wmat_ref, x_ref, out_ref):
    # params_ref : SMEM (3,)           = [m, 1/T, -1/(2 s^2)]
    # wmat_ref   : VMEM (H*W, H*W)     doubly-blocked circulant conv weights
    # x_ref      : VMEM (Nb, H*W) f32  flattened images
    # out_ref    : VMEM (Nb, H*W) f32
    m = params_ref[0]
    inv_t = params_ref[1]
    neg_inv_2s2 = params_ref[2]

    x = x_ref[...]
    # Single MXU matmul, fully lane-dense in both contraction and output dims:
    # (Nb, H*W) @ (H*W, H*W) -> (Nb, H*W).  Accumulation stays f32.
    pot = jnp.dot(x.astype(wmat_ref.dtype), wmat_ref[...],
                  preferred_element_type=jnp.float32)

    # field_func[1]: exp(-(n - m)^2 / (2 s^2)) * 2 - 1
    d = pot - m
    field = jnp.exp(d * d * neg_inv_2s2) * 2.0 - 1.0

    # is_soft_clip = False branch: clamp(input + field / T, 0, 1)
    # TODO(synk): is_soft_clip=True (soft_clip) branch not implemented; the
    # module default is_soft_clip=False path is what this kernel computes.
    out_ref[...] = jnp.clip(x + field * inv_t, 0.0, 1.0)


def _pick_block_n(N: int) -> int:
    """Largest divisor of N that is a sublane multiple (of 8) while leaving the
    grid length >= 2 (keeps both v7x TensorCores busy); falls back to the whole
    batch in one grid step (block == full dim, always layout-legal)."""
    for d in range(N // 2, 0, -1):
        if N % d == 0 and d % 8 == 0:
            return d
    return N


def lenia_step(x, kernel_norm, T, m, s, r_pad, block_n=None,
               weights_dtype=jnp.float32):
    """One Lenia step. x: (N, 1, H, W) f32 in [0, 1]. Returns same shape."""
    N, C, H, W = x.shape
    assert C == 1, "Lenia conv kernel is single-channel"
    K = kernel_norm.shape[0]
    assert K == 2 * r_pad + 1
    assert H >= K and W >= K, "circulant formulation needs H, W >= K"
    HW = H * W

    # Weights stay VMEM-resident (double-buffered by the pipeline even though
    # the constant index_map means they are only DMA'd once); keep them
    # comfortably under the smallest default scoped-VMEM limit (v5e: 16 MiB).
    wbytes = HW * HW * jnp.dtype(weights_dtype).itemsize
    assert wbytes <= 6 * 1024 * 1024, (
        "grid too large for the doubly-blocked circulant formulation; "
        "use a per-band block-circulant accumulate variant instead")

    Nb = _pick_block_n(N) if block_n is None else block_n
    assert N % Nb == 0

    xflat = x.reshape(N, HW).astype(jnp.float32)
    wmat = build_full_circulant(kernel_norm.astype(jnp.float32), H, W,
                                dtype=weights_dtype)
    params = jnp.array([m, 1.0 / T, -1.0 / (2.0 * s * s)], jnp.float32)

    out = pl.pallas_call(
        _lenia_kernel,
        out_shape=jax.ShapeDtypeStruct((N, HW), jnp.float32),
        grid=(N // Nb,),
        in_specs=[
            pl.BlockSpec(memory_space=pltpu.MemorySpace.SMEM),  # [m,1/T,-1/(2s^2)]
            # Constant index_map -> weights fetched once, VMEM-resident.
            pl.BlockSpec((HW, HW), lambda i: (0, 0)),
            pl.BlockSpec((Nb, HW), lambda i: (i, 0)),
        ],
        out_specs=pl.BlockSpec((Nb, HW), lambda i: (i, 0)),
        compiler_params=pltpu.CompilerParams(
            dimension_semantics=("parallel",)),
    )(params, wmat, xflat)

    return out.reshape(N, C, H, W)


# ----------------------------------------------------------------------------
# Plain-JAX reference (direct 121-tap circular conv) for a correctness check.
# ----------------------------------------------------------------------------
def lenia_ref(x, kernel_norm, T, m, s, r_pad):
    N, C, H, W = x.shape
    K = kernel_norm.shape[0]
    xpad = jnp.pad(
        x, ((0, 0), (0, 0), (r_pad, r_pad), (r_pad, r_pad)), mode="wrap"
    )
    pot = jnp.zeros((N, C, H, W), jnp.float32)
    for ky in range(K):
        for kx in range(K):
            pot = pot + kernel_norm[ky, kx] * xpad[:, :, ky:ky + H, kx:kx + W]
    field = jnp.exp(-(pot - m) ** 2 / (2.0 * s * s)) * 2.0 - 1.0
    return jnp.clip(x + field / T, 0.0, 1.0)


if __name__ == "__main__":
    # Deterministic synthetic "module init": R=3 -> self.R = R + 2 = 5, K = 11.
    R_param = 3
    r_pad = R_param + 2
    T, m, s = 10.0, 0.3, 0.1
    b = jnp.array([1.0, 0.5], jnp.float32)
    kernel_norm = compute_kernel_norm(r_pad, b)

    # Input state grid: batch=16 (-> grid of 2 blocks of 8 images for the two
    # v7x TensorCores), 1 channel, 32x32.
    key = jax.random.PRNGKey(0)
    N, C, H, W = 16, 1, 32, 32
    x = jax.random.uniform(key, (N, C, H, W), dtype=jnp.float32)

    ref = lenia_ref(x, kernel_norm, T, m, s, r_pad)

    # Default f32-weight path: matches the f32 reference tightly.
    out = jax.block_until_ready(lenia_step(x, kernel_norm, T, m, s, r_pad))
    assert out.shape == x.shape
    assert bool(jnp.all(jnp.isfinite(out)))
    err = float(jnp.max(jnp.abs(out - ref)))
    assert err < 2e-3, err

    # bf16 matmul-operand path (f32 MXU accumulation).  Looser tolerance: the
    # ~2^-9 operand rounding is amplified by the Gaussian growth slope
    # (~2/s * e^-0.5 ~= 12x at s=0.1) before being divided by T.
    out_bf16 = jax.block_until_ready(
        lenia_step(x, kernel_norm, T, m, s, r_pad, weights_dtype=jnp.bfloat16))
    err_bf16 = float(jnp.max(jnp.abs(out_bf16 - ref)))
    assert err_bf16 < 2e-2, err_bf16

    print("KERNEL_OK")
</pallas_src>

<mosaic_0001>
module attributes {stable_mosaic.version = 11 : i64} {
  func.func @_lenia_kernel(%arg0: i32, %arg1: memref<3xf32, #tpu.memory_space<smem>>, %arg2: memref<1024x1024xf32, #tpu.memory_space<vmem>>, %arg3: memref<8x1024xf32, #tpu.memory_space<vmem>>, %arg4: memref<8x1024xf32, #tpu.memory_space<vmem>>) attributes {dimension_semantics = [#tpu.dimension_semantics<parallel>], iteration_bounds = array<i64: 2>, scalar_prefetch = 0 : i64, scratch_operands = 0 : i64, tpu.core_type = #tpu.core_type<tc>, window_params = [{transform_indices = @transform_0, window_bounds = array<i64: 3>}, {pipeline_mode = #tpu.pipeline_mode<synchronous>, transform_indices = @transform_1, window_bounds = array<i64: 1024, 1024>}, {transform_indices = @transform_2, window_bounds = array<i64: 8, 1024>}, {transform_indices = @transform_3, window_bounds = array<i64: 8, 1024>}]} {
    %c0 = arith.constant 0 : index
    %0 = memref.load %arg1[%c0] : memref<3xf32, #tpu.memory_space<smem>>
    %c1 = arith.constant 1 : index
    %1 = memref.load %arg1[%c1] : memref<3xf32, #tpu.memory_space<smem>>
    %c2 = arith.constant 2 : index
    %2 = memref.load %arg1[%c2] : memref<3xf32, #tpu.memory_space<smem>>
    %c0_0 = arith.constant 0 : index
    %c0_1 = arith.constant 0 : index
    %3 = vector.load %arg3[%c0_0, %c0_1] : memref<8x1024xf32, #tpu.memory_space<vmem>>, vector<8x1024xf32>
    %c0_2 = arith.constant 0 : index
    %c0_3 = arith.constant 0 : index
    %4 = vector.load %arg2[%c0_2, %c0_3] : memref<1024x1024xf32, #tpu.memory_space<vmem>>, vector<1024x1024xf32>
    %cst = arith.constant dense<0.000000e+00> : vector<8x1024xf32>
    %5 = tpu.matmul %3, %4, %cst {dimension_numbers = #tpu.dot_dimension_numbers<[1], [0], [0], [1], [0, 0, 1, 1], [], []>} : vector<8x1024xf32>, vector<1024x1024xf32>, vector<8x1024xf32> -> vector<8x1024xf32>
    %6 = vector.broadcast %0 : f32 to vector<8x1024xf32>
    %7 = arith.subf %5, %6 : vector<8x1024xf32>
    %8 = arith.mulf %7, %7 : vector<8x1024xf32>
    %9 = vector.broadcast %2 : f32 to vector<8x1024xf32>
    %10 = arith.mulf %8, %9 : vector<8x1024xf32>
    %11 = math.exp %10 : vector<8x1024xf32>
    %cst_4 = arith.constant 2.000000e+00 : f32
    %12 = vector.broadcast %cst_4 : f32 to vector<8x1024xf32>
    %13 = arith.mulf %11, %12 : vector<8x1024xf32>
    %cst_5 = arith.constant 1.000000e+00 : f32
    %14 = vector.broadcast %cst_5 : f32 to vector<8x1024xf32>
    %15 = arith.subf %13, %14 : vector<8x1024xf32>
    %16 = vector.broadcast %1 : f32 to vector<8x1024xf32>
    %17 = arith.mulf %15, %16 : vector<8x1024xf32>
    %18 = arith.addf %3, %17 : vector<8x1024xf32>
    %cst_6 = arith.constant 0.000000e+00 : f32
    %cst_7 = arith.constant 1.000000e+00 : f32
    %19 = vector.broadcast %cst_6 : f32 to vector<8x1024xf32>
    %20 = arith.maximumf %19, %18 : vector<8x1024xf32>
    %21 = vector.broadcast %cst_7 : f32 to vector<8x1024xf32>
    %22 = arith.minimumf %21, %20 : vector<8x1024xf32>
    %c0_8 = arith.constant 0 : index
    %c0_9 = arith.constant 0 : index
    %23 = vector.load %arg4[%c0_8, %c0_9] : memref<8x1024xf32, #tpu.memory_space<vmem>>, vector<8x1024xf32>
    tpu.vector_store %arg4[%c0_8, %c0_9], %22 {strides = array<i32>} : memref<8x1024xf32, #tpu.memory_space<vmem>>, vector<8x1024xf32>,
    return
  }
  func.func @transform_0(%arg0: i32) -> i32 {
    %c0_i32 = arith.constant 0 : i32
    %c0_i32_0 = arith.constant 0 : i32
    return %c0_i32 : i32
  }
  func.func @transform_1(%arg0: i32) -> (i32, i32) {
    %c0_i32 = arith.constant 0 : i32
    %c0_i32_0 = arith.constant 0 : i32
    %c0_i32_1 = arith.constant 0 : i32
    return %c0_i32, %c0_i32_0 : i32, i32
  }
  func.func @transform_2(%arg0: i32) -> (i32, i32) {
    %c0_i32 = arith.constant 0 : i32
    %c0_i32_0 = arith.constant 0 : i32
    return %arg0, %c0_i32 : i32, i32
  }
  func.func @transform_3(%arg0: i32) -> (i32, i32) {
    %c0_i32 = arith.constant 0 : i32
    %c0_i32_0 = arith.constant 0 : i32
    return %arg0, %c0_i32 : i32, i32
  }
}

</mosaic_0001>

<bundles_post_ra>
// kernel: tpu_custom_call.1
= control target key start
LH: loop header
LB: loop body
LE: loop exit
PB: predicated region body
PF: predicated region fallthrough
CT: control target
= control target key end

     0   :  { %8 = vsyncpa [#allocation5], 0  ;;  %s3172_s0 = inlined_call_operand.hbm [shape: f32[3], index: 0, kind: input, shape index: {}]   ;;  %s3173_s1 = inlined_call_operand.hbm [shape: f32[1024,1024], index: 1, kind: input, shape index: {}]   ;;  %s3174_s2 = inlined_call_operand.hbm [shape: f32[16,1024], index: 2, kind: input, shape index: {}]   ;;  %s3175_s3 = inlined_call_operand.hbm [shape: f32[16,1024], index: 3, kind: output, shape index: {}]  }
   0x1   :  { %9 = vsyncpa [#allocation3], 0 }
   0x2   :  { %10 = vsyncpa [#allocation8], 0 }
   0x3   :  { %12 = vsyncpa [#allocation8 + $0x1], 0 }
   0x4   :  { %13 = vsyncpa [#allocation4], 0 }
   0x5   :  { %15 = vsyncpa [#allocation4 + $0x1], 0  ;;  %s2897_s12 = smov 0   ;;  %s2899_s13 = smov 0  }
   0x6   :  { %s2901_s14 = smov 0   ;;  %s2903_s15 = smov 0  }
   0x7 LB: > { %s2918_s16 = sadd.s32 4294967295, %s2869_s15   ;;  %s2593_s17 = sadd.s32 4294967294, %s2869_s15   ;;  %s2869_s15 = sphi %s2903_s15, %s3198_s15   ;;  %s2865_s14 = sphi %s2901_s14, %s3197_s14   ;;  %s2861_s13 = sphi %s2899_s13, %s3196_s13   ;;  %s2857_s12 = sphi %s2897_s12, %s3195_s12  }
   0x8   : > { %p83_p0 = scmp.ne.s32.totalorder %s2861_s13, %s2857_s12  ;;  %p3176_p1 = scmp.eq.s32.totalorder %s2918_s16, 0 }
   0x9   : > { %p107_p2 = scmp.eq.s32.totalorder %s2918_s16, 1  ;;  %p113_p3 = scmp.eq.s32.totalorder %s2593_s17, 1 }
   0xa   : > { %p2927_p4 = por %p3176_p1, %p83_p0  ;;  %p2594_p5 = scmp.ge.s32.totalorder %s2869_s15, 1 }
   0xb   : > { %p2932_p6 = por %p113_p3, %p83_p0  ;;  %p120_p7 = scmp.lt.s32.totalorder %s2869_s15, 3 }
   0xc   : > { %s3180_s18 = scalar_select %p2927_p4, 1, 0 }
   0xd   : > { %s3181_s19 = scalar_select %p2932_p6, 1, 0 }
   0xe   : > { %p2937_p8 = pnand %p2594_p5, %p120_p7  ;;  %s2871_s21 = smov [#allocation6]  }
   0xf   : > { %s141_s22 = sshll.u32 %s2871_s21, 4  ;;  %s2951_s24 = sadd.s32 1, %s2869_s15   ;;  %s142_s22 = int_to_ptr.vmem [resolvable:$true] %s141_s22 }
  0x10   : > { %s3182_s20 = scalar_select %p2937_p8, 1, 0 }
  0x11   : > { %p2635_p10 = pneg %p2937_p8  ;;  %s67_s25 = ssub.s32 %s2869_s15, %s2951_s24 }
  0x12   : > { %s2872_s26 = smov [#allocation2]   ;;  %s2754_s29 = scalar_lea.vmem %s142_s22, 131072 }
  0x13   : > { %p2946_p11 = pnand %p2635_p10, %p3176_p1  ;;  %p2755_p13 = scmp.ne.s32.totalorder %s142_s22, %s2754_s29 }
  0x14   : > { %p2762_p5 = scmp.lt.s32.totalorder %s142_s22, %s142_s22  ;;  %p2763_p7 = scmp.lt.s32.totalorder %s2754_s29, %s2754_s29 }
  0x15   : > { %2638 = dma.hbm_to_smem (!%p2946_p11), %s3172_s0, 16, %s2872_s26, [#allocation5]  }
  0x16   : > { %p2745_p12 = pneg %p2946_p11  ;;  %p2764_p10 = por %p2763_p7, %p2762_p5 }
  0x18   : > { %p2757_p0 = pnand %p2755_p13, %p2745_p12 }
  0x1a   : > { %p2758_p3 = pneg %p2757_p0 }
  0x1c   : > { %p2765_p9 = pnand %p2764_p10, %p2758_p3 }
  0x1e   : > { %2768 = shalt.err (!%p2765_p9)
}
  0x1f   : > { %s2873_s30 = smov 1024   ;;  %s2874_s4 = smov 64  }
  0x20   : > { %2641 = dma.hbm_to_vmem [thread:$0]  (!%p2946_p11), %s3173_s1, 131072, %s142_s22, [#allocation3], %s2873_s30, %s2873_s30, %s2874_s4  }
  0x21   : > { %p68_p12 = scmp.eq.s32.totalorder %s67_s25, 0  ;;  %s70_s7 = sadd.s32 1, %s2865_s14 }
  0x22   : > { %p77_p9 = scmp.ne.s32.totalorder %s2865_s14, %s2861_s13  ;;  %p78_p13 = scmp.eq.s32.totalorder %s2869_s15, 0 }
  0x23   : > { %s2972_s8 = scalar_select %p68_p12, %s2865_s14, %s70_s7  }
  0x24   : > { %p79_p0 = por %p78_p13, %p77_p9  ;;  %p2976_p3 = por %p107_p2, %p77_p9 }
  0x25   : > { %p2652_p5 = scmp.lt.s32.totalorder %s2869_s15, 2  ;;  %s155_s10 = sand.u32 1, %s2865_s14  }
  0x26   : > { %s3184_s9 = scalar_select %p2976_p3, 1, 0 }
  0x27   : > { %s2598_s11 = sshll.u32 %s155_s10, 6  ;;  %s2621_s17 = sshll.u32 %s2869_s15, 10 }
  0x28   : > { %s2986_s22 = scalar_lea.hbm %s3174_s2, %s2621_s17  ;;  %s159_s25 = scalar_lea.vmem [#allocation7], %s2598_s11 }
  0x29   : > { %s167_s26 = sshll.u32 %s159_s25, 4  ;;  %p2988_p11 = pnand %p2652_p5, %p79_p0  ;;  %s168_s26 = int_to_ptr.vmem [resolvable:$true] %s167_s26 }
  0x2a   : > { %s156_s28 = scalar_lea.sflag [#allocation8], %s155_s10  ;;  %s2769_s29 = scalar_lea.hbm %s2986_s22, 1024 }
  0x2b   : > { %p2770_p2 = scmp.ne.s32.totalorder %s2986_s22, %s2769_s29  ;;  %p2771_p7 = pneg %p2988_p11 }
  0x2c   : > { %s2774_s5 = scalar_lea.hbm %s3174_s2, 2048  ;;  %p2775_p9 = scmp.lt.s32.totalorder %s2986_s22, %s3174_s2 }
  0x2d   : > { %p2772_p10 = pnand %p2771_p7, %p2770_p2  ;;  %p2776_p13 = scmp.lt.s32.totalorder %s2774_s5, %s2769_s29 }
  0x2f   : > { %p2773_p12 = pneg %p2772_p10  ;;  %p2777_p0 = por %p2776_p13, %p2775_p9 }
  0x31   : > { %p2778_p5 = pnand %p2777_p0, %p2773_p12 }
  0x33   : > { %2781 = shalt.err (!%p2778_p5)
}
  0x34   : > { %s2782_s11 = scalar_lea.vmem %s168_s26, 1024  ;;  %s2875_s10 = smov [#allocation7]  }
  0x35   : > { %p2783_p1 = scmp.ne.s32.totalorder %s168_s26, %s2782_s11  ;;  %s2787_s17 = sshll.u32 %s2875_s10, 4  ;;  %s2788_s17 = int_to_ptr.vmem [resolvable:$false] %s2787_s17 }
  0x36   : > { %s2789_s21 = scalar_lea.vmem %s2788_s17, 2048  ;;  %p2790_p2 = scmp.lt.s32.totalorder %s168_s26, %s2788_s17 }
  0x37   : > { %p2785_p6 = pnand %p2783_p1, %p2771_p7  ;;  %p2791_p10 = scmp.lt.s32.totalorder %s2789_s21, %s2782_s11 }
  0x39   : > { %p2786_p3 = pneg %p2785_p6  ;;  %p2792_p4 = por %p2791_p10, %p2790_p2 }
  0x3b   : > { %p2793_p8 = pnand %p2792_p4, %p2786_p3 }
  0x3d   : > { %2796 = shalt.err (!%p2793_p8)
}
  0x3e   : > { %2645 = dma.hbm_to_vmem [thread:$0]  (!%p2988_p11), %s2986_s22, 1024, %s168_s26, %s156_s28  }
  0x3f   : > { %p3186_p12 = scmp.ne.s32.totalorder %s3182_s20, 0 }
  0x40   : > { %p3187_p9 = scmp.eq.s32.totalorder (!%p3186_p12), %s2918_s16, 0 }
  0x41   : > { %176 = sbr.rel (%p3186_p12) target bundleno = 855 (0x357), region = 32 }
  0x46   : > { %2840 = dma.done.wait (%p3187_p9), [#allocation5], 16   ;;  %p3188_p1 = pmov %p3187_p9 }
  0x48   : > { %2842 = vsyncadd (%p3188_p1), [#allocation5], 4294967280  ;;  %p3189_p6 = pmov %p3188_p1 }
  0x49   : > { %p3190_p7 = pmov %p3188_p1 }
  0x4a   : > { %2844 = dma.done.wait (%p3189_p6), [#allocation3], 131072  }
  0x4b   : > { %2846 = vsyncadd (%p3190_p7), [#allocation3], 4294836224  ;;  %s3017_s23 = sand.u32 1, %s2861_s13   ;;  %p3191_p4 = scmp.ne.s32.totalorder %s3180_s18, 0 }
  0x4c   : > { %s2604_s20 = sshll.u32 %s3017_s23, 6  ;;  %s187_s22 = scalar_lea.sflag [#allocation8], %s3017_s23 }
  0x4d   : > { %s3023_s25 = scalar_lea.vmem [#allocation7], %s2604_s20 }
  0x4e   : > { %2848 = dma.done.wait (%p3191_p4), %s187_s22, 1024  }
  0x4f   : > { %2850 = vsyncadd (%p3191_p4), %s187_s22, 4294966272 }
  0x50   : > { %195 = sfence }
  0x51   : > { %v346_v0 = vld [vmem:[#allocation6 + $0x3c8] sm:$0xff]  ;;  %v345_v2 = vld [vmem:[#allocation6 + $0x3c0] sm:$0xff]  ;;  %s3045_s18 = sld [smem:[#allocation2]]  ;;  %s3080_s28 = scalar_lea.vmem [#allocation9], %s2604_s20 }
  0x52   : > { %v602_v1 = vld [vmem:[#allocation6 + $0xbc8] sm:$0xff]  ;;  %1249 = vmatprep.subr.mxu0 %v346_v0  ;;  %v601_v3 = vld [vmem:[#allocation6 + $0xbc0] sm:$0xff]  ;;  %s3047_s26 = sld [smem:[#allocation2 + $0x2]]  ;;  %s2622_s29 = sshll.u32 %s2918_s16, 10 }
  0x53   : > { %1320 = vmatprep.subr.mxu1 %v602_v1  ;;  %v338_v4 = vld [vmem:[#allocation6 + $0x388] sm:$0xff]  ;;  %1250 = vmatpush1.msra.mxu0 %v345_v2  ;;  %v337_v6 = vld [vmem:[#allocation6 + $0x380] sm:$0xff]  ;;  %s3069_s27 = sld [smem:[#allocation2 + $0x1]]  ;;  %s2499_s30 = sshll.u32 %s3080_s28, 4  ;;  %s2500_s30 = int_to_ptr.vmem [resolvable:$true] %s2499_s30 }
  0x54   : > { %v594_v5 = vld [vmem:[#allocation6 + $0xb88] sm:$0xff]  ;;  %1321 = vmatpush1.msra.mxu1 %v601_v3  ;;  %v593_v7 = vld [vmem:[#allocation6 + $0xb80] sm:$0xff]  ;;  %1251 = vmatprep.subr.mxu0 %v338_v4  ;;  %s2497_s6 = scalar_lea.hbm %s3175_s3, %s2622_s29  ;;  %s2485_s7 = scalar_lea.sflag [#allocation4], %s3017_s23 }
  0x55   : > { %v330_v8 = vld [vmem:[#allocation6 + $0x348] sm:$0xff]  ;;  %1322 = vmatprep.subr.mxu1 %v594_v5  ;;  %v329_v10 = vld [vmem:[#allocation6 + $0x340] sm:$0xff]  ;;  %1252 = vmatpush1.msra.mxu0 %v337_v6  ;;  %s2797_s11 = scalar_lea.vmem %s2500_s30, 1024  ;;  %p3192_p3 = scmp.ne.s32.totalorder %s3184_s9, 0 }
  0x56   : > { %v586_v9 = vld [vmem:[#allocation6 + $0xb48] sm:$0xff]  ;;  %v585_v11 = vld [vmem:[#allocation6 + $0xb40] sm:$0xff]  ;;  %1323 = vmatpush1.msra.mxu1 %v593_v7  ;;  %1253 = vmatprep.subr.mxu0 %v330_v8  ;;  %p2798_p8 = scmp.ne.s32.totalorder %s2500_s30, %s2797_s11  ;;  %s2876_s10 = smov [#allocation9]  }
  0x57   : > { %v322_v12 = vld [vmem:[#allocation6 + $0x308] sm:$0xff]  ;;  %1324 = vmatprep.subr.mxu1 %v586_v9  ;;  %v321_v14 = vld [vmem:[#allocation6 + $0x300] sm:$0xff]  ;;  %1254 = vmatpush1.msra.mxu0 %v329_v10  ;;  %s2801_s17 = sshll.u32 %s2876_s10, 4  ;;  %s2802_s17 = int_to_ptr.vmem [resolvable:$false] %s2801_s17 }
  0x58   : > { %v578_v13 = vld [vmem:[#allocation6 + $0xb08] sm:$0xff]  ;;  %v577_v15 = vld [vmem:[#allocation6 + $0xb00] sm:$0xff]  ;;  %1325 = vmatpush1.msra.mxu1 %v585_v11  ;;  %1255 = vmatprep.subr.mxu0 %v322_v12  ;;  %p2799_p11 = pnand %p2798_p8, %p3192_p3  ;;  %s2803_s16 = scalar_lea.vmem %s2802_s17, 2048 }
  0x59   : > { %v314_v16 = vld [vmem:[#allocation6 + $0x2c8] sm:$0xff]  ;;  %1326 = vmatprep.subr.mxu1 %v578_v13  ;;  %v313_v18 = vld [vmem:[#allocation6 + $0x2c0] sm:$0xff]  ;;  %1256 = vmatpush1.msra.mxu0 %v321_v14  ;;  %p2804_p0 = scmp.lt.s32.totalorder %s2500_s30, %s2802_s17  ;;  %p2805_p5 = scmp.lt.s32.totalorder %s2803_s16, %s2797_s11 }
  0x5a   : > { %v570_v17 = vld [vmem:[#allocation6 + $0xac8] sm:$0xff]  ;;  %v569_v19 = vld [vmem:[#allocation6 + $0xac0] sm:$0xff]  ;;  %1327 = vmatpush1.msra.mxu1 %v577_v15  ;;  %1257 = vmatprep.subr.mxu0 %v314_v16  ;;  %p2800_p13 = pneg %p2799_p11 }
  0x5b   : > { %v306_v20 = vld [vmem:[#allocation6 + $0x288] sm:$0xff]  ;;  %1328 = vmatprep.subr.mxu1 %v570_v17  ;;  %v305_v22 = vld [vmem:[#allocation6 + $0x280] sm:$0xff]  ;;  %1258 = vmatpush1.msra.mxu0 %v313_v18  ;;  %p2806_p2 = por %p2805_p5, %p2804_p0 }
  0x5c   : > { %v562_v21 = vld [vmem:[#allocation6 + $0xa88] sm:$0xff]  ;;  %v561_v23 = vld [vmem:[#allocation6 + $0xa80] sm:$0xff]  ;;  %1329 = vmatpush1.msra.mxu1 %v569_v19  ;;  %1259 = vmatprep.subr.mxu0 %v306_v20 }
  0x5d   : > { %v298_v24 = vld [vmem:[#allocation6 + $0x248] sm:$0xff]  ;;  %1330 = vmatprep.subr.mxu1 %v562_v21  ;;  %v297_v26 = vld [vmem:[#allocation6 + $0x240] sm:$0xff]  ;;  %1260 = vmatpush1.msra.mxu0 %v305_v22  ;;  %p2807_p10 = pnand %p2806_p2, %p2800_p13 }
  0x5e   : > { %v554_v25 = vld [vmem:[#allocation6 + $0xa48] sm:$0xff]  ;;  %v553_v27 = vld [vmem:[#allocation6 + $0xa40] sm:$0xff]  ;;  %1331 = vmatpush1.msra.mxu1 %v561_v23  ;;  %1261 = vmatprep.subr.mxu0 %v298_v24 }
  0x5f   : > { %v290_v28 = vld [vmem:[#allocation6 + $0x208] sm:$0xff]  ;;  %1332 = vmatprep.subr.mxu1 %v554_v25  ;;  %v289_v30 = vld [vmem:[#allocation6 + $0x200] sm:$0xff]  ;;  %1262 = vmatpush1.msra.mxu0 %v297_v26 }
  0x60   : > { %v546_v29 = vld [vmem:[#allocation6 + $0xa08] sm:$0xff]  ;;  %v545_v31 = vld [vmem:[#allocation6 + $0xa00] sm:$0xff]  ;;  %1333 = vmatpush1.msra.mxu1 %v553_v27  ;;  %1263 = vmatprep.subr.mxu0 %v290_v28 }
  0x61   : > { %v282_v32 = vld [vmem:[#allocation6 + $0x1c8] sm:$0xff]  ;;  %1334 = vmatprep.subr.mxu1 %v546_v29  ;;  %v281_v34 = vld [vmem:[#allocation6 + $0x1c0] sm:$0xff]  ;;  %1264 = vmatpush1.msra.mxu0 %v289_v30 }
  0x62   : > { %v538_v33 = vld [vmem:[#allocation6 + $0x9c8] sm:$0xff]  ;;  %v537_v35 = vld [vmem:[#allocation6 + $0x9c0] sm:$0xff]  ;;  %1335 = vmatpush1.msra.mxu1 %v545_v31  ;;  %1265 = vmatprep.subr.mxu0 %v282_v32 }
  0x63   : > { %v274_v36 = vld [vmem:[#allocation6 + $0x188] sm:$0xff]  ;;  %1336 = vmatprep.subr.mxu1 %v538_v33  ;;  %v273_v38 = vld [vmem:[#allocation6 + $0x180] sm:$0xff]  ;;  %1266 = vmatpush1.msra.mxu0 %v281_v34 }
  0x64   : > { %v530_v37 = vld [vmem:[#allocation6 + $0x988] sm:$0xff]  ;;  %v529_v39 = vld [vmem:[#allocation6 + $0x980] sm:$0xff]  ;;  %1337 = vmatpush1.msra.mxu1 %v537_v35  ;;  %1267 = vmatprep.subr.mxu0 %v274_v36 }
  0x65   : > { %v266_v40 = vld [vmem:[#allocation6 + $0x148] sm:$0xff]  ;;  %1338 = vmatprep.subr.mxu1 %v530_v37  ;;  %v265_v42 = vld [vmem:[#allocation6 + $0x140] sm:$0xff]  ;;  %1268 = vmatpush1.msra.mxu0 %v273_v38 }
  0x66   : > { %v522_v41 = vld [vmem:[#allocation6 + $0x948] sm:$0xff]  ;;  %v521_v43 = vld [vmem:[#allocation6 + $0x940] sm:$0xff]  ;;  %1339 = vmatpush1.msra.mxu1 %v529_v39  ;;  %1269 = vmatprep.subr.mxu0 %v266_v40 }
  0x67   : > { %v258_v44 = vld [vmem:[#allocation6 + $0x108] sm:$0xff]  ;;  %1340 = vmatprep.subr.mxu1 %v522_v41  ;;  %v257_v46 = vld [vmem:[#allocation6 + $0x100] sm:$0xff]  ;;  %1270 = vmatpush1.msra.mxu0 %v265_v42 }
  0x68   : > { %v514_v45 = vld [vmem:[#allocation6 + $0x908] sm:$0xff]  ;;  %v513_v47 = vld [vmem:[#allocation6 + $0x900] sm:$0xff]  ;;  %1341 = vmatpush1.msra.mxu1 %v521_v43  ;;  %1271 = vmatprep.subr.mxu0 %v258_v44 }
  0x69   : > { %v250_v48 = vld [vmem:[#allocation6 + $0xc8] sm:$0xff]  ;;  %1342 = vmatprep.subr.mxu1 %v514_v45  ;;  %v249_v50 = vld [vmem:[#allocation6 + $0xc0] sm:$0xff]  ;;  %1272 = vmatpush1.msra.mxu0 %v257_v46 }
  0x6a   : > { %v506_v49 = vld [vmem:[#allocation6 + $0x8c8] sm:$0xff]  ;;  %v505_v51 = vld [vmem:[#allocation6 + $0x8c0] sm:$0xff]  ;;  %1343 = vmatpush1.msra.mxu1 %v513_v47  ;;  %1273 = vmatprep.subr.mxu0 %v250_v48 }
  0x6b   : > { %v242_v52 = vld [vmem:[#allocation6 + $0x88] sm:$0xff]  ;;  %1344 = vmatprep.subr.mxu1 %v506_v49  ;;  %v241_v54 = vld [vmem:[#allocation6 + $0x80] sm:$0xff]  ;;  %1274 = vmatpush1.msra.mxu0 %v249_v50 }
  0x6c   : > { %v498_v53 = vld [vmem:[#allocation6 + $0x888] sm:$0xff]  ;;  %v497_v55 = vld [vmem:[#allocation6 + $0x880] sm:$0xff]  ;;  %1345 = vmatpush1.msra.mxu1 %v505_v51  ;;  %1275 = vmatprep.subr.mxu0 %v242_v52 }
  0x6d   : > { %v234_v56 = vld [vmem:[#allocation6 + $0x48] sm:$0xff]  ;;  %1346 = vmatprep.subr.mxu1 %v498_v53  ;;  %v233_v58 = vld [vmem:[#allocation6 + $0x40] sm:$0xff]  ;;  %1276 = vmatpush1.msra.mxu0 %v241_v54 }
  0x6e   : > { %v490_v57 = vld [vmem:[#allocation6 + $0x848] sm:$0xff]  ;;  %v489_v59 = vld [vmem:[#allocation6 + $0x840] sm:$0xff]  ;;  %1347 = vmatpush1.msra.mxu1 %v497_v55  ;;  %1277 = vmatprep.subr.mxu0 %v234_v56 }
  0x6f   : > { %v226_v60 = vld [vmem:[#allocation6 + $0x8] sm:$0xff]  ;;  %1348 = vmatprep.subr.mxu1 %v490_v57  ;;  %v225_v62 = vld [vmem:[#allocation6] sm:$0xff]  ;;  %1278 = vmatpush1.msra.mxu0 %v233_v58 }
  0x70   : > { %v482_v61 = vld [vmem:[#allocation6 + $0x808] sm:$0xff]  ;;  %v481_v63 = vld [vmem:[#allocation6 + $0x800] sm:$0xff]  ;;  %1349 = vmatpush1.msra.mxu1 %v489_v59  ;;  %1279 = vmatprep.subr.mxu0 %v226_v60 }
  0x71   : > { %v474_v0 = vld [vmem:[#allocation6 + $0x7c8] sm:$0xff]  ;;  %1350 = vmatprep.subr.mxu1 %v482_v61  ;;  %v473_v2 = vld [vmem:[#allocation6 + $0x7c0] sm:$0xff]  ;;  %1280 = vmatpush1.msra.mxu0 %v225_v62 }
  0x72   : > { %v730_v1 = vld [vmem:[#allocation6 + $0xfc8] sm:$0xff]  ;;  %v729_v3 = vld [vmem:[#allocation6 + $0xfc0] sm:$0xff]  ;;  %1351 = vmatpush1.msra.mxu1 %v481_v63  ;;  %1281 = vmatprep.subr.mxu0 %v474_v0 }
  0x73   : > { %v466_v4 = vld [vmem:[#allocation6 + $0x788] sm:$0xff]  ;;  %1352 = vmatprep.subr.mxu1 %v730_v1  ;;  %v465_v6 = vld [vmem:[#allocation6 + $0x780] sm:$0xff]  ;;  %1282 = vmatpush2.msra.mxu0 %v473_v2  ;;  %v220_v1 = vld [vmem:[%s3023_s25 + $0x18] sm:$0xff] }
  0x74   : > { %v722_v5 = vld [vmem:[#allocation6 + $0xf88] sm:$0xff]  ;;  %v721_v7 = vld [vmem:[#allocation6 + $0xf80] sm:$0xff]  ;;  %1353 = vmatpush2.msra.mxu1 %v729_v3  ;;  %1283 = vmatprep.subr.mxu0 %v466_v4  ;;  %v219_v3 = vld [vmem:[%s3023_s25 + $0x10] sm:$0xff] }
  0x75   : > { %v458_v8 = vld [vmem:[#allocation6 + $0x748] sm:$0xff]  ;;  %1354 = vmatprep.subr.mxu1 %v722_v5  ;;  %v457_v10 = vld [vmem:[#allocation6 + $0x740] sm:$0xff]  ;;  %1284 = vmatpush2.msra.mxu0 %v465_v6 }
  0x76   : > { %v714_v9 = vld [vmem:[#allocation6 + $0xf48] sm:$0xff]  ;;  %v713_v11 = vld [vmem:[#allocation6 + $0xf40] sm:$0xff]  ;;  %1355 = vmatpush2.msra.mxu1 %v721_v7  ;;  %1285 = vmatprep.subr.mxu0 %v458_v8 }
  0x77   : > { %v450_v12 = vld [vmem:[#allocation6 + $0x708] sm:$0xff]  ;;  %1356 = vmatprep.subr.mxu1 %v714_v9  ;;  %v449_v14 = vld [vmem:[#allocation6 + $0x700] sm:$0xff]  ;;  %1286 = vmatpush2.msra.mxu0 %v457_v10 }
  0x78   : > { %v706_v13 = vld [vmem:[#allocation6 + $0xf08] sm:$0xff]  ;;  %v705_v15 = vld [vmem:[#allocation6 + $0xf00] sm:$0xff]  ;;  %1357 = vmatpush2.msra.mxu1 %v713_v11  ;;  %1287 = vmatprep.subr.mxu0 %v450_v12 }
  0x79   : > { %v442_v16 = vld [vmem:[#allocation6 + $0x6c8] sm:$0xff]  ;;  %1358 = vmatprep.subr.mxu1 %v706_v13  ;;  %v441_v18 = vld [vmem:[#allocation6 + $0x6c0] sm:$0xff]  ;;  %1288 = vmatpush2.msra.mxu0 %v449_v14 }
  0x7a   : > { %v698_v17 = vld [vmem:[#allocation6 + $0xec8] sm:$0xff]  ;;  %v697_v19 = vld [vmem:[#allocation6 + $0xec0] sm:$0xff]  ;;  %1359 = vmatpush2.msra.mxu1 %v705_v15  ;;  %1289 = vmatprep.subr.mxu0 %v442_v16 }
  0x7b   : > { %v434_v20 = vld [vmem:[#allocation6 + $0x688] sm:$0xff]  ;;  %1360 = vmatprep.subr.mxu1 %v698_v17  ;;  %v433_v22 = vld [vmem:[#allocation6 + $0x680] sm:$0xff]  ;;  %1290 = vmatpush2.msra.mxu0 %v441_v18 }
  0x7c   : > { %v690_v21 = vld [vmem:[#allocation6 + $0xe88] sm:$0xff]  ;;  %v689_v23 = vld [vmem:[#allocation6 + $0xe80] sm:$0xff]  ;;  %1361 = vmatpush2.msra.mxu1 %v697_v19  ;;  %1291 = vmatprep.subr.mxu0 %v434_v20 }
  0x7d   : > { %v426_v24 = vld [vmem:[#allocation6 + $0x648] sm:$0xff]  ;;  %1362 = vmatprep.subr.mxu1 %v690_v21  ;;  %v425_v26 = vld [vmem:[#allocation6 + $0x640] sm:$0xff]  ;;  %1292 = vmatpush2.msra.mxu0 %v433_v22 }
  0x7e   : > { %v682_v25 = vld [vmem:[#allocation6 + $0xe48] sm:$0xff]  ;;  %v681_v27 = vld [vmem:[#allocation6 + $0xe40] sm:$0xff]  ;;  %1363 = vmatpush2.msra.mxu1 %v689_v23  ;;  %1293 = vmatprep.subr.mxu0 %v426_v24 }
  0x7f   : > { %v418_v28 = vld [vmem:[#allocation6 + $0x608] sm:$0xff]  ;;  %1364 = vmatprep.subr.mxu1 %v682_v25  ;;  %v417_v30 = vld [vmem:[#allocation6 + $0x600] sm:$0xff]  ;;  %1294 = vmatpush2.msra.mxu0 %v425_v26 }
  0x80   : > { %v674_v29 = vld [vmem:[#allocation6 + $0xe08] sm:$0xff]  ;;  %v673_v31 = vld [vmem:[#allocation6 + $0xe00] sm:$0xff]  ;;  %1365 = vmatpush2.msra.mxu1 %v681_v27  ;;  %1295 = vmatprep.subr.mxu0 %v418_v28 }
  0x81   : > { %v410_v32 = vld [vmem:[#allocation6 + $0x5c8] sm:$0xff]  ;;  %1366 = vmatprep.subr.mxu1 %v674_v29  ;;  %v409_v34 = vld [vmem:[#allocation6 + $0x5c0] sm:$0xff]  ;;  %1296 = vmatpush2.msra.mxu0 %v417_v30 }
  0x82   : > { %v666_v33 = vld [vmem:[#allocation6 + $0xdc8] sm:$0xff]  ;;  %v665_v35 = vld [vmem:[#allocation6 + $0xdc0] sm:$0xff]  ;;  %1367 = vmatpush2.msra.mxu1 %v673_v31  ;;  %1297 = vmatprep.subr.mxu0 %v410_v32 }
  0x83   : > { %v402_v36 = vld [vmem:[#allocation6 + $0x588] sm:$0xff]  ;;  %1368 = vmatprep.subr.mxu1 %v666_v33  ;;  %v401_v38 = vld [vmem:[#allocation6 + $0x580] sm:$0xff]  ;;  %1298 = vmatpush2.msra.mxu0 %v409_v34 }
  0x84   : > { %v658_v37 = vld [vmem:[#allocation6 + $0xd88] sm:$0xff]  ;;  %v657_v39 = vld [vmem:[#allocation6 + $0xd80] sm:$0xff]  ;;  %1369 = vmatpush2.msra.mxu1 %v665_v35  ;;  %1299 = vmatprep.subr.mxu0 %v402_v36 }
  0x85   : > { %v394_v40 = vld [vmem:[#allocation6 + $0x548] sm:$0xff]  ;;  %1370 = vmatprep.subr.mxu1 %v658_v37  ;;  %v393_v42 = vld [vmem:[#allocation6 + $0x540] sm:$0xff]  ;;  %1300 = vmatpush2.msra.mxu0 %v401_v38 }
  0x86   : > { %v650_v41 = vld [vmem:[#allocation6 + $0xd48] sm:$0xff]  ;;  %v649_v43 = vld [vmem:[#allocation6 + $0xd40] sm:$0xff]  ;;  %1371 = vmatpush2.msra.mxu1 %v657_v39  ;;  %1301 = vmatprep.subr.mxu0 %v394_v40 }
  0x87   : > { %v386_v44 = vld [vmem:[#allocation6 + $0x508] sm:$0xff]  ;;  %1372 = vmatprep.subr.mxu1 %v650_v41  ;;  %v385_v46 = vld [vmem:[#allocation6 + $0x500] sm:$0xff]  ;;  %1302 = vmatpush2.msra.mxu0 %v393_v42 }
  0x88   : > { %v642_v45 = vld [vmem:[#allocation6 + $0xd08] sm:$0xff]  ;;  %v641_v47 = vld [vmem:[#allocation6 + $0xd00] sm:$0xff]  ;;  %1373 = vmatpush2.msra.mxu1 %v649_v43  ;;  %1303 = vmatprep.subr.mxu0 %v386_v44 }
  0x89   : > { %v378_v48 = vld [vmem:[#allocation6 + $0x4c8] sm:$0xff]  ;;  %1374 = vmatprep.subr.mxu1 %v642_v45  ;;  %v377_v50 = vld [vmem:[#allocation6 + $0x4c0] sm:$0xff]  ;;  %1304 = vmatpush2.msra.mxu0 %v385_v46 }
  0x8a   : > { %v634_v49 = vld [vmem:[#allocation6 + $0xcc8] sm:$0xff]  ;;  %v633_v51 = vld [vmem:[#allocation6 + $0xcc0] sm:$0xff]  ;;  %1375 = vmatpush2.msra.mxu1 %v641_v47  ;;  %1305 = vmatprep.subr.mxu0 %v378_v48 }
  0x8b   : > { %v370_v52 = vld [vmem:[#allocation6 + $0x488] sm:$0xff]  ;;  %1376 = vmatprep.subr.mxu1 %v634_v49  ;;  %v369_v54 = vld [vmem:[#allocation6 + $0x480] sm:$0xff]  ;;  %1306 = vmatpush2.msra.mxu0 %v377_v50 }
  0x8c   : > { %v626_v53 = vld [vmem:[#allocation6 + $0xc88] sm:$0xff]  ;;  %v625_v55 = vld [vmem:[#allocation6 + $0xc80] sm:$0xff]  ;;  %1377 = vmatpush2.msra.mxu1 %v633_v51  ;;  %1307 = vmatprep.subr.mxu0 %v370_v52 }
  0x8d   : > { %v362_v56 = vld [vmem:[#allocation6 + $0x448] sm:$0xff]  ;;  %1378 = vmatprep.subr.mxu1 %v626_v53  ;;  %v361_v58 = vld [vmem:[#allocation6 + $0x440] sm:$0xff]  ;;  %1308 = vmatpush2.msra.mxu0 %v369_v54 }
  0x8e   : > { %v618_v57 = vld [vmem:[#allocation6 + $0xc48] sm:$0xff]  ;;  %v617_v59 = vld [vmem:[#allocation6 + $0xc40] sm:$0xff]  ;;  %1379 = vmatpush2.msra.mxu1 %v625_v55  ;;  %1309 = vmatprep.subr.mxu0 %v362_v56 }
  0x8f   : > { %v354_v60 = vld [vmem:[#allocation6 + $0x408] sm:$0xff]  ;;  %1380 = vmatprep.subr.mxu1 %v618_v57  ;;  %v353_v62 = vld [vmem:[#allocation6 + $0x400] sm:$0xff]  ;;  %1310 = vmatpush2.msra.mxu0 %v361_v58 }
  0x90   : > { %v610_v61 = vld [vmem:[#allocation6 + $0xc08] sm:$0xff]  ;;  %1381 = vmatpush2.msra.mxu1 %v617_v59  ;;  %v609_v0 = vld [vmem:[#allocation6 + $0xc00] sm:$0xff]  ;;  %1311 = vmatprep.subr.mxu0 %v354_v60 }
  0x91   : > { %v218_v63 = vld [vmem:[%s3023_s25 + $0x8] sm:$0xff]  ;;  %1382 = vmatprep.subr.mxu1 %v610_v61  ;;  %v217_v2 = vld [vmem:[%s3023_s25] sm:$0xff]  ;;  %1312 = vmatpush2.msra.mxu0 %v353_v62 }
  0x92   : > { %1313 = vmatprep.mubr.f32.mxu0 %v218_v63  ;;  %v858_v4 = vld [vmem:[#allocation6 + $0x13c8] sm:$0xff]  ;;  %1383 = vmatpush2.msra.mxu1 %v609_v0  ;;  %v857_v6 = vld [vmem:[#allocation6 + $0x13c0] sm:$0xff] }
  0x93   : > { %v1114_v5 = vld [vmem:[#allocation6 + $0x1bc8] sm:$0xff]  ;;  %1384 = vmatprep.mubr.f32.mxu1 %v220_v1  ;;  %v1113_v7 = vld [vmem:[#allocation6 + $0x1bc0] sm:$0xff]  ;;  %1314 = vmatmul.mubr.f32.vlgmr.msra.gmra.mxu0 %v217_v2 }
  0x94   : > { %1385 = vmatmul.mubr.f32.vlgmr.msra.gmra.mxu1 %v219_v3  ;;  %v850_v8 = vld [vmem:[#allocation6 + $0x1388] sm:$0xff]  ;;  %1391 = vmatprep.subr.mxu0 %v858_v4  ;;  %v849_v10 = vld [vmem:[#allocation6 + $0x1380] sm:$0xff] }
  0x95   : > { %v1106_v9 = vld [vmem:[#allocation6 + $0x1b88] sm:$0xff]  ;;  %1462 = vmatprep.subr.mxu1 %v1114_v5  ;;  %v1105_v11 = vld [vmem:[#allocation6 + $0x1b80] sm:$0xff]  ;;  %1392 = vmatpush1.msra.mxu0 %v857_v6 }
  0x96   : > { %1463 = vmatpush1.msra.mxu1 %v1113_v7  ;;  %v842_v12 = vld [vmem:[#allocation6 + $0x1348] sm:$0xff]  ;;  %1393 = vmatprep.subr.mxu0 %v850_v8  ;;  %v841_v14 = vld [vmem:[#allocation6 + $0x1340] sm:$0xff] }
  0x97   : > { %v1098_v13 = vld [vmem:[#allocation6 + $0x1b48] sm:$0xff]  ;;  %1464 = vmatprep.subr.mxu1 %v1106_v9  ;;  %v1097_v15 = vld [vmem:[#allocation6 + $0x1b40] sm:$0xff]  ;;  %1394 = vmatpush1.msra.mxu0 %v849_v10 }
  0x98   : > { %1465 = vmatpush1.msra.mxu1 %v1105_v11  ;;  %v834_v16 = vld [vmem:[#allocation6 + $0x1308] sm:$0xff]  ;;  %1395 = vmatprep.subr.mxu0 %v842_v12  ;;  %v833_v18 = vld [vmem:[#allocation6 + $0x1300] sm:$0xff] }
  0x99   : > { %v1090_v17 = vld [vmem:[#allocation6 + $0x1b08] sm:$0xff]  ;;  %1466 = vmatprep.subr.mxu1 %v1098_v13  ;;  %v1089_v19 = vld [vmem:[#allocation6 + $0x1b00] sm:$0xff]  ;;  %1396 = vmatpush1.msra.mxu0 %v841_v14 }
  0x9a   : > { %1467 = vmatpush1.msra.mxu1 %v1097_v15  ;;  %v826_v20 = vld [vmem:[#allocation6 + $0x12c8] sm:$0xff]  ;;  %1397 = vmatprep.subr.mxu0 %v834_v16  ;;  %v825_v22 = vld [vmem:[#allocation6 + $0x12c0] sm:$0xff] }
  0x9b   : > { %v1082_v21 = vld [vmem:[#allocation6 + $0x1ac8] sm:$0xff]  ;;  %1468 = vmatprep.subr.mxu1 %v1090_v17  ;;  %v1081_v23 = vld [vmem:[#allocation6 + $0x1ac0] sm:$0xff]  ;;  %1398 = vmatpush1.msra.mxu0 %v833_v18 }
  0x9c   : > { %1469 = vmatpush1.msra.mxu1 %v1089_v19  ;;  %v818_v24 = vld [vmem:[#allocation6 + $0x1288] sm:$0xff]  ;;  %1399 = vmatprep.subr.mxu0 %v826_v20  ;;  %v817_v26 = vld [vmem:[#allocation6 + $0x1280] sm:$0xff] }
  0x9d   : > { %v1074_v25 = vld [vmem:[#allocation6 + $0x1a88] sm:$0xff]  ;;  %1470 = vmatprep.subr.mxu1 %v1082_v21  ;;  %v1073_v27 = vld [vmem:[#allocation6 + $0x1a80] sm:$0xff]  ;;  %1400 = vmatpush1.msra.mxu0 %v825_v22 }
  0x9e   : > { %1471 = vmatpush1.msra.mxu1 %v1081_v23  ;;  %v810_v28 = vld [vmem:[#allocation6 + $0x1248] sm:$0xff]  ;;  %1401 = vmatprep.subr.mxu0 %v818_v24  ;;  %v809_v30 = vld [vmem:[#allocation6 + $0x1240] sm:$0xff] }
  0x9f   : > { %v1066_v29 = vld [vmem:[#allocation6 + $0x1a48] sm:$0xff]  ;;  %1472 = vmatprep.subr.mxu1 %v1074_v25  ;;  %v1065_v31 = vld [vmem:[#allocation6 + $0x1a40] sm:$0xff]  ;;  %1402 = vmatpush1.msra.mxu0 %v817_v26 }
  0xa0   : > { %1473 = vmatpush1.msra.mxu1 %v1073_v27  ;;  %v802_v32 = vld [vmem:[#allocation6 + $0x1208] sm:$0xff]  ;;  %1403 = vmatprep.subr.mxu0 %v810_v28  ;;  %v801_v34 = vld [vmem:[#allocation6 + $0x1200] sm:$0xff] }
  0xa1   : > { %v1058_v33 = vld [vmem:[#allocation6 + $0x1a08] sm:$0xff]  ;;  %1474 = vmatprep.subr.mxu1 %v1066_v29  ;;  %v1057_v35 = vld [vmem:[#allocation6 + $0x1a00] sm:$0xff]  ;;  %1404 = vmatpush1.msra.mxu0 %v809_v30 }
  0xa2   : > { %1475 = vmatpush1.msra.mxu1 %v1065_v31  ;;  %v794_v36 = vld [vmem:[#allocation6 + $0x11c8] sm:$0xff]  ;;  %1405 = vmatprep.subr.mxu0 %v802_v32  ;;  %v793_v38 = vld [vmem:[#allocation6 + $0x11c0] sm:$0xff] }
  0xa3   : > { %v1050_v37 = vld [vmem:[#allocation6 + $0x19c8] sm:$0xff]  ;;  %1476 = vmatprep.subr.mxu1 %v1058_v33  ;;  %v1049_v39 = vld [vmem:[#allocation6 + $0x19c0] sm:$0xff]  ;;  %1406 = vmatpush1.msra.mxu0 %v801_v34 }
  0xa4   : > { %1477 = vmatpush1.msra.mxu1 %v1057_v35  ;;  %v786_v40 = vld [vmem:[#allocation6 + $0x1188] sm:$0xff]  ;;  %1407 = vmatprep.subr.mxu0 %v794_v36  ;;  %v785_v42 = vld [vmem:[#allocation6 + $0x1180] sm:$0xff] }
  0xa5   : > { %v1042_v41 = vld [vmem:[#allocation6 + $0x1988] sm:$0xff]  ;;  %1478 = vmatprep.subr.mxu1 %v1050_v37  ;;  %v1041_v43 = vld [vmem:[#allocation6 + $0x1980] sm:$0xff]  ;;  %1408 = vmatpush1.msra.mxu0 %v793_v38 }
  0xa6   : > { %1479 = vmatpush1.msra.mxu1 %v1049_v39  ;;  %v778_v44 = vld [vmem:[#allocation6 + $0x1148] sm:$0xff]  ;;  %1409 = vmatprep.subr.mxu0 %v786_v40  ;;  %v777_v46 = vld [vmem:[#allocation6 + $0x1140] sm:$0xff] }
  0xa7   : > { %v1034_v45 = vld [vmem:[#allocation6 + $0x1948] sm:$0xff]  ;;  %1480 = vmatprep.subr.mxu1 %v1042_v41  ;;  %v1033_v47 = vld [vmem:[#allocation6 + $0x1940] sm:$0xff]  ;;  %1410 = vmatpush1.msra.mxu0 %v785_v42 }
  0xa8   : > { %1481 = vmatpush1.msra.mxu1 %v1041_v43  ;;  %v770_v48 = vld [vmem:[#allocation6 + $0x1108] sm:$0xff]  ;;  %1411 = vmatprep.subr.mxu0 %v778_v44  ;;  %v769_v50 = vld [vmem:[#allocation6 + $0x1100] sm:$0xff] }
  0xa9   : > { %v1026_v49 = vld [vmem:[#allocation6 + $0x1908] sm:$0xff]  ;;  %1482 = vmatprep.subr.mxu1 %v1034_v45  ;;  %v1025_v51 = vld [vmem:[#allocation6 + $0x1900] sm:$0xff]  ;;  %1412 = vmatpush1.msra.mxu0 %v777_v46 }
  0xaa   : > { %1483 = vmatpush1.msra.mxu1 %v1033_v47  ;;  %v762_v52 = vld [vmem:[#allocation6 + $0x10c8] sm:$0xff]  ;;  %1413 = vmatprep.subr.mxu0 %v770_v48  ;;  %v761_v54 = vld [vmem:[#allocation6 + $0x10c0] sm:$0xff] }
  0xab   : > { %v1018_v53 = vld [vmem:[#allocation6 + $0x18c8] sm:$0xff]  ;;  %1484 = vmatprep.subr.mxu1 %v1026_v49  ;;  %v1017_v55 = vld [vmem:[#allocation6 + $0x18c0] sm:$0xff]  ;;  %1414 = vmatpush1.msra.mxu0 %v769_v50 }
  0xac   : > { %1485 = vmatpush1.msra.mxu1 %v1025_v51  ;;  %v754_v56 = vld [vmem:[#allocation6 + $0x1088] sm:$0xff]  ;;  %1415 = vmatprep.subr.mxu0 %v762_v52  ;;  %v753_v58 = vld [vmem:[#allocation6 + $0x1080] sm:$0xff] }
  0xad   : > { %v1010_v57 = vld [vmem:[#allocation6 + $0x1888] sm:$0xff]  ;;  %1486 = vmatprep.subr.mxu1 %v1018_v53  ;;  %v1009_v59 = vld [vmem:[#allocation6 + $0x1880] sm:$0xff]  ;;  %1416 = vmatpush1.msra.mxu0 %v761_v54 }
  0xae   : > { %1487 = vmatpush1.msra.mxu1 %v1017_v55  ;;  %v746_v60 = vld [vmem:[#allocation6 + $0x1048] sm:$0xff]  ;;  %1417 = vmatprep.subr.mxu0 %v754_v56  ;;  %v745_v62 = vld [vmem:[#allocation6 + $0x1040] sm:$0xff] }
  0xaf   : > { %v1002_v61 = vld [vmem:[#allocation6 + $0x1848] sm:$0xff]  ;;  %1488 = vmatprep.subr.mxu1 %v1010_v57  ;;  %v1001_v63 = vld [vmem:[#allocation6 + $0x1840] sm:$0xff]  ;;  %1418 = vmatpush1.msra.mxu0 %v753_v58 }
  0xb0   : > { %1489 = vmatpush1.msra.mxu1 %v1009_v59  ;;  %v738_v0 = vld [vmem:[#allocation6 + $0x1008] sm:$0xff]  ;;  %1419 = vmatprep.subr.mxu0 %v746_v60  ;;  %v737_v2 = vld [vmem:[#allocation6 + $0x1000] sm:$0xff] }
  0xb1   : > { %v994_v1 = vld [vmem:[#allocation6 + $0x1808] sm:$0xff]  ;;  %1490 = vmatprep.subr.mxu1 %v1002_v61  ;;  %v993_v3 = vld [vmem:[#allocation6 + $0x1800] sm:$0xff]  ;;  %1420 = vmatpush1.msra.mxu0 %v745_v62 }
  0xb2   : > { %1491 = vmatpush1.msra.mxu1 %v1001_v63  ;;  %v986_v4 = vld [vmem:[#allocation6 + $0x17c8] sm:$0xff]  ;;  %1421 = vmatprep.subr.mxu0 %v738_v0  ;;  %v985_v6 = vld [vmem:[#allocation6 + $0x17c0] sm:$0xff] }
  0xb3   : > { %v1242_v5 = vld [vmem:[#allocation6 + $0x1fc8] sm:$0xff]  ;;  %1492 = vmatprep.subr.mxu1 %v994_v1  ;;  %v1241_v7 = vld [vmem:[#allocation6 + $0x1fc0] sm:$0xff]  ;;  %1422 = vmatpush1.msra.mxu0 %v737_v2 }
  0xb4   : > { %1493 = vmatpush1.msra.mxu1 %v993_v3  ;;  %v978_v8 = vld [vmem:[#allocation6 + $0x1788] sm:$0xff]  ;;  %1423 = vmatprep.subr.mxu0 %v986_v4  ;;  %v977_v10 = vld [vmem:[#allocation6 + $0x1780] sm:$0xff] }
  0xb5   : > { %v1234_v9 = vld [vmem:[#allocation6 + $0x1f88] sm:$0xff]  ;;  %1494 = vmatprep.subr.mxu1 %v1242_v5  ;;  %v1233_v11 = vld [vmem:[#allocation6 + $0x1f80] sm:$0xff]  ;;  %1424 = vmatpush2.msra.mxu0 %v985_v6  ;;  %v224_v6 = vld [vmem:[%s3023_s25 + $0x38] sm:$0xff] }
  0xb6   : > { %1495 = vmatpush2.msra.mxu1 %v1241_v7  ;;  %v970_v12 = vld [vmem:[#allocation6 + $0x1748] sm:$0xff]  ;;  %1425 = vmatprep.subr.mxu0 %v978_v8  ;;  %v969_v14 = vld [vmem:[#allocation6 + $0x1740] sm:$0xff]  ;;  %v348_v7 = vld [vmem:[#allocation6 + $0x3d8] sm:$0xff] }
  0xb7   : > { %v1226_v13 = vld [vmem:[#allocation6 + $0x1f48] sm:$0xff]  ;;  %1496 = vmatprep.subr.mxu1 %v1234_v9  ;;  %v1225_v15 = vld [vmem:[#allocation6 + $0x1f40] sm:$0xff]  ;;  %1426 = vmatpush2.msra.mxu0 %v977_v10  ;;  %v604_v8 = vld [vmem:[#allocation6 + $0xbd8] sm:$0xff] }
  0xb8   : > { %1497 = vmatpush2.msra.mxu1 %v1233_v11  ;;  %v962_v16 = vld [vmem:[#allocation6 + $0x1708] sm:$0xff]  ;;  %1427 = vmatprep.subr.mxu0 %v970_v12  ;;  %v961_v18 = vld [vmem:[#allocation6 + $0x1700] sm:$0xff]  ;;  %v223_v9 = vld [vmem:[%s3023_s25 + $0x30] sm:$0xff] }
  0xb9   : > { %v1218_v17 = vld [vmem:[#allocation6 + $0x1f08] sm:$0xff]  ;;  %1498 = vmatprep.subr.mxu1 %v1226_v13  ;;  %v1217_v19 = vld [vmem:[#allocation6 + $0x1f00] sm:$0xff]  ;;  %1428 = vmatpush2.msra.mxu0 %v969_v14  ;;  %v347_v10 = vld [vmem:[#allocation6 + $0x3d0] sm:$0xff] }
  0xba   : > { %1499 = vmatpush2.msra.mxu1 %v1225_v15  ;;  %v954_v20 = vld [vmem:[#allocation6 + $0x16c8] sm:$0xff]  ;;  %1429 = vmatprep.subr.mxu0 %v962_v16  ;;  %v953_v22 = vld [vmem:[#allocation6 + $0x16c0] sm:$0xff]  ;;  %v603_v11 = vld [vmem:[#allocation6 + $0xbd0] sm:$0xff] }
  0xbb   : > { %v1210_v21 = vld [vmem:[#allocation6 + $0x1ec8] sm:$0xff]  ;;  %1500 = vmatprep.subr.mxu1 %v1218_v17  ;;  %v1209_v23 = vld [vmem:[#allocation6 + $0x1ec0] sm:$0xff]  ;;  %1430 = vmatpush2.msra.mxu0 %v961_v18  ;;  %v340_v12 = vld [vmem:[#allocation6 + $0x398] sm:$0xff] }
  0xbc   : > { %1501 = vmatpush2.msra.mxu1 %v1217_v19  ;;  %v946_v24 = vld [vmem:[#allocation6 + $0x1688] sm:$0xff]  ;;  %1431 = vmatprep.subr.mxu0 %v954_v20  ;;  %v945_v26 = vld [vmem:[#allocation6 + $0x1680] sm:$0xff]  ;;  %v596_v13 = vld [vmem:[#allocation6 + $0xb98] sm:$0xff] }
  0xbd   : > { %v1202_v25 = vld [vmem:[#allocation6 + $0x1e88] sm:$0xff]  ;;  %1502 = vmatprep.subr.mxu1 %v1210_v21  ;;  %v1201_v27 = vld [vmem:[#allocation6 + $0x1e80] sm:$0xff]  ;;  %1432 = vmatpush2.msra.mxu0 %v953_v22  ;;  %v339_v14 = vld [vmem:[#allocation6 + $0x390] sm:$0xff] }
  0xbe   : > { %1503 = vmatpush2.msra.mxu1 %v1209_v23  ;;  %v938_v28 = vld [vmem:[#allocation6 + $0x1648] sm:$0xff]  ;;  %1433 = vmatprep.subr.mxu0 %v946_v24  ;;  %v937_v30 = vld [vmem:[#allocation6 + $0x1640] sm:$0xff]  ;;  %v595_v15 = vld [vmem:[#allocation6 + $0xb90] sm:$0xff] }
  0xbf   : > { %v1194_v29 = vld [vmem:[#allocation6 + $0x1e48] sm:$0xff]  ;;  %1504 = vmatprep.subr.mxu1 %v1202_v25  ;;  %v1193_v31 = vld [vmem:[#allocation6 + $0x1e40] sm:$0xff]  ;;  %1434 = vmatpush2.msra.mxu0 %v945_v26  ;;  %v332_v16 = vld [vmem:[#allocation6 + $0x358] sm:$0xff] }
  0xc0   : > { %1505 = vmatpush2.msra.mxu1 %v1201_v27  ;;  %v930_v32 = vld [vmem:[#allocation6 + $0x1608] sm:$0xff]  ;;  %1435 = vmatprep.subr.mxu0 %v938_v28  ;;  %v929_v34 = vld [vmem:[#allocation6 + $0x1600] sm:$0xff]  ;;  %v588_v17 = vld [vmem:[#allocation6 + $0xb58] sm:$0xff] }
  0xc1   : > { %v1186_v33 = vld [vmem:[#allocation6 + $0x1e08] sm:$0xff]  ;;  %1506 = vmatprep.subr.mxu1 %v1194_v29  ;;  %v1185_v35 = vld [vmem:[#allocation6 + $0x1e00] sm:$0xff]  ;;  %1436 = vmatpush2.msra.mxu0 %v937_v30  ;;  %v331_v18 = vld [vmem:[#allocation6 + $0x350] sm:$0xff] }
  0xc2   : > { %1507 = vmatpush2.msra.mxu1 %v1193_v31  ;;  %v922_v36 = vld [vmem:[#allocation6 + $0x15c8] sm:$0xff]  ;;  %1437 = vmatprep.subr.mxu0 %v930_v32  ;;  %v921_v38 = vld [vmem:[#allocation6 + $0x15c0] sm:$0xff]  ;;  %v587_v19 = vld [vmem:[#allocation6 + $0xb50] sm:$0xff] }
  0xc3   : > { %v1178_v37 = vld [vmem:[#allocation6 + $0x1dc8] sm:$0xff]  ;;  %1508 = vmatprep.subr.mxu1 %v1186_v33  ;;  %v1177_v39 = vld [vmem:[#allocation6 + $0x1dc0] sm:$0xff]  ;;  %1438 = vmatpush2.msra.mxu0 %v929_v34  ;;  %v324_v20 = vld [vmem:[#allocation6 + $0x318] sm:$0xff] }
  0xc4   : > { %1509 = vmatpush2.msra.mxu1 %v1185_v35  ;;  %v914_v40 = vld [vmem:[#allocation6 + $0x1588] sm:$0xff]  ;;  %1439 = vmatprep.subr.mxu0 %v922_v36  ;;  %v913_v42 = vld [vmem:[#allocation6 + $0x1580] sm:$0xff]  ;;  %v580_v21 = vld [vmem:[#allocation6 + $0xb18] sm:$0xff] }
  0xc5   : > { %v1170_v41 = vld [vmem:[#allocation6 + $0x1d88] sm:$0xff]  ;;  %1510 = vmatprep.subr.mxu1 %v1178_v37  ;;  %v1169_v43 = vld [vmem:[#allocation6 + $0x1d80] sm:$0xff]  ;;  %1440 = vmatpush2.msra.mxu0 %v921_v38  ;;  %v323_v22 = vld [vmem:[#allocation6 + $0x310] sm:$0xff] }
  0xc6   : > { %1511 = vmatpush2.msra.mxu1 %v1177_v39  ;;  %v906_v44 = vld [vmem:[#allocation6 + $0x1548] sm:$0xff]  ;;  %1441 = vmatprep.subr.mxu0 %v914_v40  ;;  %v905_v46 = vld [vmem:[#allocation6 + $0x1540] sm:$0xff]  ;;  %v579_v23 = vld [vmem:[#allocation6 + $0xb10] sm:$0xff] }
  0xc7   : > { %v1162_v45 = vld [vmem:[#allocation6 + $0x1d48] sm:$0xff]  ;;  %1512 = vmatprep.subr.mxu1 %v1170_v41  ;;  %v1161_v47 = vld [vmem:[#allocation6 + $0x1d40] sm:$0xff]  ;;  %1442 = vmatpush2.msra.mxu0 %v913_v42  ;;  %v316_v24 = vld [vmem:[#allocation6 + $0x2d8] sm:$0xff] }
  0xc8   : > { %1513 = vmatpush2.msra.mxu1 %v1169_v43  ;;  %v898_v48 = vld [vmem:[#allocation6 + $0x1508] sm:$0xff]  ;;  %1443 = vmatprep.subr.mxu0 %v906_v44  ;;  %v897_v50 = vld [vmem:[#allocation6 + $0x1500] sm:$0xff]  ;;  %v572_v25 = vld [vmem:[#allocation6 + $0xad8] sm:$0xff] }
  0xc9   : > { %v1154_v49 = vld [vmem:[#allocation6 + $0x1d08] sm:$0xff]  ;;  %1514 = vmatprep.subr.mxu1 %v1162_v45  ;;  %v1153_v51 = vld [vmem:[#allocation6 + $0x1d00] sm:$0xff]  ;;  %1444 = vmatpush2.msra.mxu0 %v905_v46  ;;  %v315_v26 = vld [vmem:[#allocation6 + $0x2d0] sm:$0xff] }
  0xca   : > { %1515 = vmatpush2.msra.mxu1 %v1161_v47  ;;  %v890_v52 = vld [vmem:[#allocation6 + $0x14c8] sm:$0xff]  ;;  %1445 = vmatprep.subr.mxu0 %v898_v48  ;;  %v889_v54 = vld [vmem:[#allocation6 + $0x14c0] sm:$0xff]  ;;  %v571_v27 = vld [vmem:[#allocation6 + $0xad0] sm:$0xff] }
  0xcb   : > { %v1146_v53 = vld [vmem:[#allocation6 + $0x1cc8] sm:$0xff]  ;;  %1516 = vmatprep.subr.mxu1 %v1154_v49  ;;  %v1145_v55 = vld [vmem:[#allocation6 + $0x1cc0] sm:$0xff]  ;;  %1446 = vmatpush2.msra.mxu0 %v897_v50  ;;  %v308_v28 = vld [vmem:[#allocation6 + $0x298] sm:$0xff] }
  0xcc   : > { %1517 = vmatpush2.msra.mxu1 %v1153_v51  ;;  %v882_v56 = vld [vmem:[#allocation6 + $0x1488] sm:$0xff]  ;;  %1447 = vmatprep.subr.mxu0 %v890_v52  ;;  %v881_v58 = vld [vmem:[#allocation6 + $0x1480] sm:$0xff]  ;;  %v564_v29 = vld [vmem:[#allocation6 + $0xa98] sm:$0xff] }
  0xcd   : > { %v1138_v57 = vld [vmem:[#allocation6 + $0x1c88] sm:$0xff]  ;;  %1518 = vmatprep.subr.mxu1 %v1146_v53  ;;  %v1137_v59 = vld [vmem:[#allocation6 + $0x1c80] sm:$0xff]  ;;  %1448 = vmatpush2.msra.mxu0 %v889_v54  ;;  %v307_v30 = vld [vmem:[#allocation6 + $0x290] sm:$0xff] }
  0xce   : > { %1519 = vmatpush2.msra.mxu1 %v1145_v55  ;;  %v874_v60 = vld [vmem:[#allocation6 + $0x1448] sm:$0xff]  ;;  %1449 = vmatprep.subr.mxu0 %v882_v56  ;;  %v873_v62 = vld [vmem:[#allocation6 + $0x1440] sm:$0xff]  ;;  %v563_v31 = vld [vmem:[#allocation6 + $0xa90] sm:$0xff] }
  0xcf   : > { %v1130_v61 = vld [vmem:[#allocation6 + $0x1c48] sm:$0xff]  ;;  %1520 = vmatprep.subr.mxu1 %v1138_v57  ;;  %v1129_v63 = vld [vmem:[#allocation6 + $0x1c40] sm:$0xff]  ;;  %1450 = vmatpush2.msra.mxu0 %v881_v58  ;;  %v300_v32 = vld [vmem:[#allocation6 + $0x258] sm:$0xff] }
  0xd0   : > { %1521 = vmatpush2.msra.mxu1 %v1137_v59  ;;  %v866_v0 = vld [vmem:[#allocation6 + $0x1408] sm:$0xff]  ;;  %1451 = vmatprep.subr.mxu0 %v874_v60  ;;  %v865_v2 = vld [vmem:[#allocation6 + $0x1400] sm:$0xff]  ;;  %v556_v33 = vld [vmem:[#allocation6 + $0xa58] sm:$0xff] }
  0xd1   : > { %v1122_v1 = vld [vmem:[#allocation6 + $0x1c08] sm:$0xff]  ;;  %1522 = vmatprep.subr.mxu1 %v1130_v61  ;;  %1452 = vmatpush2.msra.mxu0 %v873_v62  ;;  %v1121_v4 = vld [vmem:[#allocation6 + $0x1c00] sm:$0xff]  ;;  %v299_v34 = vld [vmem:[#allocation6 + $0x250] sm:$0xff] }
  0xd2   : > { %v222_v3 = vld [vmem:[%s3023_s25 + $0x28] sm:$0xff]  ;;  %1523 = vmatpush2.msra.mxu1 %v1129_v63  ;;  %v221_v5 = vld [vmem:[%s3023_s25 + $0x20] sm:$0xff]  ;;  %1453 = vmatprep.subr.mxu0 %v866_v0  ;;  %v555_v35 = vld [vmem:[#allocation6 + $0xa50] sm:$0xff] }
  0xd3   : > { %1524 = vmatprep.subr.mxu1 %v1122_v1  ;;  %1454 = vmatpush2.msra.mxu0 %v865_v2  ;;  %v292_v36 = vld [vmem:[#allocation6 + $0x218] sm:$0xff]  ;;  %v291_v38 = vld [vmem:[#allocation6 + $0x210] sm:$0xff] }
  0xd4   : > { %1455 = vmatprep.mubr.f32.mxu0 %v222_v3  ;;  %1525 = vmatpush2.msra.mxu1 %v1121_v4  ;;  %v548_v37 = vld [vmem:[#allocation6 + $0xa18] sm:$0xff]  ;;  %v547_v39 = vld [vmem:[#allocation6 + $0xa10] sm:$0xff] }
  0xd5   : > { %1456 = vmatmul.mubr.f32.vlgmr.msra.gmra.mxu0 %v221_v5  ;;  %1526 = vmatprep.mubr.f32.mxu1 %v224_v6  ;;  %v284_v40 = vld [vmem:[#allocation6 + $0x1d8] sm:$0xff]  ;;  %v283_v42 = vld [vmem:[#allocation6 + $0x1d0] sm:$0xff] }
  0xd6   : > { %1533 = vmatprep.subr.mxu0 %v348_v7  ;;  %1604 = vmatprep.subr.mxu1 %v604_v8  ;;  %v540_v41 = vld [vmem:[#allocation6 + $0x9d8] sm:$0xff]  ;;  %v539_v43 = vld [vmem:[#allocation6 + $0x9d0] sm:$0xff] }
  0xd7   : > { %1527 = vmatmul.mubr.f32.vlgmr.msra.gmra.mxu1 %v223_v9  ;;  %1534 = vmatpush1.msra.mxu0 %v347_v10  ;;  %v276_v44 = vld [vmem:[#allocation6 + $0x198] sm:$0xff]  ;;  %v275_v46 = vld [vmem:[#allocation6 + $0x190] sm:$0xff] }
  0xd8   : > { %1605 = vmatpush1.msra.mxu1 %v603_v11  ;;  %1535 = vmatprep.subr.mxu0 %v340_v12  ;;  %v532_v45 = vld [vmem:[#allocation6 + $0x998] sm:$0xff]  ;;  %v531_v47 = vld [vmem:[#allocation6 + $0x990] sm:$0xff] }
  0xd9   : > { %1606 = vmatprep.subr.mxu1 %v596_v13  ;;  %1536 = vmatpush1.msra.mxu0 %v339_v14  ;;  %v268_v48 = vld [vmem:[#allocation6 + $0x158] sm:$0xff]  ;;  %v267_v50 = vld [vmem:[#allocation6 + $0x150] sm:$0xff] }
  0xda   : > { %1607 = vmatpush1.msra.mxu1 %v595_v15  ;;  %1537 = vmatprep.subr.mxu0 %v332_v16  ;;  %v524_v49 = vld [vmem:[#allocation6 + $0x958] sm:$0xff]  ;;  %v523_v51 = vld [vmem:[#allocation6 + $0x950] sm:$0xff] }
  0xdb   : > { %1608 = vmatprep.subr.mxu1 %v588_v17  ;;  %1538 = vmatpush1.msra.mxu0 %v331_v18  ;;  %v260_v52 = vld [vmem:[#allocation6 + $0x118] sm:$0xff]  ;;  %v259_v54 = vld [vmem:[#allocation6 + $0x110] sm:$0xff] }
  0xdc   : > { %1609 = vmatpush1.msra.mxu1 %v587_v19  ;;  %1539 = vmatprep.subr.mxu0 %v324_v20  ;;  %v516_v53 = vld [vmem:[#allocation6 + $0x918] sm:$0xff]  ;;  %v515_v55 = vld [vmem:[#allocation6 + $0x910] sm:$0xff] }
  0xdd   : > { %1610 = vmatprep.subr.mxu1 %v580_v21  ;;  %1540 = vmatpush1.msra.mxu0 %v323_v22  ;;  %v252_v56 = vld [vmem:[#allocation6 + $0xd8] sm:$0xff]  ;;  %v251_v58 = vld [vmem:[#allocation6 + $0xd0] sm:$0xff] }
  0xde   : > { %1611 = vmatpush1.msra.mxu1 %v579_v23  ;;  %1541 = vmatprep.subr.mxu0 %v316_v24  ;;  %v508_v57 = vld [vmem:[#allocation6 + $0x8d8] sm:$0xff]  ;;  %v507_v59 = vld [vmem:[#allocation6 + $0x8d0] sm:$0xff] }
  0xdf   : > { %1612 = vmatprep.subr.mxu1 %v572_v25  ;;  %1542 = vmatpush1.msra.mxu0 %v315_v26  ;;  %v244_v60 = vld [vmem:[#allocation6 + $0x98] sm:$0xff]  ;;  %v243_v62 = vld [vmem:[#allocation6 + $0x90] sm:$0xff] }
  0xe0   : > { %1613 = vmatpush1.msra.mxu1 %v571_v27  ;;  %1543 = vmatprep.subr.mxu0 %v308_v28  ;;  %v500_v61 = vld [vmem:[#allocation6 + $0x898] sm:$0xff]  ;;  %v499_v63 = vld [vmem:[#allocation6 + $0x890] sm:$0xff] }
  0xe1   : > { %1614 = vmatprep.subr.mxu1 %v564_v29  ;;  %1544 = vmatpush1.msra.mxu0 %v307_v30  ;;  %v236_v0 = vld [vmem:[#allocation6 + $0x58] sm:$0xff]  ;;  %v235_v2 = vld [vmem:[#allocation6 + $0x50] sm:$0xff] }
  0xe2   : > { %1615 = vmatpush1.msra.mxu1 %v563_v31  ;;  %1545 = vmatprep.subr.mxu0 %v300_v32  ;;  %v492_v1 = vld [vmem:[#allocation6 + $0x858] sm:$0xff]  ;;  %v491_v3 = vld [vmem:[#allocation6 + $0x850] sm:$0xff] }
  0xe3   : > { %1616 = vmatprep.subr.mxu1 %v556_v33  ;;  %1546 = vmatpush1.msra.mxu0 %v299_v34  ;;  %v228_v4 = vld [vmem:[#allocation6 + $0x18] sm:$0xff]  ;;  %v227_v6 = vld [vmem:[#allocation6 + $0x10] sm:$0xff] }
  0xe4   : > { %1617 = vmatpush1.msra.mxu1 %v555_v35  ;;  %1547 = vmatprep.subr.mxu0 %v292_v36  ;;  %v484_v5 = vld [vmem:[#allocation6 + $0x818] sm:$0xff]  ;;  %v483_v7 = vld [vmem:[#allocation6 + $0x810] sm:$0xff] }
  0xe5   : > { %1618 = vmatprep.subr.mxu1 %v548_v37  ;;  %1548 = vmatpush1.msra.mxu0 %v291_v38  ;;  %v476_v8 = vld [vmem:[#allocation6 + $0x7d8] sm:$0xff]  ;;  %v475_v10 = vld [vmem:[#allocation6 + $0x7d0] sm:$0xff] }
  0xe6   : > { %1619 = vmatpush1.msra.mxu1 %v547_v39  ;;  %1549 = vmatprep.subr.mxu0 %v284_v40  ;;  %v732_v9 = vld [vmem:[#allocation6 + $0xfd8] sm:$0xff]  ;;  %v731_v11 = vld [vmem:[#allocation6 + $0xfd0] sm:$0xff] }
  0xe7   : > { %1620 = vmatprep.subr.mxu1 %v540_v41  ;;  %1550 = vmatpush1.msra.mxu0 %v283_v42  ;;  %v468_v12 = vld [vmem:[#allocation6 + $0x798] sm:$0xff]  ;;  %v467_v14 = vld [vmem:[#allocation6 + $0x790] sm:$0xff] }
  0xe8   : > { %1621 = vmatpush1.msra.mxu1 %v539_v43  ;;  %1551 = vmatprep.subr.mxu0 %v276_v44  ;;  %v724_v13 = vld [vmem:[#allocation6 + $0xf98] sm:$0xff]  ;;  %v723_v15 = vld [vmem:[#allocation6 + $0xf90] sm:$0xff] }
  0xe9   : > { %1622 = vmatprep.subr.mxu1 %v532_v45  ;;  %1552 = vmatpush1.msra.mxu0 %v275_v46  ;;  %v460_v16 = vld [vmem:[#allocation6 + $0x758] sm:$0xff]  ;;  %v459_v18 = vld [vmem:[#allocation6 + $0x750] sm:$0xff] }
  0xea   : > { %1623 = vmatpush1.msra.mxu1 %v531_v47  ;;  %1553 = vmatprep.subr.mxu0 %v268_v48  ;;  %v716_v17 = vld [vmem:[#allocation6 + $0xf58] sm:$0xff]  ;;  %v715_v19 = vld [vmem:[#allocation6 + $0xf50] sm:$0xff] }
  0xeb   : > { %1624 = vmatprep.subr.mxu1 %v524_v49  ;;  %1554 = vmatpush1.msra.mxu0 %v267_v50  ;;  %v452_v20 = vld [vmem:[#allocation6 + $0x718] sm:$0xff]  ;;  %v451_v22 = vld [vmem:[#allocation6 + $0x710] sm:$0xff] }
  0xec   : > { %1625 = vmatpush1.msra.mxu1 %v523_v51  ;;  %1555 = vmatprep.subr.mxu0 %v260_v52  ;;  %v708_v21 = vld [vmem:[#allocation6 + $0xf18] sm:$0xff]  ;;  %v707_v23 = vld [vmem:[#allocation6 + $0xf10] sm:$0xff] }
  0xed   : > { %1626 = vmatprep.subr.mxu1 %v516_v53  ;;  %1556 = vmatpush1.msra.mxu0 %v259_v54  ;;  %v444_v24 = vld [vmem:[#allocation6 + $0x6d8] sm:$0xff]  ;;  %v443_v26 = vld [vmem:[#allocation6 + $0x6d0] sm:$0xff] }
  0xee   : > { %1627 = vmatpush1.msra.mxu1 %v515_v55  ;;  %1557 = vmatprep.subr.mxu0 %v252_v56  ;;  %v700_v25 = vld [vmem:[#allocation6 + $0xed8] sm:$0xff]  ;;  %v699_v27 = vld [vmem:[#allocation6 + $0xed0] sm:$0xff] }
  0xef   : > { %1628 = vmatprep.subr.mxu1 %v508_v57  ;;  %1558 = vmatpush1.msra.mxu0 %v251_v58  ;;  %v436_v28 = vld [vmem:[#allocation6 + $0x698] sm:$0xff]  ;;  %v435_v30 = vld [vmem:[#allocation6 + $0x690] sm:$0xff] }
  0xf0   : > { %1629 = vmatpush1.msra.mxu1 %v507_v59  ;;  %1559 = vmatprep.subr.mxu0 %v244_v60  ;;  %v692_v29 = vld [vmem:[#allocation6 + $0xe98] sm:$0xff]  ;;  %v691_v31 = vld [vmem:[#allocation6 + $0xe90] sm:$0xff] }
  0xf1   : > { %1630 = vmatprep.subr.mxu1 %v500_v61  ;;  %1560 = vmatpush1.msra.mxu0 %v243_v62  ;;  %v428_v32 = vld [vmem:[#allocation6 + $0x658] sm:$0xff]  ;;  %v427_v34 = vld [vmem:[#allocation6 + $0x650] sm:$0xff] }
  0xf2   : > { %1631 = vmatpush1.msra.mxu1 %v499_v63  ;;  %1561 = vmatprep.subr.mxu0 %v236_v0  ;;  %v684_v33 = vld [vmem:[#allocation6 + $0xe58] sm:$0xff]  ;;  %v683_v35 = vld [vmem:[#allocation6 + $0xe50] sm:$0xff] }
  0xf3   : > { %1632 = vmatprep.subr.mxu1 %v492_v1  ;;  %1562 = vmatpush1.msra.mxu0 %v235_v2  ;;  %v420_v36 = vld [vmem:[#allocation6 + $0x618] sm:$0xff]  ;;  %v419_v38 = vld [vmem:[#allocation6 + $0x610] sm:$0xff] }
  0xf4   : > { %1633 = vmatpush1.msra.mxu1 %v491_v3  ;;  %1563 = vmatprep.subr.mxu0 %v228_v4  ;;  %v676_v37 = vld [vmem:[#allocation6 + $0xe18] sm:$0xff]  ;;  %v675_v39 = vld [vmem:[#allocation6 + $0xe10] sm:$0xff] }
  0xf5   : > { %1634 = vmatprep.subr.mxu1 %v484_v5  ;;  %1564 = vmatpush1.msra.mxu0 %v227_v6  ;;  %v412_v40 = vld [vmem:[#allocation6 + $0x5d8] sm:$0xff]  ;;  %v411_v42 = vld [vmem:[#allocation6 + $0x5d0] sm:$0xff] }
  0xf6   : > { %1635 = vmatpush1.msra.mxu1 %v483_v7  ;;  %1565 = vmatprep.subr.mxu0 %v476_v8  ;;  %v668_v41 = vld [vmem:[#allocation6 + $0xdd8] sm:$0xff]  ;;  %v667_v43 = vld [vmem:[#allocation6 + $0xdd0] sm:$0xff]  ;;  %v2708_v8 = vld [vmem:[%s3023_s25 + $0x8] sm:$0xff] }
  0xf7   : > { %1636 = vmatprep.subr.mxu1 %v732_v9  ;;  %1566 = vmatpush2.msra.mxu0 %v475_v10  ;;  %v404_v44 = vld [vmem:[#allocation6 + $0x598] sm:$0xff]  ;;  %v403_v46 = vld [vmem:[#allocation6 + $0x590] sm:$0xff] }
  0xf8   : > { %1637 = vmatpush2.msra.mxu1 %v731_v11  ;;  %1567 = vmatprep.subr.mxu0 %v468_v12  ;;  %v660_v45 = vld [vmem:[#allocation6 + $0xd98] sm:$0xff]  ;;  %v659_v47 = vld [vmem:[#allocation6 + $0xd90] sm:$0xff] }
  0xf9   : > { %1638 = vmatprep.subr.mxu1 %v724_v13  ;;  %1568 = vmatpush2.msra.mxu0 %v467_v14  ;;  %v396_v48 = vld [vmem:[#allocation6 + $0x558] sm:$0xff]  ;;  %v395_v50 = vld [vmem:[#allocation6 + $0x550] sm:$0xff]  ;;  %v2710_v14 = vld [vmem:[%s3023_s25] sm:$0xff] }
  0xfa   : > { %1639 = vmatpush2.msra.mxu1 %v723_v15  ;;  %1569 = vmatprep.subr.mxu0 %v460_v16  ;;  %v652_v49 = vld [vmem:[#allocation6 + $0xd58] sm:$0xff]  ;;  %v651_v51 = vld [vmem:[#allocation6 + $0xd50] sm:$0xff] }
  0xfb   : > { %1640 = vmatprep.subr.mxu1 %v716_v17  ;;  %1570 = vmatpush2.msra.mxu0 %v459_v18  ;;  %v388_v52 = vld [vmem:[#allocation6 + $0x518] sm:$0xff]  ;;  %v387_v54 = vld [vmem:[#allocation6 + $0x510] sm:$0xff] }
  0xfc   : > { %1641 = vmatpush2.msra.mxu1 %v715_v19  ;;  %1571 = vmatprep.subr.mxu0 %v452_v20  ;;  %v644_v53 = vld [vmem:[#allocation6 + $0xd18] sm:$0xff]  ;;  %v643_v55 = vld [vmem:[#allocation6 + $0xd10] sm:$0xff] }
  0xfd   : > { %1642 = vmatprep.subr.mxu1 %v708_v21  ;;  %1572 = vmatpush2.msra.mxu0 %v451_v22  ;;  %v380_v56 = vld [vmem:[#allocation6 + $0x4d8] sm:$0xff]  ;;  %v379_v58 = vld [vmem:[#allocation6 + $0x4d0] sm:$0xff] }
  0xfe   : > { %1643 = vmatpush2.msra.mxu1 %v707_v23  ;;  %1573 = vmatprep.subr.mxu0 %v444_v24  ;;  %v636_v57 = vld [vmem:[#allocation6 + $0xcd8] sm:$0xff]  ;;  %v635_v59 = vld [vmem:[#allocation6 + $0xcd0] sm:$0xff] }
  0xff   : > { %1644 = vmatprep.subr.mxu1 %v700_v25  ;;  %1574 = vmatpush2.msra.mxu0 %v443_v26  ;;  %v372_v60 = vld [vmem:[#allocation6 + $0x498] sm:$0xff]  ;;  %v371_v62 = vld [vmem:[#allocation6 + $0x490] sm:$0xff] }
 0x100   : > { %1645 = vmatpush2.msra.mxu1 %v699_v27  ;;  %1575 = vmatprep.subr.mxu0 %v436_v28  ;;  %v628_v61 = vld [vmem:[#allocation6 + $0xc98] sm:$0xff]  ;;  %v627_v63 = vld [vmem:[#allocation6 + $0xc90] sm:$0xff] }
 0x101   : > { %1646 = vmatprep.subr.mxu1 %v692_v29  ;;  %1576 = vmatpush2.msra.mxu0 %v435_v30  ;;  %v364_v0 = vld [vmem:[#allocation6 + $0x458] sm:$0xff]  ;;  %v363_v2 = vld [vmem:[#allocation6 + $0x450] sm:$0xff] }
 0x102   : > { %1647 = vmatpush2.msra.mxu1 %v691_v31  ;;  %1577 = vmatprep.subr.mxu0 %v428_v32  ;;  %v620_v1 = vld [vmem:[#allocation6 + $0xc58] sm:$0xff]  ;;  %v619_v3 = vld [vmem:[#allocation6 + $0xc50] sm:$0xff] }
 0x103   : > { %1648 = vmatprep.subr.mxu1 %v684_v33  ;;  %1578 = vmatpush2.msra.mxu0 %v427_v34  ;;  %v356_v4 = vld [vmem:[#allocation6 + $0x418] sm:$0xff]  ;;  %v355_v6 = vld [vmem:[#allocation6 + $0x410] sm:$0xff] }
 0x104   : > { %1649 = vmatpush2.msra.mxu1 %v683_v35  ;;  %1579 = vmatprep.subr.mxu0 %v420_v36  ;;  %v612_v5 = vld [vmem:[#allocation6 + $0xc18] sm:$0xff]  ;;  %v611_v7 = vld [vmem:[#allocation6 + $0xc10] sm:$0xff] }
 0x105   : > { %1650 = vmatprep.subr.mxu1 %v676_v37  ;;  %1580 = vmatpush2.msra.mxu0 %v419_v38  ;;  %v860_v9 = vld [vmem:[#allocation6 + $0x13d8] sm:$0xff]  ;;  %v859_v12 = vld [vmem:[#allocation6 + $0x13d0] sm:$0xff] }
 0x106   : > { %1651 = vmatpush2.msra.mxu1 %v675_v39  ;;  %1581 = vmatprep.subr.mxu0 %v412_v40  ;;  %v1116_v10 = vld [vmem:[#allocation6 + $0x1bd8] sm:$0xff]  ;;  %v1115_v13 = vld [vmem:[#allocation6 + $0x1bd0] sm:$0xff] }
 0x107   : > { %1652 = vmatprep.subr.mxu1 %v668_v41  ;;  %1582 = vmatpush2.msra.mxu0 %v411_v42  ;;  %v2709_v11 = vld [vmem:[%s3023_s25 + $0x18] sm:$0xff]  ;;  %v2711_v15 = vld [vmem:[%s3023_s25 + $0x10] sm:$0xff] }
 0x108   : > { %1653 = vmatpush2.msra.mxu1 %v667_v43  ;;  %1583 = vmatprep.subr.mxu0 %v404_v44  ;;  %v852_v16 = vld [vmem:[#allocation6 + $0x1398] sm:$0xff]  ;;  %v851_v18 = vld [vmem:[#allocation6 + $0x1390] sm:$0xff] }
 0x109   : > { %1654 = vmatprep.subr.mxu1 %v660_v45  ;;  %1584 = vmatpush2.msra.mxu0 %v403_v46  ;;  %v1108_v17 = vld [vmem:[#allocation6 + $0x1b98] sm:$0xff]  ;;  %v1107_v19 = vld [vmem:[#allocation6 + $0x1b90] sm:$0xff] }
 0x10a   : > { %1655 = vmatpush2.msra.mxu1 %v659_v47  ;;  %1585 = vmatprep.subr.mxu0 %v396_v48  ;;  %v844_v20 = vld [vmem:[#allocation6 + $0x1358] sm:$0xff]  ;;  %v843_v22 = vld [vmem:[#allocation6 + $0x1350] sm:$0xff] }
 0x10b   : > { %1656 = vmatprep.subr.mxu1 %v652_v49  ;;  %1586 = vmatpush2.msra.mxu0 %v395_v50  ;;  %v1100_v21 = vld [vmem:[#allocation6 + $0x1b58] sm:$0xff]  ;;  %v1099_v23 = vld [vmem:[#allocation6 + $0x1b50] sm:$0xff] }
 0x10c   : > { %1657 = vmatpush2.msra.mxu1 %v651_v51  ;;  %1587 = vmatprep.subr.mxu0 %v388_v52  ;;  %v836_v24 = vld [vmem:[#allocation6 + $0x1318] sm:$0xff]  ;;  %v835_v26 = vld [vmem:[#allocation6 + $0x1310] sm:$0xff] }
 0x10d   : > { %1658 = vmatprep.subr.mxu1 %v644_v53  ;;  %1588 = vmatpush2.msra.mxu0 %v387_v54  ;;  %v1092_v25 = vld [vmem:[#allocation6 + $0x1b18] sm:$0xff]  ;;  %v1091_v27 = vld [vmem:[#allocation6 + $0x1b10] sm:$0xff] }
 0x10e   : > { %1659 = vmatpush2.msra.mxu1 %v643_v55  ;;  %1589 = vmatprep.subr.mxu0 %v380_v56  ;;  %v828_v28 = vld [vmem:[#allocation6 + $0x12d8] sm:$0xff]  ;;  %v827_v30 = vld [vmem:[#allocation6 + $0x12d0] sm:$0xff] }
 0x10f   : > { %1660 = vmatprep.subr.mxu1 %v636_v57  ;;  %1590 = vmatpush2.msra.mxu0 %v379_v58  ;;  %v1084_v29 = vld [vmem:[#allocation6 + $0x1ad8] sm:$0xff]  ;;  %v1083_v31 = vld [vmem:[#allocation6 + $0x1ad0] sm:$0xff] }
 0x110   : > { %1661 = vmatpush2.msra.mxu1 %v635_v59  ;;  %1591 = vmatprep.subr.mxu0 %v372_v60  ;;  %v820_v32 = vld [vmem:[#allocation6 + $0x1298] sm:$0xff]  ;;  %v819_v34 = vld [vmem:[#allocation6 + $0x1290] sm:$0xff] }
 0x111   : > { %1662 = vmatprep.subr.mxu1 %v628_v61  ;;  %1592 = vmatpush2.msra.mxu0 %v371_v62  ;;  %v1076_v33 = vld [vmem:[#allocation6 + $0x1a98] sm:$0xff]  ;;  %v1075_v35 = vld [vmem:[#allocation6 + $0x1a90] sm:$0xff] }
 0x112   : > { %1663 = vmatpush2.msra.mxu1 %v627_v63  ;;  %1593 = vmatprep.subr.mxu0 %v364_v0  ;;  %v812_v36 = vld [vmem:[#allocation6 + $0x1258] sm:$0xff]  ;;  %v811_v38 = vld [vmem:[#allocation6 + $0x1250] sm:$0xff] }
 0x113   : > { %1664 = vmatprep.subr.mxu1 %v620_v1  ;;  %1594 = vmatpush2.msra.mxu0 %v363_v2  ;;  %v1068_v37 = vld [vmem:[#allocation6 + $0x1a58] sm:$0xff]  ;;  %v1067_v39 = vld [vmem:[#allocation6 + $0x1a50] sm:$0xff] }
 0x114   : > { %1665 = vmatpush2.msra.mxu1 %v619_v3  ;;  %1595 = vmatprep.subr.mxu0 %v356_v4  ;;  %v804_v40 = vld [vmem:[#allocation6 + $0x1218] sm:$0xff]  ;;  %v803_v42 = vld [vmem:[#allocation6 + $0x1210] sm:$0xff] }
 0x115   : > { %1666 = vmatprep.subr.mxu1 %v612_v5  ;;  %1596 = vmatpush2.msra.mxu0 %v355_v6  ;;  %v1060_v41 = vld [vmem:[#allocation6 + $0x1a18] sm:$0xff]  ;;  %v1059_v43 = vld [vmem:[#allocation6 + $0x1a10] sm:$0xff] }
 0x116   : > { %1597 = vmatprep.mubr.f32.mxu0 %v2708_v8  ;;  %1667 = vmatpush2.msra.mxu1 %v611_v7  ;;  %v796_v44 = vld [vmem:[#allocation6 + $0x11d8] sm:$0xff]  ;;  %v795_v46 = vld [vmem:[#allocation6 + $0x11d0] sm:$0xff] }
 0x117   : > { %1668 = vmatprep.mubr.f32.mxu1 %v2709_v11  ;;  %1598 = vmatmul.mubr.f32.vlgmr.msra.gmra.mxu0 %v2710_v14  ;;  %v1052_v45 = vld [vmem:[#allocation6 + $0x19d8] sm:$0xff]  ;;  %v1051_v47 = vld [vmem:[#allocation6 + $0x19d0] sm:$0xff] }
 0x118   : > { %1669 = vmatmul.mubr.f32.vlgmr.msra.gmra.mxu1 %v2711_v15  ;;  %1675 = vmatprep.subr.mxu0 %v860_v9  ;;  %v788_v48 = vld [vmem:[#allocation6 + $0x1198] sm:$0xff]  ;;  %v787_v50 = vld [vmem:[#allocation6 + $0x1190] sm:$0xff] }
 0x119   : > { %1746 = vmatprep.subr.mxu1 %v1116_v10  ;;  %1676 = vmatpush1.msra.mxu0 %v859_v12  ;;  %v1044_v49 = vld [vmem:[#allocation6 + $0x1998] sm:$0xff]  ;;  %v1043_v51 = vld [vmem:[#allocation6 + $0x1990] sm:$0xff] }
 0x11a   : > { %1747 = vmatpush1.msra.mxu1 %v1115_v13  ;;  %1677 = vmatprep.subr.mxu0 %v852_v16  ;;  %v780_v52 = vld [vmem:[#allocation6 + $0x1158] sm:$0xff]  ;;  %v779_v54 = vld [vmem:[#allocation6 + $0x1150] sm:$0xff] }
 0x11b   : > { %1748 = vmatprep.subr.mxu1 %v1108_v17  ;;  %1678 = vmatpush1.msra.mxu0 %v851_v18  ;;  %v1036_v53 = vld [vmem:[#allocation6 + $0x1958] sm:$0xff]  ;;  %v1035_v55 = vld [vmem:[#allocation6 + $0x1950] sm:$0xff] }
 0x11c   : > { %1749 = vmatpush1.msra.mxu1 %v1107_v19  ;;  %1679 = vmatprep.subr.mxu0 %v844_v20  ;;  %v772_v56 = vld [vmem:[#allocation6 + $0x1118] sm:$0xff]  ;;  %v771_v58 = vld [vmem:[#allocation6 + $0x1110] sm:$0xff] }
 0x11d   : > { %1750 = vmatprep.subr.mxu1 %v1100_v21  ;;  %1680 = vmatpush1.msra.mxu0 %v843_v22  ;;  %v1028_v57 = vld [vmem:[#allocation6 + $0x1918] sm:$0xff]  ;;  %v1027_v59 = vld [vmem:[#allocation6 + $0x1910] sm:$0xff] }
 0x11e   : > { %1751 = vmatpush1.msra.mxu1 %v1099_v23  ;;  %1681 = vmatprep.subr.mxu0 %v836_v24  ;;  %v764_v60 = vld [vmem:[#allocation6 + $0x10d8] sm:$0xff]  ;;  %v763_v62 = vld [vmem:[#allocation6 + $0x10d0] sm:$0xff] }
 0x11f   : > { %1752 = vmatprep.subr.mxu1 %v1092_v25  ;;  %1682 = vmatpush1.msra.mxu0 %v835_v26  ;;  %v1020_v61 = vld [vmem:[#allocation6 + $0x18d8] sm:$0xff]  ;;  %v1019_v63 = vld [vmem:[#allocation6 + $0x18d0] sm:$0xff] }
 0x120   : > { %1753 = vmatpush1.msra.mxu1 %v1091_v27  ;;  %1683 = vmatprep.subr.mxu0 %v828_v28  ;;  %v756_v0 = vld [vmem:[#allocation6 + $0x1098] sm:$0xff]  ;;  %v755_v2 = vld [vmem:[#allocation6 + $0x1090] sm:$0xff] }
 0x121   : > { %1754 = vmatprep.subr.mxu1 %v1084_v29  ;;  %1684 = vmatpush1.msra.mxu0 %v827_v30  ;;  %v1012_v1 = vld [vmem:[#allocation6 + $0x1898] sm:$0xff]  ;;  %v1011_v3 = vld [vmem:[#allocation6 + $0x1890] sm:$0xff] }
 0x122   : > { %1755 = vmatpush1.msra.mxu1 %v1083_v31  ;;  %1685 = vmatprep.subr.mxu0 %v820_v32  ;;  %v748_v4 = vld [vmem:[#allocation6 + $0x1058] sm:$0xff]  ;;  %v747_v6 = vld [vmem:[#allocation6 + $0x1050] sm:$0xff] }
 0x123   : > { %1756 = vmatprep.subr.mxu1 %v1076_v33  ;;  %1686 = vmatpush1.msra.mxu0 %v819_v34  ;;  %v1004_v5 = vld [vmem:[#allocation6 + $0x1858] sm:$0xff]  ;;  %v1003_v7 = vld [vmem:[#allocation6 + $0x1850] sm:$0xff] }
 0x124   : > { %1757 = vmatpush1.msra.mxu1 %v1075_v35  ;;  %1687 = vmatprep.subr.mxu0 %v812_v36  ;;  %v740_v8 = vld [vmem:[#allocation6 + $0x1018] sm:$0xff]  ;;  %v739_v10 = vld [vmem:[#allocation6 + $0x1010] sm:$0xff] }
 0x125   : > { %1758 = vmatprep.subr.mxu1 %v1068_v37  ;;  %1688 = vmatpush1.msra.mxu0 %v811_v38  ;;  %v996_v9 = vld [vmem:[#allocation6 + $0x1818] sm:$0xff]  ;;  %v995_v11 = vld [vmem:[#allocation6 + $0x1810] sm:$0xff] }
 0x126   : > { %1759 = vmatpush1.msra.mxu1 %v1067_v39  ;;  %1689 = vmatprep.subr.mxu0 %v804_v40  ;;  %v988_v12 = vld [vmem:[#allocation6 + $0x17d8] sm:$0xff]  ;;  %v987_v14 = vld [vmem:[#allocation6 + $0x17d0] sm:$0xff] }
 0x127   : > { %1760 = vmatprep.subr.mxu1 %v1060_v41  ;;  %1690 = vmatpush1.msra.mxu0 %v803_v42  ;;  %v1244_v13 = vld [vmem:[#allocation6 + $0x1fd8] sm:$0xff]  ;;  %v1243_v15 = vld [vmem:[#allocation6 + $0x1fd0] sm:$0xff] }
 0x128   : > { %1761 = vmatpush1.msra.mxu1 %v1059_v43  ;;  %1691 = vmatprep.subr.mxu0 %v796_v44  ;;  %v980_v16 = vld [vmem:[#allocation6 + $0x1798] sm:$0xff]  ;;  %v979_v18 = vld [vmem:[#allocation6 + $0x1790] sm:$0xff] }
 0x129   : > { %1762 = vmatprep.subr.mxu1 %v1052_v45  ;;  %1692 = vmatpush1.msra.mxu0 %v795_v46  ;;  %v1236_v17 = vld [vmem:[#allocation6 + $0x1f98] sm:$0xff]  ;;  %v1235_v19 = vld [vmem:[#allocation6 + $0x1f90] sm:$0xff] }
 0x12a   : > { %1763 = vmatpush1.msra.mxu1 %v1051_v47  ;;  %1693 = vmatprep.subr.mxu0 %v788_v48  ;;  %v972_v20 = vld [vmem:[#allocation6 + $0x1758] sm:$0xff]  ;;  %v971_v22 = vld [vmem:[#allocation6 + $0x1750] sm:$0xff] }
 0x12b   : > { %1764 = vmatprep.subr.mxu1 %v1044_v49  ;;  %1694 = vmatpush1.msra.mxu0 %v787_v50  ;;  %v1228_v21 = vld [vmem:[#allocation6 + $0x1f58] sm:$0xff]  ;;  %v1227_v23 = vld [vmem:[#allocation6 + $0x1f50] sm:$0xff] }
 0x12c   : > { %1765 = vmatpush1.msra.mxu1 %v1043_v51  ;;  %1695 = vmatprep.subr.mxu0 %v780_v52  ;;  %v964_v24 = vld [vmem:[#allocation6 + $0x1718] sm:$0xff]  ;;  %v963_v26 = vld [vmem:[#allocation6 + $0x1710] sm:$0xff] }
 0x12d   : > { %1766 = vmatprep.subr.mxu1 %v1036_v53  ;;  %1696 = vmatpush1.msra.mxu0 %v779_v54  ;;  %v1220_v25 = vld [vmem:[#allocation6 + $0x1f18] sm:$0xff]  ;;  %v1219_v27 = vld [vmem:[#allocation6 + $0x1f10] sm:$0xff] }
 0x12e   : > { %1767 = vmatpush1.msra.mxu1 %v1035_v55  ;;  %1697 = vmatprep.subr.mxu0 %v772_v56  ;;  %v956_v28 = vld [vmem:[#allocation6 + $0x16d8] sm:$0xff]  ;;  %v955_v30 = vld [vmem:[#allocation6 + $0x16d0] sm:$0xff] }
 0x12f   : > { %1768 = vmatprep.subr.mxu1 %v1028_v57  ;;  %1698 = vmatpush1.msra.mxu0 %v771_v58  ;;  %v1212_v29 = vld [vmem:[#allocation6 + $0x1ed8] sm:$0xff]  ;;  %v1211_v31 = vld [vmem:[#allocation6 + $0x1ed0] sm:$0xff] }
 0x130   : > { %1769 = vmatpush1.msra.mxu1 %v1027_v59  ;;  %1699 = vmatprep.subr.mxu0 %v764_v60  ;;  %v948_v32 = vld [vmem:[#allocation6 + $0x1698] sm:$0xff]  ;;  %v947_v34 = vld [vmem:[#allocation6 + $0x1690] sm:$0xff] }
 0x131   : > { %1770 = vmatprep.subr.mxu1 %v1020_v61  ;;  %1700 = vmatpush1.msra.mxu0 %v763_v62  ;;  %v1204_v33 = vld [vmem:[#allocation6 + $0x1e98] sm:$0xff]  ;;  %v1203_v35 = vld [vmem:[#allocation6 + $0x1e90] sm:$0xff] }
 0x132   : > { %1771 = vmatpush1.msra.mxu1 %v1019_v63  ;;  %1701 = vmatprep.subr.mxu0 %v756_v0  ;;  %v940_v36 = vld [vmem:[#allocation6 + $0x1658] sm:$0xff]  ;;  %v939_v38 = vld [vmem:[#allocation6 + $0x1650] sm:$0xff] }
 0x133   : > { %1772 = vmatprep.subr.mxu1 %v1012_v1  ;;  %1702 = vmatpush1.msra.mxu0 %v755_v2  ;;  %v1196_v37 = vld [vmem:[#allocation6 + $0x1e58] sm:$0xff]  ;;  %v1195_v39 = vld [vmem:[#allocation6 + $0x1e50] sm:$0xff] }
 0x134   : > { %1773 = vmatpush1.msra.mxu1 %v1011_v3  ;;  %1703 = vmatprep.subr.mxu0 %v748_v4  ;;  %v932_v40 = vld [vmem:[#allocation6 + $0x1618] sm:$0xff]  ;;  %v931_v42 = vld [vmem:[#allocation6 + $0x1610] sm:$0xff] }
 0x135   : > { %1774 = vmatprep.subr.mxu1 %v1004_v5  ;;  %1704 = vmatpush1.msra.mxu0 %v747_v6  ;;  %v1188_v41 = vld [vmem:[#allocation6 + $0x1e18] sm:$0xff]  ;;  %v1187_v43 = vld [vmem:[#allocation6 + $0x1e10] sm:$0xff] }
 0x136   : > { %1775 = vmatpush1.msra.mxu1 %v1003_v7  ;;  %1705 = vmatprep.subr.mxu0 %v740_v8  ;;  %v924_v44 = vld [vmem:[#allocation6 + $0x15d8] sm:$0xff]  ;;  %v923_v46 = vld [vmem:[#allocation6 + $0x15d0] sm:$0xff] }
 0x137   : > { %1776 = vmatprep.subr.mxu1 %v996_v9  ;;  %1706 = vmatpush1.msra.mxu0 %v739_v10  ;;  %v1180_v45 = vld [vmem:[#allocation6 + $0x1dd8] sm:$0xff]  ;;  %v1179_v47 = vld [vmem:[#allocation6 + $0x1dd0] sm:$0xff] }
 0x138   : > { %1777 = vmatpush1.msra.mxu1 %v995_v11  ;;  %1707 = vmatprep.subr.mxu0 %v988_v12  ;;  %v916_v48 = vld [vmem:[#allocation6 + $0x1598] sm:$0xff]  ;;  %v915_v50 = vld [vmem:[#allocation6 + $0x1590] sm:$0xff]  ;;  %v350_v12 = vld [vmem:[#allocation6 + $0x3e8] sm:$0xff] }
 0x139   : > { %1778 = vmatprep.subr.mxu1 %v1244_v13  ;;  %1708 = vmatpush2.msra.mxu0 %v987_v14  ;;  %v1172_v49 = vld [vmem:[#allocation6 + $0x1d98] sm:$0xff]  ;;  %v1171_v51 = vld [vmem:[#allocation6 + $0x1d90] sm:$0xff]  ;;  %v2712_v13 = vld [vmem:[%s3023_s25 + $0x28] sm:$0xff] }
 0x13a   : > { %1779 = vmatpush2.msra.mxu1 %v1243_v15  ;;  %1709 = vmatprep.subr.mxu0 %v980_v16  ;;  %v908_v52 = vld [vmem:[#allocation6 + $0x1558] sm:$0xff]  ;;  %v907_v54 = vld [vmem:[#allocation6 + $0x1550] sm:$0xff]  ;;  %v606_v14 = vld [vmem:[#allocation6 + $0xbe8] sm:$0xff] }
 0x13b   : > { %1780 = vmatprep.subr.mxu1 %v1236_v17  ;;  %1710 = vmatpush2.msra.mxu0 %v979_v18  ;;  %v1164_v53 = vld [vmem:[#allocation6 + $0x1d58] sm:$0xff]  ;;  %v1163_v55 = vld [vmem:[#allocation6 + $0x1d50] sm:$0xff]  ;;  %v2713_v15 = vld [vmem:[%s3023_s25 + $0x20] sm:$0xff] }
 0x13c   : > { %1781 = vmatpush2.msra.mxu1 %v1235_v19  ;;  %1711 = vmatprep.subr.mxu0 %v972_v20  ;;  %v900_v56 = vld [vmem:[#allocation6 + $0x1518] sm:$0xff]  ;;  %v899_v58 = vld [vmem:[#allocation6 + $0x1510] sm:$0xff]  ;;  %v349_v16 = vld [vmem:[#allocation6 + $0x3e0] sm:$0xff] }
 0x13d   : > { %1782 = vmatprep.subr.mxu1 %v1228_v21  ;;  %1712 = vmatpush2.msra.mxu0 %v971_v22  ;;  %v1156_v57 = vld [vmem:[#allocation6 + $0x1d18] sm:$0xff]  ;;  %v1155_v59 = vld [vmem:[#allocation6 + $0x1d10] sm:$0xff]  ;;  %v605_v17 = vld [vmem:[#allocation6 + $0xbe0] sm:$0xff] }
 0x13e   : > { %1783 = vmatpush2.msra.mxu1 %v1227_v23  ;;  %1713 = vmatprep.subr.mxu0 %v964_v24  ;;  %v892_v60 = vld [vmem:[#allocation6 + $0x14d8] sm:$0xff]  ;;  %v891_v62 = vld [vmem:[#allocation6 + $0x14d0] sm:$0xff]  ;;  %v342_v19 = vld [vmem:[#allocation6 + $0x3a8] sm:$0xff] }
 0x13f   : > { %1784 = vmatprep.subr.mxu1 %v1220_v25  ;;  %1714 = vmatpush2.msra.mxu0 %v963_v26  ;;  %v1148_v61 = vld [vmem:[#allocation6 + $0x1cd8] sm:$0xff]  ;;  %v1147_v63 = vld [vmem:[#allocation6 + $0x1cd0] sm:$0xff]  ;;  %v598_v20 = vld [vmem:[#allocation6 + $0xba8] sm:$0xff] }
 0x140   : > { %1785 = vmatpush2.msra.mxu1 %v1219_v27  ;;  %1715 = vmatprep.subr.mxu0 %v956_v28  ;;  %v884_v0 = vld [vmem:[#allocation6 + $0x1498] sm:$0xff]  ;;  %v883_v2 = vld [vmem:[#allocation6 + $0x1490] sm:$0xff]  ;;  %v341_v22 = vld [vmem:[#allocation6 + $0x3a0] sm:$0xff] }
 0x141   : > { %1786 = vmatprep.subr.mxu1 %v1212_v29  ;;  %1716 = vmatpush2.msra.mxu0 %v955_v30  ;;  %v1140_v1 = vld [vmem:[#allocation6 + $0x1c98] sm:$0xff]  ;;  %v1139_v3 = vld [vmem:[#allocation6 + $0x1c90] sm:$0xff]  ;;  %v597_v23 = vld [vmem:[#allocation6 + $0xba0] sm:$0xff] }
 0x142   : > { %1787 = vmatpush2.msra.mxu1 %v1211_v31  ;;  %1717 = vmatprep.subr.mxu0 %v948_v32  ;;  %v876_v4 = vld [vmem:[#allocation6 + $0x1458] sm:$0xff]  ;;  %v875_v6 = vld [vmem:[#allocation6 + $0x1450] sm:$0xff]  ;;  %v334_v24 = vld [vmem:[#allocation6 + $0x368] sm:$0xff] }
 0x143   : > { %1788 = vmatprep.subr.mxu1 %v1204_v33  ;;  %1718 = vmatpush2.msra.mxu0 %v947_v34  ;;  %v1132_v5 = vld [vmem:[#allocation6 + $0x1c58] sm:$0xff]  ;;  %v1131_v7 = vld [vmem:[#allocation6 + $0x1c50] sm:$0xff]  ;;  %v590_v25 = vld [vmem:[#allocation6 + $0xb68] sm:$0xff] }
 0x144   : > { %1789 = vmatpush2.msra.mxu1 %v1203_v35  ;;  %1719 = vmatprep.subr.mxu0 %v940_v36  ;;  %v868_v8 = vld [vmem:[#allocation6 + $0x1418] sm:$0xff]  ;;  %v867_v10 = vld [vmem:[#allocation6 + $0x1410] sm:$0xff]  ;;  %v333_v26 = vld [vmem:[#allocation6 + $0x360] sm:$0xff] }
 0x145   : > { %1790 = vmatprep.subr.mxu1 %v1196_v37  ;;  %1720 = vmatpush2.msra.mxu0 %v939_v38  ;;  %v1124_v9 = vld [vmem:[#allocation6 + $0x1c18] sm:$0xff]  ;;  %v1123_v11 = vld [vmem:[#allocation6 + $0x1c10] sm:$0xff]  ;;  %v589_v27 = vld [vmem:[#allocation6 + $0xb60] sm:$0xff] }
 0x146   : > { %1791 = vmatpush2.msra.mxu1 %v1195_v39  ;;  %1721 = vmatprep.subr.mxu0 %v932_v40  ;;  %v2714_v18 = vld [vmem:[%s3023_s25 + $0x38] sm:$0xff]  ;;  %v2715_v21 = vld [vmem:[%s3023_s25 + $0x30] sm:$0xff]  ;;  %v326_v28 = vld [vmem:[#allocation6 + $0x328] sm:$0xff] }
 0x147   : > { %1792 = vmatprep.subr.mxu1 %v1188_v41  ;;  %1722 = vmatpush2.msra.mxu0 %v931_v42  ;;  %v582_v29 = vld [vmem:[#allocation6 + $0xb28] sm:$0xff]  ;;  %v325_v30 = vld [vmem:[#allocation6 + $0x320] sm:$0xff] }
 0x148   : > { %1793 = vmatpush2.msra.mxu1 %v1187_v43  ;;  %1723 = vmatprep.subr.mxu0 %v924_v44  ;;  %v581_v31 = vld [vmem:[#allocation6 + $0xb20] sm:$0xff]  ;;  %v318_v32 = vld [vmem:[#allocation6 + $0x2e8] sm:$0xff] }
 0x149   : > { %1794 = vmatprep.subr.mxu1 %v1180_v45  ;;  %1724 = vmatpush2.msra.mxu0 %v923_v46  ;;  %v574_v33 = vld [vmem:[#allocation6 + $0xae8] sm:$0xff]  ;;  %v317_v34 = vld [vmem:[#allocation6 + $0x2e0] sm:$0xff] }
 0x14a   : > { %1795 = vmatpush2.msra.mxu1 %v1179_v47  ;;  %1725 = vmatprep.subr.mxu0 %v916_v48  ;;  %v573_v35 = vld [vmem:[#allocation6 + $0xae0] sm:$0xff]  ;;  %v310_v36 = vld [vmem:[#allocation6 + $0x2a8] sm:$0xff] }
 0x14b   : > { %1796 = vmatprep.subr.mxu1 %v1172_v49  ;;  %1726 = vmatpush2.msra.mxu0 %v915_v50  ;;  %v566_v37 = vld [vmem:[#allocation6 + $0xaa8] sm:$0xff]  ;;  %v309_v38 = vld [vmem:[#allocation6 + $0x2a0] sm:$0xff] }
 0x14c   : > { %1797 = vmatpush2.msra.mxu1 %v1171_v51  ;;  %1727 = vmatprep.subr.mxu0 %v908_v52  ;;  %v565_v39 = vld [vmem:[#allocation6 + $0xaa0] sm:$0xff]  ;;  %v302_v40 = vld [vmem:[#allocation6 + $0x268] sm:$0xff] }
 0x14d   : > { %1798 = vmatprep.subr.mxu1 %v1164_v53  ;;  %1728 = vmatpush2.msra.mxu0 %v907_v54  ;;  %v558_v41 = vld [vmem:[#allocation6 + $0xa68] sm:$0xff]  ;;  %v301_v42 = vld [vmem:[#allocation6 + $0x260] sm:$0xff] }
 0x14e   : > { %1799 = vmatpush2.msra.mxu1 %v1163_v55  ;;  %1729 = vmatprep.subr.mxu0 %v900_v56  ;;  %v557_v43 = vld [vmem:[#allocation6 + $0xa60] sm:$0xff]  ;;  %v294_v44 = vld [vmem:[#allocation6 + $0x228] sm:$0xff] }
 0x14f   : > { %1800 = vmatprep.subr.mxu1 %v1156_v57  ;;  %1730 = vmatpush2.msra.mxu0 %v899_v58  ;;  %v550_v45 = vld [vmem:[#allocation6 + $0xa28] sm:$0xff]  ;;  %v293_v46 = vld [vmem:[#allocation6 + $0x220] sm:$0xff] }
 0x150   : > { %1801 = vmatpush2.msra.mxu1 %v1155_v59  ;;  %1731 = vmatprep.subr.mxu0 %v892_v60  ;;  %v549_v47 = vld [vmem:[#allocation6 + $0xa20] sm:$0xff]  ;;  %v286_v48 = vld [vmem:[#allocation6 + $0x1e8] sm:$0xff] }
 0x151   : > { %1802 = vmatprep.subr.mxu1 %v1148_v61  ;;  %1732 = vmatpush2.msra.mxu0 %v891_v62  ;;  %v542_v49 = vld [vmem:[#allocation6 + $0x9e8] sm:$0xff]  ;;  %v285_v50 = vld [vmem:[#allocation6 + $0x1e0] sm:$0xff] }
 0x152   : > { %1803 = vmatpush2.msra.mxu1 %v1147_v63  ;;  %1733 = vmatprep.subr.mxu0 %v884_v0  ;;  %v541_v51 = vld [vmem:[#allocation6 + $0x9e0] sm:$0xff]  ;;  %v278_v52 = vld [vmem:[#allocation6 + $0x1a8] sm:$0xff] }
 0x153   : > { %1804 = vmatprep.subr.mxu1 %v1140_v1  ;;  %1734 = vmatpush2.msra.mxu0 %v883_v2  ;;  %v534_v53 = vld [vmem:[#allocation6 + $0x9a8] sm:$0xff]  ;;  %v277_v54 = vld [vmem:[#allocation6 + $0x1a0] sm:$0xff] }
 0x154   : > { %1805 = vmatpush2.msra.mxu1 %v1139_v3  ;;  %1735 = vmatprep.subr.mxu0 %v876_v4  ;;  %v533_v55 = vld [vmem:[#allocation6 + $0x9a0] sm:$0xff]  ;;  %v270_v56 = vld [vmem:[#allocation6 + $0x168] sm:$0xff] }
 0x155   : > { %1806 = vmatprep.subr.mxu1 %v1132_v5  ;;  %1736 = vmatpush2.msra.mxu0 %v875_v6  ;;  %v526_v57 = vld [vmem:[#allocation6 + $0x968] sm:$0xff]  ;;  %v269_v58 = vld [vmem:[#allocation6 + $0x160] sm:$0xff] }
 0x156   : > { %1807 = vmatpush2.msra.mxu1 %v1131_v7  ;;  %1737 = vmatprep.subr.mxu0 %v868_v8  ;;  %v525_v59 = vld [vmem:[#allocation6 + $0x960] sm:$0xff]  ;;  %v262_v60 = vld [vmem:[#allocation6 + $0x128] sm:$0xff] }
 0x157   : > { %1808 = vmatprep.subr.mxu1 %v1124_v9  ;;  %1738 = vmatpush2.msra.mxu0 %v867_v10  ;;  %v518_v61 = vld [vmem:[#allocation6 + $0x928] sm:$0xff]  ;;  %v261_v62 = vld [vmem:[#allocation6 + $0x120] sm:$0xff] }
 0x158   : > { %1739 = vmatprep.mubr.f32.mxu0 %v2712_v13  ;;  %1809 = vmatpush2.msra.mxu1 %v1123_v11  ;;  %v517_v63 = vld [vmem:[#allocation6 + $0x920] sm:$0xff]  ;;  %v254_v0 = vld [vmem:[#allocation6 + $0xe8] sm:$0xff] }
 0x159   : > { %1740 = vmatmul.mubr.f32.vlgmr.msra.gmra.mxu0 %v2713_v15  ;;  %1810 = vmatprep.mubr.f32.mxu1 %v2714_v18  ;;  %v510_v1 = vld [vmem:[#allocation6 + $0x8e8] sm:$0xff]  ;;  %v253_v2 = vld [vmem:[#allocation6 + $0xe0] sm:$0xff] }
 0x15a   : > { %1817 = vmatprep.subr.mxu0 %v350_v12  ;;  %1888 = vmatprep.subr.mxu1 %v606_v14  ;;  %v509_v3 = vld [vmem:[#allocation6 + $0x8e0] sm:$0xff]  ;;  %v246_v4 = vld [vmem:[#allocation6 + $0xa8] sm:$0xff] }
 0x15b   : > { %1811 = vmatmul.mubr.f32.vlgmr.msra.gmra.mxu1 %v2715_v21  ;;  %1818 = vmatpush1.msra.mxu0 %v349_v16  ;;  %v502_v5 = vld [vmem:[#allocation6 + $0x8a8] sm:$0xff]  ;;  %v245_v6 = vld [vmem:[#allocation6 + $0xa0] sm:$0xff] }
 0x15c   : > { %1889 = vmatpush1.msra.mxu1 %v605_v17  ;;  %1819 = vmatprep.subr.mxu0 %v342_v19  ;;  %v501_v7 = vld [vmem:[#allocation6 + $0x8a0] sm:$0xff]  ;;  %v238_v8 = vld [vmem:[#allocation6 + $0x68] sm:$0xff] }
 0x15d   : > { %1890 = vmatprep.subr.mxu1 %v598_v20  ;;  %1820 = vmatpush1.msra.mxu0 %v341_v22  ;;  %v494_v9 = vld [vmem:[#allocation6 + $0x868] sm:$0xff]  ;;  %v237_v10 = vld [vmem:[#allocation6 + $0x60] sm:$0xff] }
 0x15e   : > { %1891 = vmatpush1.msra.mxu1 %v597_v23  ;;  %1821 = vmatprep.subr.mxu0 %v334_v24  ;;  %v493_v11 = vld [vmem:[#allocation6 + $0x860] sm:$0xff]  ;;  %v230_v12 = vld [vmem:[#allocation6 + $0x28] sm:$0xff] }
 0x15f   : > { %1892 = vmatprep.subr.mxu1 %v590_v25  ;;  %1822 = vmatpush1.msra.mxu0 %v333_v26  ;;  %v486_v13 = vld [vmem:[#allocation6 + $0x828] sm:$0xff]  ;;  %v229_v14 = vld [vmem:[#allocation6 + $0x20] sm:$0xff] }
 0x160   : > { %1893 = vmatpush1.msra.mxu1 %v589_v27  ;;  %1823 = vmatprep.subr.mxu0 %v326_v28  ;;  %v485_v15 = vld [vmem:[#allocation6 + $0x820] sm:$0xff]  ;;  %v478_v16 = vld [vmem:[#allocation6 + $0x7e8] sm:$0xff] }
 0x161   : > { %1894 = vmatprep.subr.mxu1 %v582_v29  ;;  %1824 = vmatpush1.msra.mxu0 %v325_v30  ;;  %v734_v17 = vld [vmem:[#allocation6 + $0xfe8] sm:$0xff]  ;;  %v477_v18 = vld [vmem:[#allocation6 + $0x7e0] sm:$0xff] }
 0x162   : > { %1895 = vmatpush1.msra.mxu1 %v581_v31  ;;  %1825 = vmatprep.subr.mxu0 %v318_v32  ;;  %v733_v19 = vld [vmem:[#allocation6 + $0xfe0] sm:$0xff]  ;;  %v470_v20 = vld [vmem:[#allocation6 + $0x7a8] sm:$0xff] }
 0x163   : > { %1896 = vmatprep.subr.mxu1 %v574_v33  ;;  %1826 = vmatpush1.msra.mxu0 %v317_v34  ;;  %v726_v21 = vld [vmem:[#allocation6 + $0xfa8] sm:$0xff]  ;;  %v469_v22 = vld [vmem:[#allocation6 + $0x7a0] sm:$0xff] }
 0x164   : > { %1897 = vmatpush1.msra.mxu1 %v573_v35  ;;  %1827 = vmatprep.subr.mxu0 %v310_v36  ;;  %v725_v23 = vld [vmem:[#allocation6 + $0xfa0] sm:$0xff]  ;;  %v462_v24 = vld [vmem:[#allocation6 + $0x768] sm:$0xff] }
 0x165   : > { %1898 = vmatprep.subr.mxu1 %v566_v37  ;;  %1828 = vmatpush1.msra.mxu0 %v309_v38  ;;  %v718_v25 = vld [vmem:[#allocation6 + $0xf68] sm:$0xff]  ;;  %v461_v26 = vld [vmem:[#allocation6 + $0x760] sm:$0xff] }
 0x166   : > { %1899 = vmatpush1.msra.mxu1 %v565_v39  ;;  %1829 = vmatprep.subr.mxu0 %v302_v40  ;;  %v717_v27 = vld [vmem:[#allocation6 + $0xf60] sm:$0xff]  ;;  %v454_v28 = vld [vmem:[#allocation6 + $0x728] sm:$0xff] }
 0x167   : > { %1900 = vmatprep.subr.mxu1 %v558_v41  ;;  %1830 = vmatpush1.msra.mxu0 %v301_v42  ;;  %v710_v29 = vld [vmem:[#allocation6 + $0xf28] sm:$0xff]  ;;  %v453_v30 = vld [vmem:[#allocation6 + $0x720] sm:$0xff] }
 0x168   : > { %1901 = vmatpush1.msra.mxu1 %v557_v43  ;;  %1831 = vmatprep.subr.mxu0 %v294_v44  ;;  %v709_v31 = vld [vmem:[#allocation6 + $0xf20] sm:$0xff]  ;;  %v446_v32 = vld [vmem:[#allocation6 + $0x6e8] sm:$0xff] }
 0x169   : > { %1902 = vmatprep.subr.mxu1 %v550_v45  ;;  %1832 = vmatpush1.msra.mxu0 %v293_v46  ;;  %v702_v33 = vld [vmem:[#allocation6 + $0xee8] sm:$0xff]  ;;  %v445_v34 = vld [vmem:[#allocation6 + $0x6e0] sm:$0xff] }
 0x16a   : > { %1903 = vmatpush1.msra.mxu1 %v549_v47  ;;  %1833 = vmatprep.subr.mxu0 %v286_v48  ;;  %v701_v35 = vld [vmem:[#allocation6 + $0xee0] sm:$0xff]  ;;  %v438_v36 = vld [vmem:[#allocation6 + $0x6a8] sm:$0xff] }
 0x16b   : > { %1904 = vmatprep.subr.mxu1 %v542_v49  ;;  %1834 = vmatpush1.msra.mxu0 %v285_v50  ;;  %v694_v37 = vld [vmem:[#allocation6 + $0xea8] sm:$0xff]  ;;  %v437_v38 = vld [vmem:[#allocation6 + $0x6a0] sm:$0xff] }
 0x16c   : > { %1905 = vmatpush1.msra.mxu1 %v541_v51  ;;  %1835 = vmatprep.subr.mxu0 %v278_v52  ;;  %v693_v39 = vld [vmem:[#allocation6 + $0xea0] sm:$0xff]  ;;  %v430_v40 = vld [vmem:[#allocation6 + $0x668] sm:$0xff] }
 0x16d   : > { %1906 = vmatprep.subr.mxu1 %v534_v53  ;;  %1836 = vmatpush1.msra.mxu0 %v277_v54  ;;  %v686_v41 = vld [vmem:[#allocation6 + $0xe68] sm:$0xff]  ;;  %v429_v42 = vld [vmem:[#allocation6 + $0x660] sm:$0xff] }
 0x16e   : > { %1907 = vmatpush1.msra.mxu1 %v533_v55  ;;  %1837 = vmatprep.subr.mxu0 %v270_v56  ;;  %v685_v43 = vld [vmem:[#allocation6 + $0xe60] sm:$0xff]  ;;  %v422_v44 = vld [vmem:[#allocation6 + $0x628] sm:$0xff] }
 0x16f   : > { %1908 = vmatprep.subr.mxu1 %v526_v57  ;;  %1838 = vmatpush1.msra.mxu0 %v269_v58  ;;  %v678_v45 = vld [vmem:[#allocation6 + $0xe28] sm:$0xff]  ;;  %v421_v46 = vld [vmem:[#allocation6 + $0x620] sm:$0xff] }
 0x170   : > { %1909 = vmatpush1.msra.mxu1 %v525_v59  ;;  %1839 = vmatprep.subr.mxu0 %v262_v60  ;;  %v677_v47 = vld [vmem:[#allocation6 + $0xe20] sm:$0xff]  ;;  %v414_v48 = vld [vmem:[#allocation6 + $0x5e8] sm:$0xff] }
 0x171   : > { %1910 = vmatprep.subr.mxu1 %v518_v61  ;;  %1840 = vmatpush1.msra.mxu0 %v261_v62  ;;  %v670_v49 = vld [vmem:[#allocation6 + $0xde8] sm:$0xff]  ;;  %v413_v50 = vld [vmem:[#allocation6 + $0x5e0] sm:$0xff]  ;;  %v1315_v62 = vpop.f32.mrf.mxu0 }
 0x172   : > { %1911 = vmatpush1.msra.mxu1 %v517_v63  ;;  %1841 = vmatprep.subr.mxu0 %v254_v0  ;;  %v669_v51 = vld [vmem:[#allocation6 + $0xde0] sm:$0xff]  ;;  %v406_v52 = vld [vmem:[#allocation6 + $0x5a8] sm:$0xff]  ;;  %v1386_v63 = vpop.f32.mrf.mxu1 }
 0x173   : > { %1912 = vmatprep.subr.mxu1 %v510_v1  ;;  %1842 = vmatpush1.msra.mxu0 %v253_v2  ;;  %v662_v53 = vld [vmem:[#allocation6 + $0xda8] sm:$0xff]  ;;  %v405_v54 = vld [vmem:[#allocation6 + $0x5a0] sm:$0xff] }
 0x174   : > { %1913 = vmatpush1.msra.mxu1 %v509_v3  ;;  %1843 = vmatprep.subr.mxu0 %v246_v4  ;;  %v661_v55 = vld [vmem:[#allocation6 + $0xda0] sm:$0xff]  ;;  %v398_v56 = vld [vmem:[#allocation6 + $0x568] sm:$0xff] }
 0x175   : > { %1914 = vmatprep.subr.mxu1 %v502_v5  ;;  %1844 = vmatpush1.msra.mxu0 %v245_v6  ;;  %v654_v57 = vld [vmem:[#allocation6 + $0xd68] sm:$0xff]  ;;  %v397_v58 = vld [vmem:[#allocation6 + $0x560] sm:$0xff] }
 0x176   : > { %1915 = vmatpush1.msra.mxu1 %v501_v7  ;;  %1845 = vmatprep.subr.mxu0 %v238_v8  ;;  %v653_v59 = vld [vmem:[#allocation6 + $0xd60] sm:$0xff]  ;;  %v390_v60 = vld [vmem:[#allocation6 + $0x528] sm:$0xff]  ;;  %v1317_v8 = vpop.f32.mrf.mxu0 }
 0x177   : > { %1916 = vmatprep.subr.mxu1 %v494_v9  ;;  %1846 = vmatpush1.msra.mxu0 %v237_v10  ;;  %v646_v61 = vld [vmem:[#allocation6 + $0xd28] sm:$0xff]  ;;  %v389_v0 = vld [vmem:[#allocation6 + $0x520] sm:$0xff]  ;;  %v1388_v9 = vpop.f32.mrf.mxu1 }
 0x178   : > { %1917 = vmatpush1.msra.mxu1 %v493_v11  ;;  %1847 = vmatprep.subr.mxu0 %v230_v12  ;;  %v645_v1 = vld [vmem:[#allocation6 + $0xd20] sm:$0xff]  ;;  %v382_v2 = vld [vmem:[#allocation6 + $0x4e8] sm:$0xff]  ;;  %v1387_v12 = vadd.f32 %v1386_v63, %v1315_v62 }
 0x179   : > { %1918 = vmatprep.subr.mxu1 %v486_v13  ;;  %1848 = vmatpush1.msra.mxu0 %v229_v14  ;;  %v638_v3 = vld [vmem:[#allocation6 + $0xce8] sm:$0xff]  ;;  %v381_v4 = vld [vmem:[#allocation6 + $0x4e0] sm:$0xff] }
 0x17a   : > { %1919 = vmatpush1.msra.mxu1 %v485_v15  ;;  %1849 = vmatprep.subr.mxu0 %v478_v16  ;;  %v637_v5 = vld [vmem:[#allocation6 + $0xce0] sm:$0xff]  ;;  %v374_v6 = vld [vmem:[#allocation6 + $0x4a8] sm:$0xff] }
 0x17b   : > { %1920 = vmatprep.subr.mxu1 %v734_v17  ;;  %1850 = vmatpush2.msra.mxu0 %v477_v18  ;;  %v630_v7 = vld [vmem:[#allocation6 + $0xca8] sm:$0xff]  ;;  %v373_v10 = vld [vmem:[#allocation6 + $0x4a0] sm:$0xff]  ;;  %v1389_v18 = vadd.f32 %v1388_v9, %v1317_v8 }
 0x17c   : > { %1921 = vmatpush2.msra.mxu1 %v733_v19  ;;  %1851 = vmatprep.subr.mxu0 %v470_v20  ;;  %v629_v11 = vld [vmem:[#allocation6 + $0xca0] sm:$0xff]  ;;  %v366_v13 = vld [vmem:[#allocation6 + $0x468] sm:$0xff] }
 0x17d   : > { %1922 = vmatprep.subr.mxu1 %v726_v21  ;;  %1852 = vmatpush2.msra.mxu0 %v469_v22  ;;  %v622_v14 = vld [vmem:[#allocation6 + $0xc68] sm:$0xff]  ;;  %v365_v15 = vld [vmem:[#allocation6 + $0x460] sm:$0xff] }
 0x17e   : > { %1923 = vmatpush2.msra.mxu1 %v725_v23  ;;  %1853 = vmatprep.subr.mxu0 %v462_v24  ;;  %v621_v16 = vld [vmem:[#allocation6 + $0xc60] sm:$0xff]  ;;  %v358_v19 = vld [vmem:[#allocation6 + $0x428] sm:$0xff]  ;;  %v3050_v24 = vstv %s3045_s18 }
 0x17f   : > { %1924 = vmatprep.subr.mxu1 %v718_v25  ;;  %1854 = vmatpush2.msra.mxu0 %v461_v26  ;;  %v614_v20 = vld [vmem:[#allocation6 + $0xc28] sm:$0xff]  ;;  %v357_v22 = vld [vmem:[#allocation6 + $0x420] sm:$0xff] }
 0x180   : > { %1925 = vmatpush2.msra.mxu1 %v717_v27  ;;  %1855 = vmatprep.subr.mxu0 %v454_v28  ;;  %v613_v26 = vld [vmem:[#allocation6 + $0xc20] sm:$0xff]  ;;  %v806_v8 = vld [vmem:[#allocation6 + $0x1228] sm:$0xff] }
 0x181   : > { %1926 = vmatprep.subr.mxu1 %v710_v29  ;;  %1856 = vmatpush2.msra.mxu0 %v453_v30  ;;  %v3053_v30 = vld [vmem:[%s3023_s25 + $0x8] sm:$0xff]  ;;  %v829_v62 = vld [vmem:[#allocation6 + $0x12e0] sm:$0xff] }
 0x182   : > { %1927 = vmatpush2.msra.mxu1 %v709_v31  ;;  %1857 = vmatprep.subr.mxu0 %v446_v32  ;;  %v862_v31 = vld [vmem:[#allocation6 + $0x13e8] sm:$0xff]  ;;  %v1085_v63 = vld [vmem:[#allocation6 + $0x1ae0] sm:$0xff] }
 0x183   : > { %1928 = vmatprep.subr.mxu1 %v702_v33  ;;  %1858 = vmatpush2.msra.mxu0 %v445_v34  ;;  %v1118_v32 = vld [vmem:[#allocation6 + $0x1be8] sm:$0xff] }
 0x184   : > { %1929 = vmatpush2.msra.mxu1 %v701_v35  ;;  %1859 = vmatprep.subr.mxu0 %v438_v36  ;;  %v2717_v35 = vld [vmem:[%s3023_s25 + $0x18] sm:$0xff]  ;;  %v3059_v36 = vstv %s3047_s26  ;;  %v1062_v9 = vld [vmem:[#allocation6 + $0x1a28] sm:$0xff] }
 0x185   : > { %1930 = vmatprep.subr.mxu1 %v694_v37  ;;  %1860 = vmatpush2.msra.mxu0 %v437_v38  ;;  %v861_v37 = vld [vmem:[#allocation6 + $0x13e0] sm:$0xff] }
 0x186   : > { %1931 = vmatpush2.msra.mxu1 %v693_v39  ;;  %1861 = vmatprep.subr.mxu0 %v430_v40  ;;  %v1117_v38 = vld [vmem:[#allocation6 + $0x1be0] sm:$0xff]  ;;  %v2719_v40 = vld [vmem:[%s3023_s25 + $0x10] sm:$0xff] }
 0x187   : > { %1932 = vmatprep.subr.mxu1 %v686_v41  ;;  %1862 = vmatpush2.msra.mxu0 %v429_v42  ;;  %v3062_v39 = vld [vmem:[%s3023_s25] sm:$0xff]  ;;  %v854_v42 = vld [vmem:[#allocation6 + $0x13a8] sm:$0xff] }
 0x188   : > { %1933 = vmatpush2.msra.mxu1 %v685_v43  ;;  %1863 = vmatprep.subr.mxu0 %v422_v44  ;;  %v1110_v43 = vld [vmem:[#allocation6 + $0x1ba8] sm:$0xff] }
 0x189   : > { %1934 = vmatprep.subr.mxu1 %v678_v45  ;;  %1864 = vmatpush2.msra.mxu0 %v421_v46  ;;  %v853_v45 = vld [vmem:[#allocation6 + $0x13a0] sm:$0xff] }
 0x18a   : > { %1935 = vmatpush2.msra.mxu1 %v677_v47  ;;  %1865 = vmatprep.subr.mxu0 %v414_v48  ;;  %v1109_v46 = vld [vmem:[#allocation6 + $0x1ba0] sm:$0xff] }
 0x18b   : > { %1936 = vmatprep.subr.mxu1 %v670_v49  ;;  %1866 = vmatpush2.msra.mxu0 %v413_v50  ;;  %v846_v49 = vld [vmem:[#allocation6 + $0x1368] sm:$0xff] }
 0x18c   : > { %1937 = vmatpush2.msra.mxu1 %v669_v51  ;;  %1867 = vmatprep.subr.mxu0 %v406_v52  ;;  %v1102_v50 = vld [vmem:[#allocation6 + $0x1b68] sm:$0xff]  ;;  %v845_v51 = vld [vmem:[#allocation6 + $0x1360] sm:$0xff] }
 0x18d   : > { %1938 = vmatprep.subr.mxu1 %v662_v53  ;;  %1868 = vmatpush2.msra.mxu0 %v405_v54  ;;  %v1101_v52 = vld [vmem:[#allocation6 + $0x1b60] sm:$0xff] }
 0x18e   : > { %1939 = vmatpush2.msra.mxu1 %v661_v55  ;;  %1869 = vmatprep.subr.mxu0 %v398_v56  ;;  %v838_v55 = vld [vmem:[#allocation6 + $0x1328] sm:$0xff] }
 0x18f   : > { %1940 = vmatprep.subr.mxu1 %v654_v57  ;;  %1870 = vmatpush2.msra.mxu0 %v397_v58  ;;  %v1094_v56 = vld [vmem:[#allocation6 + $0x1b28] sm:$0xff]  ;;  %v837_v57 = vld [vmem:[#allocation6 + $0x1320] sm:$0xff] }
 0x190   : > { %1941 = vmatpush2.msra.mxu1 %v653_v59  ;;  %1871 = vmatprep.subr.mxu0 %v390_v60  ;;  %v1093_v58 = vld [vmem:[#allocation6 + $0x1b20] sm:$0xff]  ;;  %v830_v60 = vld [vmem:[#allocation6 + $0x12e8] sm:$0xff] }
 0x191   : > { %1942 = vmatprep.subr.mxu1 %v646_v61  ;;  %1872 = vmatpush2.msra.mxu0 %v389_v0  ;;  %v1086_v61 = vld [vmem:[#allocation6 + $0x1ae8] sm:$0xff] }
 0x192   : > { %1943 = vmatpush2.msra.mxu1 %v645_v1  ;;  %1873 = vmatprep.subr.mxu0 %v382_v2  ;;  %v822_v0 = vld [vmem:[#allocation6 + $0x12a8] sm:$0xff]  ;;  %v821_v2 = vld [vmem:[#allocation6 + $0x12a0] sm:$0xff] }
 0x193   : > { %1944 = vmatprep.subr.mxu1 %v638_v3  ;;  %1874 = vmatpush2.msra.mxu0 %v381_v4  ;;  %v1078_v1 = vld [vmem:[#allocation6 + $0x1aa8] sm:$0xff]  ;;  %v1077_v3 = vld [vmem:[#allocation6 + $0x1aa0] sm:$0xff] }
 0x194   : > { %1945 = vmatpush2.msra.mxu1 %v637_v5  ;;  %1875 = vmatprep.subr.mxu0 %v374_v6  ;;  %v814_v4 = vld [vmem:[#allocation6 + $0x1268] sm:$0xff]  ;;  %v813_v6 = vld [vmem:[#allocation6 + $0x1260] sm:$0xff] }
 0x195   : > { %1946 = vmatprep.subr.mxu1 %v630_v7  ;;  %v1457_v17 = vpop.f32.mrf.mxu0  ;;  %1876 = vmatpush2.msra.mxu0 %v373_v10  ;;  %v1070_v5 = vld [vmem:[#allocation6 + $0x1a68] sm:$0xff]  ;;  %v1069_v7 = vld [vmem:[#allocation6 + $0x1a60] sm:$0xff] }
 0x196   : > { %1947 = vmatpush2.msra.mxu1 %v629_v11  ;;  %v1458_v21 = vadd.f32 %v1457_v17, %v1387_v12  ;;  %1877 = vmatprep.subr.mxu0 %v366_v13  ;;  %v805_v10 = vld [vmem:[#allocation6 + $0x1220] sm:$0xff]  ;;  %v798_v12 = vld [vmem:[#allocation6 + $0x11e8] sm:$0xff] }
 0x197   : > { %1948 = vmatprep.subr.mxu1 %v622_v14  ;;  %v1528_v23 = vpop.f32.mrf.mxu1  ;;  %v1459_v25 = vpop.f32.mrf.mxu0  ;;  %1878 = vmatpush2.msra.mxu0 %v365_v15  ;;  %v1061_v11 = vld [vmem:[#allocation6 + $0x1a20] sm:$0xff]  ;;  %v1054_v13 = vld [vmem:[#allocation6 + $0x19e8] sm:$0xff] }
 0x198   : > { %1949 = vmatpush2.msra.mxu1 %v621_v16  ;;  %v1529_v27 = vadd.f32 %v1528_v23, %v1458_v21  ;;  %v1460_v28 = vadd.f32 %v1459_v25, %v1389_v18  ;;  %1879 = vmatprep.subr.mxu0 %v358_v19  ;;  %v797_v14 = vld [vmem:[#allocation6 + $0x11e0] sm:$0xff]  ;;  %v790_v16 = vld [vmem:[#allocation6 + $0x11a8] sm:$0xff] }
 0x199   : > { %1950 = vmatprep.subr.mxu1 %v614_v20  ;;  %v1530_v29 = vpop.f32.mrf.mxu1  ;;  %1880 = vmatpush2.msra.mxu0 %v357_v22  ;;  %v1053_v15 = vld [vmem:[#allocation6 + $0x19e0] sm:$0xff]  ;;  %v1046_v17 = vld [vmem:[#allocation6 + $0x19a8] sm:$0xff] }
 0x19a   : > { %1881 = vmatprep.mubr.f32.mxu0 %v3053_v30  ;;  %v2386_v33 = vsub.f32 %v1529_v27, %v3050_v24  ;;  %v1531_v34 = vadd.f32 %v1530_v29, %v1460_v28  ;;  %1951 = vmatpush2.msra.mxu1 %v613_v26  ;;  %v789_v18 = vld [vmem:[#allocation6 + $0x11a0] sm:$0xff]  ;;  %v782_v20 = vld [vmem:[#allocation6 + $0x1168] sm:$0xff] }
 0x19b   : > { %1952 = vmatprep.mubr.f32.mxu1 %v2717_v35  ;;  %1882 = vmatmul.mubr.f32.vlgmr.msra.gmra.mxu0 %v3062_v39  ;;  %v1045_v19 = vld [vmem:[#allocation6 + $0x19a0] sm:$0xff]  ;;  %v1038_v21 = vld [vmem:[#allocation6 + $0x1968] sm:$0xff] }
 0x19c   : > { %1953 = vmatmul.mubr.f32.vlgmr.msra.gmra.mxu1 %v2719_v40  ;;  %v2394_v41 = vmul.f32 %v2386_v33, %v2386_v33  ;;  %v2387_v44 = vsub.f32 %v1531_v34, %v3050_v24  ;;  %1959 = vmatprep.subr.mxu0 %v862_v31  ;;  %v781_v23 = vld [vmem:[#allocation6 + $0x1160] sm:$0xff]  ;;  %v774_v27 = vld [vmem:[#allocation6 + $0x1128] sm:$0xff]  ;;  %v3072_v31 = vstv %s3069_s27 }
 0x19d   : > { %2030 = vmatprep.subr.mxu1 %v1118_v32  ;;  %1960 = vmatpush1.msra.mxu0 %v861_v37  ;;  %v1037_v25 = vld [vmem:[#allocation6 + $0x1960] sm:$0xff]  ;;  %v1030_v28 = vld [vmem:[#allocation6 + $0x1928] sm:$0xff] }
 0x19e   : > { %v2403_v47 = vmul.f32 %v3059_v36, %v2394_v41  ;;  %2031 = vmatpush1.msra.mxu1 %v1117_v38  ;;  %v2395_v48 = vmul.f32 %v2387_v44, %v2387_v44  ;;  %1961 = vmatprep.subr.mxu0 %v854_v42  ;;  %v773_v32 = vld [vmem:[#allocation6 + $0x1120] sm:$0xff]  ;;  %v766_v37 = vld [vmem:[#allocation6 + $0x10e8] sm:$0xff] }
 0x19f   : > { %2032 = vmatprep.subr.mxu1 %v1110_v43  ;;  %1962 = vmatpush1.msra.mxu0 %v853_v45  ;;  %v1029_v33 = vld [vmem:[#allocation6 + $0x1920] sm:$0xff]  ;;  %v1022_v38 = vld [vmem:[#allocation6 + $0x18e8] sm:$0xff] }
 0x1a0   : > { %v2411_v53 = vmul.f32 1.442695, %v2403_v47  ;;  %v2404_v54 = vmul.f32 %v3059_v36, %v2395_v48  ;;  %2033 = vmatpush1.msra.mxu1 %v1109_v46  ;;  %1963 = vmatprep.subr.mxu0 %v846_v49  ;;  %v765_v40 = vld [vmem:[#allocation6 + $0x10e0] sm:$0xff]  ;;  %v758_v44 = vld [vmem:[#allocation6 + $0x10a8] sm:$0xff] }
 0x1a1   : > { %2034 = vmatprep.subr.mxu1 %v1102_v50  ;;  %1964 = vmatpush1.msra.mxu0 %v845_v51  ;;  %v1021_v41 = vld [vmem:[#allocation6 + $0x18e0] sm:$0xff]  ;;  %v1014_v45 = vld [vmem:[#allocation6 + $0x18a8] sm:$0xff] }
 0x1a2   : > { %2692 = vpow2.f32 %v2411_v53  ;;  %v2413_v59 = vmul.f32 1.442695, %v2404_v54  ;;  %2035 = vmatpush1.msra.mxu1 %v1101_v52  ;;  %1965 = vmatprep.subr.mxu0 %v838_v55  ;;  %v757_v46 = vld [vmem:[#allocation6 + $0x10a0] sm:$0xff]  ;;  %v750_v50 = vld [vmem:[#allocation6 + $0x1068] sm:$0xff] }
 0x1a3   : > { %2036 = vmatprep.subr.mxu1 %v1094_v56  ;;  %1966 = vmatpush1.msra.mxu0 %v837_v57  ;;  %v1013_v47 = vld [vmem:[#allocation6 + $0x18a0] sm:$0xff]  ;;  %v1006_v51 = vld [vmem:[#allocation6 + $0x1868] sm:$0xff] }
 0x1a4   : > { %2694 = vpow2.f32 %v2413_v59  ;;  %2037 = vmatpush1.msra.mxu1 %v1093_v58  ;;  %1967 = vmatprep.subr.mxu0 %v830_v60  ;;  %v749_v52 = vld [vmem:[#allocation6 + $0x1060] sm:$0xff]  ;;  %v742_v56 = vld [vmem:[#allocation6 + $0x1028] sm:$0xff] }
 0x1a5   : > { %2038 = vmatprep.subr.mxu1 %v1086_v61  ;;  %1968 = vmatpush1.msra.mxu0 %v829_v62  ;;  %v1005_v53 = vld [vmem:[#allocation6 + $0x1860] sm:$0xff]  ;;  %v998_v57 = vld [vmem:[#allocation6 + $0x1828] sm:$0xff] }
 0x1a6   : > { %2039 = vmatpush1.msra.mxu1 %v1085_v63  ;;  %1969 = vmatprep.subr.mxu0 %v822_v0  ;;  %v997_v58 = vld [vmem:[#allocation6 + $0x1820] sm:$0xff]  ;;  %v990_v61 = vld [vmem:[#allocation6 + $0x17e8] sm:$0xff] }
 0x1a7   : > { %2040 = vmatprep.subr.mxu1 %v1078_v1  ;;  %1970 = vmatpush1.msra.mxu0 %v821_v2  ;;  %v1246_v62 = vld [vmem:[#allocation6 + $0x1fe8] sm:$0xff]  ;;  %v989_v63 = vld [vmem:[#allocation6 + $0x17e0] sm:$0xff] }
 0x1a8   : > { %2041 = vmatpush1.msra.mxu1 %v1077_v3  ;;  %1971 = vmatprep.subr.mxu0 %v814_v4  ;;  %v1245_v0 = vld [vmem:[#allocation6 + $0x1fe0] sm:$0xff]  ;;  %v982_v1 = vld [vmem:[#allocation6 + $0x17a8] sm:$0xff] }
 0x1a9   : > { %2042 = vmatprep.subr.mxu1 %v1070_v5  ;;  %1972 = vmatpush1.msra.mxu0 %v813_v6  ;;  %v1238_v2 = vld [vmem:[#allocation6 + $0x1fa8] sm:$0xff]  ;;  %v981_v3 = vld [vmem:[#allocation6 + $0x17a0] sm:$0xff] }
 0x1aa   : > { %2043 = vmatpush1.msra.mxu1 %v1069_v7  ;;  %1973 = vmatprep.subr.mxu0 %v806_v8  ;;  %v1237_v4 = vld [vmem:[#allocation6 + $0x1fa0] sm:$0xff]  ;;  %v974_v5 = vld [vmem:[#allocation6 + $0x1768] sm:$0xff] }
 0x1ab   : > { %2044 = vmatprep.subr.mxu1 %v1062_v9  ;;  %1974 = vmatpush1.msra.mxu0 %v805_v10  ;;  %v1230_v6 = vld [vmem:[#allocation6 + $0x1f68] sm:$0xff]  ;;  %v973_v7 = vld [vmem:[#allocation6 + $0x1760] sm:$0xff] }
 0x1ac   : > { %2045 = vmatpush1.msra.mxu1 %v1061_v11  ;;  %1975 = vmatprep.subr.mxu0 %v798_v12  ;;  %v1229_v8 = vld [vmem:[#allocation6 + $0x1f60] sm:$0xff]  ;;  %v966_v9 = vld [vmem:[#allocation6 + $0x1728] sm:$0xff] }
 0x1ad   : > { %2046 = vmatprep.subr.mxu1 %v1054_v13  ;;  %1976 = vmatpush1.msra.mxu0 %v797_v14  ;;  %v1222_v10 = vld [vmem:[#allocation6 + $0x1f28] sm:$0xff]  ;;  %v965_v11 = vld [vmem:[#allocation6 + $0x1720] sm:$0xff] }
 0x1ae   : > { %2047 = vmatpush1.msra.mxu1 %v1053_v15  ;;  %1977 = vmatprep.subr.mxu0 %v790_v16  ;;  %v1221_v12 = vld [vmem:[#allocation6 + $0x1f20] sm:$0xff]  ;;  %v958_v13 = vld [vmem:[#allocation6 + $0x16e8] sm:$0xff] }
 0x1af   : > { %v2693_v22 = vpop.eup %2692  ;;  %2048 = vmatprep.subr.mxu1 %v1046_v17  ;;  %1978 = vmatpush1.msra.mxu0 %v789_v18  ;;  %v1214_v14 = vld [vmem:[#allocation6 + $0x1ee8] sm:$0xff]  ;;  %v957_v15 = vld [vmem:[#allocation6 + $0x16e0] sm:$0xff] }
 0x1b0   : > { %v2427_v26 = vmul.f32 2.0, %v2693_v22  ;;  %2049 = vmatpush1.msra.mxu1 %v1045_v19  ;;  %1979 = vmatprep.subr.mxu0 %v782_v20  ;;  %v1213_v16 = vld [vmem:[#allocation6 + $0x1ee0] sm:$0xff]  ;;  %v950_v17 = vld [vmem:[#allocation6 + $0x16a8] sm:$0xff] }
 0x1b1   : > { %v2695_v29 = vpop.eup %2694  ;;  %2050 = vmatprep.subr.mxu1 %v1038_v21  ;;  %1980 = vmatpush1.msra.mxu0 %v781_v23  ;;  %v1206_v18 = vld [vmem:[#allocation6 + $0x1ea8] sm:$0xff]  ;;  %v949_v19 = vld [vmem:[#allocation6 + $0x16a0] sm:$0xff] }
 0x1b2   : > { %v2608_v34 = vadd.f32 -1.0, %v2427_v26  ;;  %v2428_v35 = vmul.f32 2.0, %v2695_v29  ;;  %2051 = vmatpush1.msra.mxu1 %v1037_v25  ;;  %1981 = vmatprep.subr.mxu0 %v774_v27  ;;  %v1205_v20 = vld [vmem:[#allocation6 + $0x1ea0] sm:$0xff]  ;;  %v942_v21 = vld [vmem:[#allocation6 + $0x1668] sm:$0xff] }
 0x1b3   : > { %2052 = vmatprep.subr.mxu1 %v1030_v28  ;;  %1982 = vmatpush1.msra.mxu0 %v773_v32  ;;  %v1198_v22 = vld [vmem:[#allocation6 + $0x1e68] sm:$0xff]  ;;  %v941_v23 = vld [vmem:[#allocation6 + $0x1660] sm:$0xff] }
 0x1b4   : > { %v2444_v42 = vmul.f32 %v2608_v34, %v3072_v31  ;;  %v2609_v43 = vadd.f32 -1.0, %v2428_v35  ;;  %2053 = vmatpush1.msra.mxu1 %v1029_v33  ;;  %1983 = vmatprep.subr.mxu0 %v766_v37  ;;  %v1197_v25 = vld [vmem:[#allocation6 + $0x1e60] sm:$0xff]  ;;  %v934_v26 = vld [vmem:[#allocation6 + $0x1628] sm:$0xff] }
 0x1b5   : > { %2054 = vmatprep.subr.mxu1 %v1022_v38  ;;  %1984 = vmatpush1.msra.mxu0 %v765_v40  ;;  %v1190_v27 = vld [vmem:[#allocation6 + $0x1e28] sm:$0xff]  ;;  %v933_v28 = vld [vmem:[#allocation6 + $0x1620] sm:$0xff] }
 0x1b6   : > { %v2452_v48 = vadd.f32 %v3062_v39, %v2444_v42  ;;  %v2445_v49 = vmul.f32 %v2609_v43, %v3072_v31  ;;  %2055 = vmatpush1.msra.mxu1 %v1021_v41  ;;  %1985 = vmatprep.subr.mxu0 %v758_v44  ;;  %v741_v39 = vld [vmem:[#allocation6 + $0x1020] sm:$0xff]  ;;  %v926_v32 = vld [vmem:[#allocation6 + $0x15e8] sm:$0xff] }
 0x1b7   : > { %2056 = vmatprep.subr.mxu1 %v1014_v45  ;;  %1986 = vmatpush1.msra.mxu0 %v757_v46  ;;  %v1189_v29 = vld [vmem:[#allocation6 + $0x1e20] sm:$0xff]  ;;  %v1182_v33 = vld [vmem:[#allocation6 + $0x1de8] sm:$0xff] }
 0x1b8   : > { %v2460_v54 = vmax.f32 %v2452_v48, 0.0  ;;  %v2453_v55 = vadd.f32 %v3053_v30, %v2445_v49  ;;  %2057 = vmatpush1.msra.mxu1 %v1013_v47  ;;  %1987 = vmatprep.subr.mxu0 %v750_v50  ;;  %v925_v34 = vld [vmem:[#allocation6 + $0x15e0] sm:$0xff]  ;;  %v918_v37 = vld [vmem:[#allocation6 + $0x15a8] sm:$0xff] }
 0x1b9   : > { %2058 = vmatprep.subr.mxu1 %v1006_v51  ;;  %1988 = vmatpush1.msra.mxu0 %v749_v52  ;;  %v1181_v35 = vld [vmem:[#allocation6 + $0x1de0] sm:$0xff]  ;;  %v1174_v38 = vld [vmem:[#allocation6 + $0x1da8] sm:$0xff] }
 0x1ba   : > { %v2468_v59 = vmin.f32 %v2460_v54, 1.0  ;;  %v2461_v60 = vmax.f32 %v2453_v55, 0.0  ;;  %2059 = vmatpush1.msra.mxu1 %v1005_v53  ;;  %1989 = vmatprep.subr.mxu0 %v742_v56  ;;  %v917_v40 = vld [vmem:[#allocation6 + $0x15a0] sm:$0xff]  ;;  %v910_v42 = vld [vmem:[#allocation6 + $0x1568] sm:$0xff] }
 0x1bb   : > { %2060 = vmatprep.subr.mxu1 %v998_v57  ;;  %1990 = vmatpush1.msra.mxu0 %v741_v39  ;;  %v1173_v41 = vld [vmem:[#allocation6 + $0x1da0] sm:$0xff]  ;;  %v1166_v43 = vld [vmem:[#allocation6 + $0x1d68] sm:$0xff] }
 0x1bc   : > { %2476 = vst [vmem:[%s3080_s28] sm:$0xff] %v2468_v59  ;;  %v2469_v30 = vmin.f32 %v2461_v60, 1.0  ;;  %2061 = vmatpush1.msra.mxu1 %v997_v58  ;;  %1991 = vmatprep.subr.mxu0 %v990_v61  ;;  %v909_v44 = vld [vmem:[#allocation6 + $0x1560] sm:$0xff]  ;;  %v902_v46 = vld [vmem:[#allocation6 + $0x1528] sm:$0xff] }
 0x1bd   : > { %2062 = vmatprep.subr.mxu1 %v1246_v62  ;;  %1992 = vmatpush2.msra.mxu0 %v989_v63  ;;  %v1165_v45 = vld [vmem:[#allocation6 + $0x1d60] sm:$0xff]  ;;  %v1158_v47 = vld [vmem:[#allocation6 + $0x1d28] sm:$0xff] }
 0x1be   : > { %2477 = vst [vmem:[%s3080_s28 + $0x8] sm:$0xff] %v2469_v30  ;;  %2063 = vmatpush2.msra.mxu1 %v1245_v0  ;;  %1993 = vmatprep.subr.mxu0 %v982_v1  ;;  %v901_v48 = vld [vmem:[#allocation6 + $0x1520] sm:$0xff]  ;;  %v894_v50 = vld [vmem:[#allocation6 + $0x14e8] sm:$0xff]  ;;  %v352_v30 = vld [vmem:[#allocation6 + $0x3f8] sm:$0xff] }
 0x1bf   : > { %2064 = vmatprep.subr.mxu1 %v1238_v2  ;;  %1994 = vmatpush2.msra.mxu0 %v981_v3  ;;  %v1157_v49 = vld [vmem:[#allocation6 + $0x1d20] sm:$0xff]  ;;  %v1150_v51 = vld [vmem:[#allocation6 + $0x1ce8] sm:$0xff]  ;;  %v608_v2 = vld [vmem:[#allocation6 + $0xbf8] sm:$0xff] }
 0x1c0   : > { %2065 = vmatpush2.msra.mxu1 %v1237_v4  ;;  %1995 = vmatprep.subr.mxu0 %v974_v5  ;;  %v893_v52 = vld [vmem:[#allocation6 + $0x14e0] sm:$0xff]  ;;  %v886_v54 = vld [vmem:[#allocation6 + $0x14a8] sm:$0xff]  ;;  %v351_v4 = vld [vmem:[#allocation6 + $0x3f0] sm:$0xff] }
 0x1c1   : > { %2066 = vmatprep.subr.mxu1 %v1230_v6  ;;  %1996 = vmatpush2.msra.mxu0 %v973_v7  ;;  %v1149_v53 = vld [vmem:[#allocation6 + $0x1ce0] sm:$0xff]  ;;  %v1142_v55 = vld [vmem:[#allocation6 + $0x1ca8] sm:$0xff]  ;;  %v607_v5 = vld [vmem:[#allocation6 + $0xbf0] sm:$0xff] }
 0x1c2   : > { %2067 = vmatpush2.msra.mxu1 %v1229_v8  ;;  %1997 = vmatprep.subr.mxu0 %v966_v9  ;;  %v885_v56 = vld [vmem:[#allocation6 + $0x14a0] sm:$0xff]  ;;  %v878_v39 = vld [vmem:[#allocation6 + $0x1468] sm:$0xff]  ;;  %v2722_v6 = vld [vmem:[%s3023_s25 + $0x38] sm:$0xff] }
 0x1c3   : > { %2068 = vmatprep.subr.mxu1 %v1222_v10  ;;  %1998 = vmatpush2.msra.mxu0 %v965_v11  ;;  %v1141_v57 = vld [vmem:[#allocation6 + $0x1ca0] sm:$0xff]  ;;  %v1134_v58 = vld [vmem:[#allocation6 + $0x1c68] sm:$0xff]  ;;  %v344_v7 = vld [vmem:[#allocation6 + $0x3b8] sm:$0xff] }
 0x1c4   : > { %2069 = vmatpush2.msra.mxu1 %v1221_v12  ;;  %1999 = vmatprep.subr.mxu0 %v958_v13  ;;  %v877_v59 = vld [vmem:[#allocation6 + $0x1460] sm:$0xff]  ;;  %v870_v61 = vld [vmem:[#allocation6 + $0x1428] sm:$0xff]  ;;  %v600_v8 = vld [vmem:[#allocation6 + $0xbb8] sm:$0xff] }
 0x1c5   : > { %2070 = vmatprep.subr.mxu1 %v1214_v14  ;;  %2000 = vmatpush2.msra.mxu0 %v957_v15  ;;  %v1133_v60 = vld [vmem:[#allocation6 + $0x1c60] sm:$0xff]  ;;  %v1126_v62 = vld [vmem:[#allocation6 + $0x1c28] sm:$0xff]  ;;  %v2723_v9 = vld [vmem:[%s3023_s25 + $0x30] sm:$0xff] }
 0x1c6   : > { %2071 = vmatpush2.msra.mxu1 %v1213_v16  ;;  %2001 = vmatprep.subr.mxu0 %v950_v17  ;;  %v869_v63 = vld [vmem:[#allocation6 + $0x1420] sm:$0xff]  ;;  %v2720_v1 = vld [vmem:[%s3023_s25 + $0x28] sm:$0xff]  ;;  %v343_v10 = vld [vmem:[#allocation6 + $0x3b0] sm:$0xff] }
 0x1c7   : > { %2072 = vmatprep.subr.mxu1 %v1206_v18  ;;  %2002 = vmatpush2.msra.mxu0 %v949_v19  ;;  %v1125_v0 = vld [vmem:[#allocation6 + $0x1c20] sm:$0xff]  ;;  %v599_v11 = vld [vmem:[#allocation6 + $0xbb0] sm:$0xff]  ;;  %v336_v12 = vld [vmem:[#allocation6 + $0x378] sm:$0xff] }
 0x1c8   : > { %2073 = vmatpush2.msra.mxu1 %v1205_v20  ;;  %2003 = vmatprep.subr.mxu0 %v942_v21  ;;  %v2721_v3 = vld [vmem:[%s3023_s25 + $0x20] sm:$0xff]  ;;  %v592_v13 = vld [vmem:[#allocation6 + $0xb78] sm:$0xff]  ;;  %v335_v14 = vld [vmem:[#allocation6 + $0x370] sm:$0xff] }
 0x1c9   : > { %2074 = vmatprep.subr.mxu1 %v1198_v22  ;;  %2004 = vmatpush2.msra.mxu0 %v941_v23  ;;  %v591_v15 = vld [vmem:[#allocation6 + $0xb70] sm:$0xff]  ;;  %v328_v16 = vld [vmem:[#allocation6 + $0x338] sm:$0xff] }
 0x1ca   : > { %2075 = vmatpush2.msra.mxu1 %v1197_v25  ;;  %2005 = vmatprep.subr.mxu0 %v934_v26  ;;  %v584_v17 = vld [vmem:[#allocation6 + $0xb38] sm:$0xff]  ;;  %v327_v18 = vld [vmem:[#allocation6 + $0x330] sm:$0xff] }
 0x1cb   : > { %2076 = vmatprep.subr.mxu1 %v1190_v27  ;;  %2006 = vmatpush2.msra.mxu0 %v933_v28  ;;  %v583_v19 = vld [vmem:[#allocation6 + $0xb30] sm:$0xff]  ;;  %v320_v20 = vld [vmem:[#allocation6 + $0x2f8] sm:$0xff] }
 0x1cc   : > { %2077 = vmatpush2.msra.mxu1 %v1189_v29  ;;  %2007 = vmatprep.subr.mxu0 %v926_v32  ;;  %v576_v21 = vld [vmem:[#allocation6 + $0xaf8] sm:$0xff]  ;;  %v319_v22 = vld [vmem:[#allocation6 + $0x2f0] sm:$0xff] }
 0x1cd   : > { %2078 = vmatprep.subr.mxu1 %v1182_v33  ;;  %2008 = vmatpush2.msra.mxu0 %v925_v34  ;;  %v575_v23 = vld [vmem:[#allocation6 + $0xaf0] sm:$0xff]  ;;  %v312_v25 = vld [vmem:[#allocation6 + $0x2b8] sm:$0xff] }
 0x1ce   : > { %2079 = vmatpush2.msra.mxu1 %v1181_v35  ;;  %2009 = vmatprep.subr.mxu0 %v918_v37  ;;  %v568_v26 = vld [vmem:[#allocation6 + $0xab8] sm:$0xff]  ;;  %v311_v27 = vld [vmem:[#allocation6 + $0x2b0] sm:$0xff] }
 0x1cf   : > { %2080 = vmatprep.subr.mxu1 %v1174_v38  ;;  %2010 = vmatpush2.msra.mxu0 %v917_v40  ;;  %v567_v28 = vld [vmem:[#allocation6 + $0xab0] sm:$0xff]  ;;  %v304_v29 = vld [vmem:[#allocation6 + $0x278] sm:$0xff] }
 0x1d0   : > { %2081 = vmatpush2.msra.mxu1 %v1173_v41  ;;  %2011 = vmatprep.subr.mxu0 %v910_v42  ;;  %v560_v32 = vld [vmem:[#allocation6 + $0xa78] sm:$0xff]  ;;  %v303_v33 = vld [vmem:[#allocation6 + $0x270] sm:$0xff] }
 0x1d1   : > { %2082 = vmatprep.subr.mxu1 %v1166_v43  ;;  %2012 = vmatpush2.msra.mxu0 %v909_v44  ;;  %v559_v34 = vld [vmem:[#allocation6 + $0xa70] sm:$0xff]  ;;  %v296_v35 = vld [vmem:[#allocation6 + $0x238] sm:$0xff] }
 0x1d2   : > { %2083 = vmatpush2.msra.mxu1 %v1165_v45  ;;  %2013 = vmatprep.subr.mxu0 %v902_v46  ;;  %v552_v37 = vld [vmem:[#allocation6 + $0xa38] sm:$0xff]  ;;  %v295_v38 = vld [vmem:[#allocation6 + $0x230] sm:$0xff] }
 0x1d3   : > { %2084 = vmatprep.subr.mxu1 %v1158_v47  ;;  %2014 = vmatpush2.msra.mxu0 %v901_v48  ;;  %v551_v40 = vld [vmem:[#allocation6 + $0xa30] sm:$0xff]  ;;  %v288_v41 = vld [vmem:[#allocation6 + $0x1f8] sm:$0xff] }
 0x1d4   : > { %2085 = vmatpush2.msra.mxu1 %v1157_v49  ;;  %2015 = vmatprep.subr.mxu0 %v894_v50  ;;  %v544_v42 = vld [vmem:[#allocation6 + $0x9f8] sm:$0xff]  ;;  %v287_v43 = vld [vmem:[#allocation6 + $0x1f0] sm:$0xff] }
 0x1d5   : > { %2086 = vmatprep.subr.mxu1 %v1150_v51  ;;  %2016 = vmatpush2.msra.mxu0 %v893_v52  ;;  %v543_v44 = vld [vmem:[#allocation6 + $0x9f0] sm:$0xff]  ;;  %v280_v45 = vld [vmem:[#allocation6 + $0x1b8] sm:$0xff] }
 0x1d6   : > { %2087 = vmatpush2.msra.mxu1 %v1149_v53  ;;  %2017 = vmatprep.subr.mxu0 %v886_v54  ;;  %v536_v46 = vld [vmem:[#allocation6 + $0x9b8] sm:$0xff]  ;;  %v279_v47 = vld [vmem:[#allocation6 + $0x1b0] sm:$0xff] }
 0x1d7   : > { %2088 = vmatprep.subr.mxu1 %v1142_v55  ;;  %2018 = vmatpush2.msra.mxu0 %v885_v56  ;;  %v535_v48 = vld [vmem:[#allocation6 + $0x9b0] sm:$0xff]  ;;  %v272_v49 = vld [vmem:[#allocation6 + $0x178] sm:$0xff] }
 0x1d8   : > { %2089 = vmatpush2.msra.mxu1 %v1141_v57  ;;  %2019 = vmatprep.subr.mxu0 %v878_v39  ;;  %v528_v50 = vld [vmem:[#allocation6 + $0x978] sm:$0xff]  ;;  %v271_v51 = vld [vmem:[#allocation6 + $0x170] sm:$0xff] }
 0x1d9   : > { %2090 = vmatprep.subr.mxu1 %v1134_v58  ;;  %2020 = vmatpush2.msra.mxu0 %v877_v59  ;;  %v527_v52 = vld [vmem:[#allocation6 + $0x970] sm:$0xff]  ;;  %v264_v53 = vld [vmem:[#allocation6 + $0x138] sm:$0xff] }
 0x1da   : > { %2091 = vmatpush2.msra.mxu1 %v1133_v60  ;;  %2021 = vmatprep.subr.mxu0 %v870_v61  ;;  %v520_v54 = vld [vmem:[#allocation6 + $0x938] sm:$0xff]  ;;  %v263_v55 = vld [vmem:[#allocation6 + $0x130] sm:$0xff] }
 0x1db   : > { %2092 = vmatprep.subr.mxu1 %v1126_v62  ;;  %2022 = vmatpush2.msra.mxu0 %v869_v63  ;;  %v519_v56 = vld [vmem:[#allocation6 + $0x930] sm:$0xff]  ;;  %v256_v57 = vld [vmem:[#allocation6 + $0xf8] sm:$0xff] }
 0x1dc   : > { %2023 = vmatprep.mubr.f32.mxu0 %v2720_v1  ;;  %2093 = vmatpush2.msra.mxu1 %v1125_v0  ;;  %v512_v39 = vld [vmem:[#allocation6 + $0x8f8] sm:$0xff]  ;;  %v255_v58 = vld [vmem:[#allocation6 + $0xf0] sm:$0xff] }
 0x1dd   : > { %2024 = vmatmul.mubr.f32.vlgmr.msra.gmra.mxu0 %v2721_v3  ;;  %2094 = vmatprep.mubr.f32.mxu1 %v2722_v6  ;;  %v511_v59 = vld [vmem:[#allocation6 + $0x8f0] sm:$0xff]  ;;  %v248_v60 = vld [vmem:[#allocation6 + $0xb8] sm:$0xff] }
 0x1de   : > { %2101 = vmatprep.subr.mxu0 %v352_v30  ;;  %2172 = vmatprep.subr.mxu1 %v608_v2  ;;  %v504_v61 = vld [vmem:[#allocation6 + $0x8b8] sm:$0xff]  ;;  %v247_v62 = vld [vmem:[#allocation6 + $0xb0] sm:$0xff] }
 0x1df   : > { %2095 = vmatmul.mubr.f32.vlgmr.msra.gmra.mxu1 %v2723_v9  ;;  %2102 = vmatpush1.msra.mxu0 %v351_v4  ;;  %v503_v63 = vld [vmem:[#allocation6 + $0x8b0] sm:$0xff]  ;;  %v240_v0 = vld [vmem:[#allocation6 + $0x78] sm:$0xff] }
 0x1e0   : > { %2173 = vmatpush1.msra.mxu1 %v607_v5  ;;  %2103 = vmatprep.subr.mxu0 %v344_v7  ;;  %v496_v30 = vld [vmem:[#allocation6 + $0x878] sm:$0xff]  ;;  %v239_v1 = vld [vmem:[#allocation6 + $0x70] sm:$0xff] }
 0x1e1   : > { %2174 = vmatprep.subr.mxu1 %v600_v8  ;;  %2104 = vmatpush1.msra.mxu0 %v343_v10  ;;  %v495_v2 = vld [vmem:[#allocation6 + $0x870] sm:$0xff]  ;;  %v232_v3 = vld [vmem:[#allocation6 + $0x38] sm:$0xff] }
 0x1e2   : > { %2175 = vmatpush1.msra.mxu1 %v599_v11  ;;  %2105 = vmatprep.subr.mxu0 %v336_v12  ;;  %v488_v4 = vld [vmem:[#allocation6 + $0x838] sm:$0xff]  ;;  %v231_v5 = vld [vmem:[#allocation6 + $0x30] sm:$0xff] }
 0x1e3   : > { %2176 = vmatprep.subr.mxu1 %v592_v13  ;;  %2106 = vmatpush1.msra.mxu0 %v335_v14  ;;  %v487_v6 = vld [vmem:[#allocation6 + $0x830] sm:$0xff]  ;;  %v480_v7 = vld [vmem:[#allocation6 + $0x7f8] sm:$0xff] }
 0x1e4   : > { %2177 = vmatpush1.msra.mxu1 %v591_v15  ;;  %2107 = vmatprep.subr.mxu0 %v328_v16  ;;  %v736_v8 = vld [vmem:[#allocation6 + $0xff8] sm:$0xff]  ;;  %v479_v9 = vld [vmem:[#allocation6 + $0x7f0] sm:$0xff] }
 0x1e5   : > { %2178 = vmatprep.subr.mxu1 %v584_v17  ;;  %2108 = vmatpush1.msra.mxu0 %v327_v18  ;;  %v735_v10 = vld [vmem:[#allocation6 + $0xff0] sm:$0xff]  ;;  %v472_v11 = vld [vmem:[#allocation6 + $0x7b8] sm:$0xff] }
 0x1e6   : > { %2179 = vmatpush1.msra.mxu1 %v583_v19  ;;  %2109 = vmatprep.subr.mxu0 %v320_v20  ;;  %v728_v12 = vld [vmem:[#allocation6 + $0xfb8] sm:$0xff]  ;;  %v471_v13 = vld [vmem:[#allocation6 + $0x7b0] sm:$0xff] }
 0x1e7   : > { %2180 = vmatprep.subr.mxu1 %v576_v21  ;;  %2110 = vmatpush1.msra.mxu0 %v319_v22  ;;  %v727_v14 = vld [vmem:[#allocation6 + $0xfb0] sm:$0xff]  ;;  %v464_v15 = vld [vmem:[#allocation6 + $0x778] sm:$0xff] }
 0x1e8   : > { %2181 = vmatpush1.msra.mxu1 %v575_v23  ;;  %2111 = vmatprep.subr.mxu0 %v312_v25  ;;  %v720_v16 = vld [vmem:[#allocation6 + $0xf78] sm:$0xff]  ;;  %v463_v17 = vld [vmem:[#allocation6 + $0x770] sm:$0xff] }
 0x1e9   : > { %2182 = vmatprep.subr.mxu1 %v568_v26  ;;  %2112 = vmatpush1.msra.mxu0 %v311_v27  ;;  %v719_v18 = vld [vmem:[#allocation6 + $0xf70] sm:$0xff]  ;;  %v456_v19 = vld [vmem:[#allocation6 + $0x738] sm:$0xff] }
 0x1ea   : > { %2183 = vmatpush1.msra.mxu1 %v567_v28  ;;  %2113 = vmatprep.subr.mxu0 %v304_v29  ;;  %v712_v20 = vld [vmem:[#allocation6 + $0xf38] sm:$0xff]  ;;  %v455_v21 = vld [vmem:[#allocation6 + $0x730] sm:$0xff] }
 0x1eb   : > { %2184 = vmatprep.subr.mxu1 %v560_v32  ;;  %2114 = vmatpush1.msra.mxu0 %v303_v33  ;;  %v711_v22 = vld [vmem:[#allocation6 + $0xf30] sm:$0xff]  ;;  %v448_v23 = vld [vmem:[#allocation6 + $0x6f8] sm:$0xff] }
 0x1ec   : > { %2185 = vmatpush1.msra.mxu1 %v559_v34  ;;  %2115 = vmatprep.subr.mxu0 %v296_v35  ;;  %v704_v25 = vld [vmem:[#allocation6 + $0xef8] sm:$0xff]  ;;  %v447_v26 = vld [vmem:[#allocation6 + $0x6f0] sm:$0xff] }
 0x1ed   : > { %2186 = vmatprep.subr.mxu1 %v552_v37  ;;  %2116 = vmatpush1.msra.mxu0 %v295_v38  ;;  %v703_v27 = vld [vmem:[#allocation6 + $0xef0] sm:$0xff]  ;;  %v440_v28 = vld [vmem:[#allocation6 + $0x6b8] sm:$0xff] }
 0x1ee   : > { %2187 = vmatpush1.msra.mxu1 %v551_v40  ;;  %2117 = vmatprep.subr.mxu0 %v288_v41  ;;  %v696_v29 = vld [vmem:[#allocation6 + $0xeb8] sm:$0xff]  ;;  %v439_v32 = vld [vmem:[#allocation6 + $0x6b0] sm:$0xff] }
 0x1ef   : > { %2188 = vmatprep.subr.mxu1 %v544_v42  ;;  %2118 = vmatpush1.msra.mxu0 %v287_v43  ;;  %v695_v33 = vld [vmem:[#allocation6 + $0xeb0] sm:$0xff]  ;;  %v432_v34 = vld [vmem:[#allocation6 + $0x678] sm:$0xff] }
 0x1f0   : > { %2189 = vmatpush1.msra.mxu1 %v543_v44  ;;  %2119 = vmatprep.subr.mxu0 %v280_v45  ;;  %v688_v35 = vld [vmem:[#allocation6 + $0xe78] sm:$0xff]  ;;  %v431_v37 = vld [vmem:[#allocation6 + $0x670] sm:$0xff] }
 0x1f1   : > { %2190 = vmatprep.subr.mxu1 %v536_v46  ;;  %2120 = vmatpush1.msra.mxu0 %v279_v47  ;;  %v687_v38 = vld [vmem:[#allocation6 + $0xe70] sm:$0xff]  ;;  %v424_v40 = vld [vmem:[#allocation6 + $0x638] sm:$0xff] }
 0x1f2   : > { %2191 = vmatpush1.msra.mxu1 %v535_v48  ;;  %2121 = vmatprep.subr.mxu0 %v272_v49  ;;  %v680_v41 = vld [vmem:[#allocation6 + $0xe38] sm:$0xff]  ;;  %v423_v42 = vld [vmem:[#allocation6 + $0x630] sm:$0xff] }
 0x1f3   : > { %2192 = vmatprep.subr.mxu1 %v528_v50  ;;  %2122 = vmatpush1.msra.mxu0 %v271_v51  ;;  %v679_v43 = vld [vmem:[#allocation6 + $0xe30] sm:$0xff]  ;;  %v416_v44 = vld [vmem:[#allocation6 + $0x5f8] sm:$0xff] }
 0x1f4   : > { %2193 = vmatpush1.msra.mxu1 %v527_v52  ;;  %2123 = vmatprep.subr.mxu0 %v264_v53  ;;  %v672_v45 = vld [vmem:[#allocation6 + $0xdf8] sm:$0xff]  ;;  %v415_v46 = vld [vmem:[#allocation6 + $0x5f0] sm:$0xff] }
 0x1f5   : > { %2194 = vmatprep.subr.mxu1 %v520_v54  ;;  %2124 = vmatpush1.msra.mxu0 %v263_v55  ;;  %v671_v47 = vld [vmem:[#allocation6 + $0xdf0] sm:$0xff]  ;;  %v408_v48 = vld [vmem:[#allocation6 + $0x5b8] sm:$0xff] }
 0x1f6   : > { %2195 = vmatpush1.msra.mxu1 %v519_v56  ;;  %2125 = vmatprep.subr.mxu0 %v256_v57  ;;  %v664_v49 = vld [vmem:[#allocation6 + $0xdb8] sm:$0xff]  ;;  %v407_v50 = vld [vmem:[#allocation6 + $0x5b0] sm:$0xff] }
 0x1f7   : > { %2196 = vmatprep.subr.mxu1 %v512_v39  ;;  %2126 = vmatpush1.msra.mxu0 %v255_v58  ;;  %v663_v51 = vld [vmem:[#allocation6 + $0xdb0] sm:$0xff]  ;;  %v400_v52 = vld [vmem:[#allocation6 + $0x578] sm:$0xff]  ;;  %v1599_v39 = vpop.f32.mrf.mxu0  ;;  %v1670_v58 = vpop.f32.mrf.mxu1 }
 0x1f8   : > { %2197 = vmatpush1.msra.mxu1 %v511_v59  ;;  %2127 = vmatprep.subr.mxu0 %v248_v60  ;;  %v656_v53 = vld [vmem:[#allocation6 + $0xd78] sm:$0xff]  ;;  %v399_v54 = vld [vmem:[#allocation6 + $0x570] sm:$0xff] }
 0x1f9   : > { %2198 = vmatprep.subr.mxu1 %v504_v61  ;;  %2128 = vmatpush1.msra.mxu0 %v247_v62  ;;  %v655_v55 = vld [vmem:[#allocation6 + $0xd70] sm:$0xff]  ;;  %v392_v56 = vld [vmem:[#allocation6 + $0x538] sm:$0xff] }
 0x1fa   : > { %2199 = vmatpush1.msra.mxu1 %v503_v63  ;;  %2129 = vmatprep.subr.mxu0 %v240_v0  ;;  %v648_v57 = vld [vmem:[#allocation6 + $0xd38] sm:$0xff]  ;;  %v391_v59 = vld [vmem:[#allocation6 + $0x530] sm:$0xff] }
 0x1fb   : > { %2200 = vmatprep.subr.mxu1 %v496_v30  ;;  %2130 = vmatpush1.msra.mxu0 %v239_v1  ;;  %v647_v60 = vld [vmem:[#allocation6 + $0xd30] sm:$0xff]  ;;  %v384_v61 = vld [vmem:[#allocation6 + $0x4f8] sm:$0xff] }
 0x1fc   : > { %2201 = vmatpush1.msra.mxu1 %v495_v2  ;;  %2131 = vmatprep.subr.mxu0 %v232_v3  ;;  %v640_v62 = vld [vmem:[#allocation6 + $0xcf8] sm:$0xff]  ;;  %v383_v63 = vld [vmem:[#allocation6 + $0x4f0] sm:$0xff]  ;;  %v1601_v2 = vpop.f32.mrf.mxu0  ;;  %v1672_v3 = vpop.f32.mrf.mxu1 }
 0x1fd   : > { %2202 = vmatprep.subr.mxu1 %v488_v4  ;;  %2132 = vmatpush1.msra.mxu0 %v231_v5  ;;  %v639_v0 = vld [vmem:[#allocation6 + $0xcf0] sm:$0xff]  ;;  %v376_v30 = vld [vmem:[#allocation6 + $0x4b8] sm:$0xff] }
 0x1fe   : > { %2203 = vmatpush1.msra.mxu1 %v487_v6  ;;  %2133 = vmatprep.subr.mxu0 %v480_v7  ;;  %v632_v1 = vld [vmem:[#allocation6 + $0xcb8] sm:$0xff]  ;;  %v375_v4 = vld [vmem:[#allocation6 + $0x4b0] sm:$0xff]  ;;  %v1671_v6 = vadd.f32 %v1670_v58, %v1599_v39 }
 0x1ff   : > { %2204 = vmatprep.subr.mxu1 %v736_v8  ;;  %2134 = vmatpush2.msra.mxu0 %v479_v9  ;;  %v631_v5 = vld [vmem:[#allocation6 + $0xcb0] sm:$0xff]  ;;  %v368_v7 = vld [vmem:[#allocation6 + $0x478] sm:$0xff] }
 0x200   : > { %2205 = vmatpush2.msra.mxu1 %v735_v10  ;;  %2135 = vmatprep.subr.mxu0 %v472_v11  ;;  %v624_v8 = vld [vmem:[#allocation6 + $0xc78] sm:$0xff]  ;;  %v367_v9 = vld [vmem:[#allocation6 + $0x470] sm:$0xff] }
 0x201   : > { %2206 = vmatprep.subr.mxu1 %v728_v12  ;;  %2136 = vmatpush2.msra.mxu0 %v471_v13  ;;  %v623_v10 = vld [vmem:[#allocation6 + $0xc70] sm:$0xff]  ;;  %v1673_v12 = vadd.f32 %v1672_v3, %v1601_v2  ;;  %v360_v13 = vld [vmem:[#allocation6 + $0x438] sm:$0xff] }
 0x202   : > { %2207 = vmatpush2.msra.mxu1 %v727_v14  ;;  %2137 = vmatprep.subr.mxu0 %v464_v15  ;;  %v616_v14 = vld [vmem:[#allocation6 + $0xc38] sm:$0xff]  ;;  %v831_v58 = vld [vmem:[#allocation6 + $0x12f0] sm:$0xff] }
 0x203   : > { %2208 = vmatprep.subr.mxu1 %v720_v16  ;;  %2138 = vmatpush2.msra.mxu0 %v463_v17  ;;  %v359_v16 = vld [vmem:[#allocation6 + $0x430] sm:$0xff]  ;;  %v1088_v39 = vld [vmem:[#allocation6 + $0x1af8] sm:$0xff] }
 0x204   : > { %2209 = vmatpush2.msra.mxu1 %v719_v18  ;;  %2139 = vmatprep.subr.mxu0 %v456_v19  ;;  %v615_v19 = vld [vmem:[#allocation6 + $0xc30] sm:$0xff]  ;;  %v808_v3 = vld [vmem:[#allocation6 + $0x1238] sm:$0xff] }
 0x205   : > { %2210 = vmatprep.subr.mxu1 %v712_v20  ;;  %2140 = vmatpush2.msra.mxu0 %v455_v21  ;;  %v1071_v2 = vld [vmem:[#allocation6 + $0x1a70] sm:$0xff] }
 0x206   : > { %2211 = vmatpush2.msra.mxu1 %v711_v22  ;;  %2141 = vmatprep.subr.mxu0 %v448_v23  ;;  %v2724_v23 = vld [vmem:[%s3023_s25 + $0x8] sm:$0xff] }
 0x207   : > { %2212 = vmatprep.subr.mxu1 %v704_v25  ;;  %2142 = vmatpush2.msra.mxu0 %v447_v26  ;;  %v864_v25 = vld [vmem:[#allocation6 + $0x13f8] sm:$0xff] }
 0x208   : > { %2213 = vmatpush2.msra.mxu1 %v703_v27  ;;  %2143 = vmatprep.subr.mxu0 %v440_v28  ;;  %v1120_v26 = vld [vmem:[#allocation6 + $0x1bf8] sm:$0xff] }
 0x209   : > { %2214 = vmatprep.subr.mxu1 %v696_v29  ;;  %2144 = vmatpush2.msra.mxu0 %v439_v32  ;;  %v3091_v29 = vld [vmem:[%s3023_s25 + $0x18] sm:$0xff]  ;;  %v863_v32 = vld [vmem:[#allocation6 + $0x13f0] sm:$0xff] }
 0x20a   : > { %2215 = vmatpush2.msra.mxu1 %v695_v33  ;;  %2145 = vmatprep.subr.mxu0 %v432_v34  ;;  %v1119_v33 = vld [vmem:[#allocation6 + $0x1bf0] sm:$0xff]  ;;  %v2726_v34 = vld [vmem:[%s3023_s25] sm:$0xff] }
 0x20b   : > { %2216 = vmatprep.subr.mxu1 %v688_v35  ;;  %2146 = vmatpush2.msra.mxu0 %v431_v37  ;;  %v3096_v35 = vld [vmem:[%s3023_s25 + $0x10] sm:$0xff] }
 0x20c   : > { %2217 = vmatpush2.msra.mxu1 %v687_v38  ;;  %2147 = vmatprep.subr.mxu0 %v424_v40  ;;  %v856_v38 = vld [vmem:[#allocation6 + $0x13b8] sm:$0xff] }
 0x20d   : > { %2218 = vmatprep.subr.mxu1 %v680_v41  ;;  %2148 = vmatpush2.msra.mxu0 %v423_v42  ;;  %v1112_v40 = vld [vmem:[#allocation6 + $0x1bb8] sm:$0xff]  ;;  %v855_v42 = vld [vmem:[#allocation6 + $0x13b0] sm:$0xff] }
 0x20e   : > { %2219 = vmatpush2.msra.mxu1 %v679_v43  ;;  %2149 = vmatprep.subr.mxu0 %v416_v44  ;;  %v1111_v43 = vld [vmem:[#allocation6 + $0x1bb0] sm:$0xff] }
 0x20f   : > { %2220 = vmatprep.subr.mxu1 %v672_v45  ;;  %2150 = vmatpush2.msra.mxu0 %v415_v46  ;;  %v848_v46 = vld [vmem:[#allocation6 + $0x1378] sm:$0xff] }
 0x210   : > { %2221 = vmatpush2.msra.mxu1 %v671_v47  ;;  %2151 = vmatprep.subr.mxu0 %v408_v48  ;;  %v1104_v47 = vld [vmem:[#allocation6 + $0x1b78] sm:$0xff]  ;;  %v847_v48 = vld [vmem:[#allocation6 + $0x1370] sm:$0xff] }
 0x211   : > { %2222 = vmatprep.subr.mxu1 %v664_v49  ;;  %2152 = vmatpush2.msra.mxu0 %v407_v50  ;;  %v1103_v49 = vld [vmem:[#allocation6 + $0x1b70] sm:$0xff] }
 0x212   : > { %2223 = vmatpush2.msra.mxu1 %v663_v51  ;;  %2153 = vmatprep.subr.mxu0 %v400_v52  ;;  %v840_v52 = vld [vmem:[#allocation6 + $0x1338] sm:$0xff] }
 0x213   : > { %2224 = vmatprep.subr.mxu1 %v656_v53  ;;  %2154 = vmatpush2.msra.mxu0 %v399_v54  ;;  %v1096_v53 = vld [vmem:[#allocation6 + $0x1b38] sm:$0xff]  ;;  %v839_v54 = vld [vmem:[#allocation6 + $0x1330] sm:$0xff] }
 0x214   : > { %2225 = vmatpush2.msra.mxu1 %v655_v55  ;;  %2155 = vmatprep.subr.mxu0 %v392_v56  ;;  %v1095_v55 = vld [vmem:[#allocation6 + $0x1b30] sm:$0xff] }
 0x215   : > { %2226 = vmatprep.subr.mxu1 %v648_v57  ;;  %2156 = vmatpush2.msra.mxu0 %v391_v59  ;;  %v832_v57 = vld [vmem:[#allocation6 + $0x12f8] sm:$0xff]  ;;  %v1087_v59 = vld [vmem:[#allocation6 + $0x1af0] sm:$0xff] }
 0x216   : > { %2227 = vmatpush2.msra.mxu1 %v647_v60  ;;  %2157 = vmatprep.subr.mxu0 %v384_v61  ;;  %v824_v60 = vld [vmem:[#allocation6 + $0x12b8] sm:$0xff] }
 0x217   : > { %2228 = vmatprep.subr.mxu1 %v640_v62  ;;  %2158 = vmatpush2.msra.mxu0 %v383_v63  ;;  %v1080_v61 = vld [vmem:[#allocation6 + $0x1ab8] sm:$0xff]  ;;  %v823_v62 = vld [vmem:[#allocation6 + $0x12b0] sm:$0xff] }
 0x218   : > { %2229 = vmatpush2.msra.mxu1 %v639_v0  ;;  %2159 = vmatprep.subr.mxu0 %v376_v30  ;;  %v1079_v63 = vld [vmem:[#allocation6 + $0x1ab0] sm:$0xff]  ;;  %v816_v0 = vld [vmem:[#allocation6 + $0x1278] sm:$0xff] }
 0x219   : > { %2230 = vmatprep.subr.mxu1 %v632_v1  ;;  %v1741_v11 = vpop.f32.mrf.mxu0  ;;  %2160 = vmatpush2.msra.mxu0 %v375_v4  ;;  %v1072_v30 = vld [vmem:[#allocation6 + $0x1a78] sm:$0xff]  ;;  %v815_v1 = vld [vmem:[#allocation6 + $0x1270] sm:$0xff] }
 0x21a   : > { %2231 = vmatpush2.msra.mxu1 %v631_v5  ;;  %v1742_v15 = vadd.f32 %v1741_v11, %v1671_v6  ;;  %2161 = vmatprep.subr.mxu0 %v368_v7  ;;  %v1064_v4 = vld [vmem:[#allocation6 + $0x1a38] sm:$0xff]  ;;  %v807_v5 = vld [vmem:[#allocation6 + $0x1230] sm:$0xff] }
 0x21b   : > { %2232 = vmatprep.subr.mxu1 %v624_v8  ;;  %v1812_v17 = vpop.f32.mrf.mxu1  ;;  %v1743_v18 = vpop.f32.mrf.mxu0  ;;  %2162 = vmatpush2.msra.mxu0 %v367_v9  ;;  %v1063_v6 = vld [vmem:[#allocation6 + $0x1a30] sm:$0xff]  ;;  %v800_v7 = vld [vmem:[#allocation6 + $0x11f8] sm:$0xff] }
 0x21c   : > { %2233 = vmatpush2.msra.mxu1 %v623_v10  ;;  %v1813_v20 = vadd.f32 %v1812_v17, %v1742_v15  ;;  %v1744_v21 = vadd.f32 %v1743_v18, %v1673_v12  ;;  %2163 = vmatprep.subr.mxu0 %v360_v13  ;;  %v1056_v8 = vld [vmem:[#allocation6 + $0x19f8] sm:$0xff]  ;;  %v799_v9 = vld [vmem:[#allocation6 + $0x11f0] sm:$0xff] }
 0x21d   : > { %2234 = vmatprep.subr.mxu1 %v616_v14  ;;  %v1814_v22 = vpop.f32.mrf.mxu1  ;;  %2164 = vmatpush2.msra.mxu0 %v359_v16  ;;  %v1055_v10 = vld [vmem:[#allocation6 + $0x19f0] sm:$0xff]  ;;  %v792_v11 = vld [vmem:[#allocation6 + $0x11b8] sm:$0xff] }
 0x21e   : > { %2165 = vmatprep.mubr.f32.mxu0 %v2724_v23  ;;  %v2388_v27 = vsub.f32 %v1813_v20, %v3050_v24  ;;  %v1815_v28 = vadd.f32 %v1814_v22, %v1744_v21  ;;  %2235 = vmatpush2.msra.mxu1 %v615_v19  ;;  %v1048_v12 = vld [vmem:[#allocation6 + $0x19b8] sm:$0xff]  ;;  %v791_v13 = vld [vmem:[#allocation6 + $0x11b0] sm:$0xff] }
 0x21f   : > { %2236 = vmatprep.mubr.f32.mxu1 %v3091_v29  ;;  %2166 = vmatmul.mubr.f32.vlgmr.msra.gmra.mxu0 %v2726_v34  ;;  %v1047_v14 = vld [vmem:[#allocation6 + $0x19b0] sm:$0xff]  ;;  %v784_v15 = vld [vmem:[#allocation6 + $0x1178] sm:$0xff] }
 0x220   : > { %2237 = vmatmul.mubr.f32.vlgmr.msra.gmra.mxu1 %v3096_v35  ;;  %v2396_v37 = vmul.f32 %v2388_v27, %v2388_v27  ;;  %v2389_v41 = vsub.f32 %v1815_v28, %v3050_v24  ;;  %2243 = vmatprep.subr.mxu0 %v864_v25  ;;  %v1040_v16 = vld [vmem:[#allocation6 + $0x1978] sm:$0xff]  ;;  %v783_v18 = vld [vmem:[#allocation6 + $0x1170] sm:$0xff] }
 0x221   : > { %2314 = vmatprep.subr.mxu1 %v1120_v26  ;;  %2244 = vmatpush1.msra.mxu0 %v863_v32  ;;  %v1039_v19 = vld [vmem:[#allocation6 + $0x1970] sm:$0xff]  ;;  %v776_v21 = vld [vmem:[#allocation6 + $0x1138] sm:$0xff] }
 0x222   : > { %v2405_v44 = vmul.f32 %v3059_v36, %v2396_v37  ;;  %2315 = vmatpush1.msra.mxu1 %v1119_v33  ;;  %v2397_v45 = vmul.f32 %v2389_v41, %v2389_v41  ;;  %2245 = vmatprep.subr.mxu0 %v856_v38  ;;  %v1032_v22 = vld [vmem:[#allocation6 + $0x1938] sm:$0xff]  ;;  %v775_v25 = vld [vmem:[#allocation6 + $0x1130] sm:$0xff] }
 0x223   : > { %2316 = vmatprep.subr.mxu1 %v1112_v40  ;;  %2246 = vmatpush1.msra.mxu0 %v855_v42  ;;  %v1031_v26 = vld [vmem:[#allocation6 + $0x1930] sm:$0xff]  ;;  %v768_v32 = vld [vmem:[#allocation6 + $0x10f8] sm:$0xff] }
 0x224   : > { %v2415_v50 = vmul.f32 1.442695, %v2405_v44  ;;  %v2406_v51 = vmul.f32 %v3059_v36, %v2397_v45  ;;  %2317 = vmatpush1.msra.mxu1 %v1111_v43  ;;  %2247 = vmatprep.subr.mxu0 %v848_v46  ;;  %v1024_v33 = vld [vmem:[#allocation6 + $0x18f8] sm:$0xff]  ;;  %v767_v34 = vld [vmem:[#allocation6 + $0x10f0] sm:$0xff] }
 0x225   : > { %2318 = vmatprep.subr.mxu1 %v1104_v47  ;;  %2248 = vmatpush1.msra.mxu0 %v847_v48  ;;  %v1023_v37 = vld [vmem:[#allocation6 + $0x18f0] sm:$0xff]  ;;  %v760_v41 = vld [vmem:[#allocation6 + $0x10b8] sm:$0xff] }
 0x226   : > { %2696 = vpow2.f32 %v2415_v50  ;;  %v2417_v56 = vmul.f32 1.442695, %v2406_v51  ;;  %2319 = vmatpush1.msra.mxu1 %v1103_v49  ;;  %2249 = vmatprep.subr.mxu0 %v840_v52  ;;  %v1016_v42 = vld [vmem:[#allocation6 + $0x18b8] sm:$0xff]  ;;  %v759_v43 = vld [vmem:[#allocation6 + $0x10b0] sm:$0xff] }
 0x227   : > { %2320 = vmatprep.subr.mxu1 %v1096_v53  ;;  %2250 = vmatpush1.msra.mxu0 %v839_v54  ;;  %v1015_v44 = vld [vmem:[#allocation6 + $0x18b0] sm:$0xff]  ;;  %v752_v47 = vld [vmem:[#allocation6 + $0x1078] sm:$0xff] }
 0x228   : > { %2698 = vpow2.f32 %v2417_v56  ;;  %2321 = vmatpush1.msra.mxu1 %v1095_v55  ;;  %2251 = vmatprep.subr.mxu0 %v832_v57  ;;  %v1008_v48 = vld [vmem:[#allocation6 + $0x1878] sm:$0xff]  ;;  %v751_v49 = vld [vmem:[#allocation6 + $0x1070] sm:$0xff] }
 0x229   : > { %2322 = vmatprep.subr.mxu1 %v1088_v39  ;;  %2252 = vmatpush1.msra.mxu0 %v831_v58  ;;  %v1007_v50 = vld [vmem:[#allocation6 + $0x1870] sm:$0xff]  ;;  %v744_v53 = vld [vmem:[#allocation6 + $0x1038] sm:$0xff] }
 0x22a   : > { %2323 = vmatpush1.msra.mxu1 %v1087_v59  ;;  %2253 = vmatprep.subr.mxu0 %v824_v60  ;;  %v1000_v54 = vld [vmem:[#allocation6 + $0x1838] sm:$0xff]  ;;  %v999_v55 = vld [vmem:[#allocation6 + $0x1830] sm:$0xff] }
 0x22b   : > { %2324 = vmatprep.subr.mxu1 %v1080_v61  ;;  %2254 = vmatpush1.msra.mxu0 %v823_v62  ;;  %v992_v39 = vld [vmem:[#allocation6 + $0x17f8] sm:$0xff]  ;;  %v991_v59 = vld [vmem:[#allocation6 + $0x17f0] sm:$0xff] }
 0x22c   : > { %2325 = vmatpush1.msra.mxu1 %v1079_v63  ;;  %2255 = vmatprep.subr.mxu0 %v816_v0  ;;  %v1248_v58 = vld [vmem:[#allocation6 + $0x1ff8] sm:$0xff]  ;;  %v983_v63 = vld [vmem:[#allocation6 + $0x17b0] sm:$0xff] }
 0x22d   : > { %2326 = vmatprep.subr.mxu1 %v1072_v30  ;;  %2256 = vmatpush1.msra.mxu0 %v815_v1  ;;  %v984_v61 = vld [vmem:[#allocation6 + $0x17b8] sm:$0xff]  ;;  %v1239_v0 = vld [vmem:[#allocation6 + $0x1fb0] sm:$0xff] }
 0x22e   : > { %2327 = vmatpush1.msra.mxu1 %v1071_v2  ;;  %2257 = vmatprep.subr.mxu0 %v808_v3  ;;  %v1240_v62 = vld [vmem:[#allocation6 + $0x1fb8] sm:$0xff]  ;;  %v975_v2 = vld [vmem:[#allocation6 + $0x1770] sm:$0xff] }
 0x22f   : > { %2328 = vmatprep.subr.mxu1 %v1064_v4  ;;  %2258 = vmatpush1.msra.mxu0 %v807_v5  ;;  %v976_v30 = vld [vmem:[#allocation6 + $0x1778] sm:$0xff]  ;;  %v1231_v3 = vld [vmem:[#allocation6 + $0x1f70] sm:$0xff] }
 0x230   : > { %2329 = vmatpush1.msra.mxu1 %v1063_v6  ;;  %2259 = vmatprep.subr.mxu0 %v800_v7  ;;  %v1232_v1 = vld [vmem:[#allocation6 + $0x1f78] sm:$0xff]  ;;  %v967_v6 = vld [vmem:[#allocation6 + $0x1730] sm:$0xff] }
 0x231   : > { %2330 = vmatprep.subr.mxu1 %v1056_v8  ;;  %2260 = vmatpush1.msra.mxu0 %v799_v9  ;;  %v968_v4 = vld [vmem:[#allocation6 + $0x1738] sm:$0xff]  ;;  %v1223_v7 = vld [vmem:[#allocation6 + $0x1f30] sm:$0xff] }
 0x232   : > { %2331 = vmatpush1.msra.mxu1 %v1055_v10  ;;  %2261 = vmatprep.subr.mxu0 %v792_v11  ;;  %v1224_v5 = vld [vmem:[#allocation6 + $0x1f38] sm:$0xff]  ;;  %v959_v10 = vld [vmem:[#allocation6 + $0x16f0] sm:$0xff] }
 0x233   : > { %v2697_v17 = vpop.eup %2696  ;;  %2332 = vmatprep.subr.mxu1 %v1048_v12  ;;  %2262 = vmatpush1.msra.mxu0 %v791_v13  ;;  %v960_v8 = vld [vmem:[#allocation6 + $0x16f8] sm:$0xff]  ;;  %v1215_v11 = vld [vmem:[#allocation6 + $0x1ef0] sm:$0xff] }
 0x234   : > { %v2429_v20 = vmul.f32 2.0, %v2697_v17  ;;  %2333 = vmatpush1.msra.mxu1 %v1047_v14  ;;  %2263 = vmatprep.subr.mxu0 %v784_v15  ;;  %v1216_v9 = vld [vmem:[#allocation6 + $0x1ef8] sm:$0xff]  ;;  %v951_v14 = vld [vmem:[#allocation6 + $0x16b0] sm:$0xff] }
 0x235   : > { %v2699_v23 = vpop.eup %2698  ;;  %2334 = vmatprep.subr.mxu1 %v1040_v16  ;;  %2264 = vmatpush1.msra.mxu0 %v783_v18  ;;  %v952_v12 = vld [vmem:[#allocation6 + $0x16b8] sm:$0xff]  ;;  %v1207_v15 = vld [vmem:[#allocation6 + $0x1eb0] sm:$0xff] }
 0x236   : > { %v2610_v27 = vadd.f32 -1.0, %v2429_v20  ;;  %v2430_v28 = vmul.f32 2.0, %v2699_v23  ;;  %2335 = vmatpush1.msra.mxu1 %v1039_v19  ;;  %2265 = vmatprep.subr.mxu0 %v776_v21  ;;  %v1208_v13 = vld [vmem:[#allocation6 + $0x1eb8] sm:$0xff]  ;;  %v943_v18 = vld [vmem:[#allocation6 + $0x1670] sm:$0xff] }
 0x237   : > { %2336 = vmatprep.subr.mxu1 %v1032_v22  ;;  %2266 = vmatpush1.msra.mxu0 %v775_v25  ;;  %v944_v16 = vld [vmem:[#allocation6 + $0x1678] sm:$0xff]  ;;  %v1199_v19 = vld [vmem:[#allocation6 + $0x1e70] sm:$0xff] }
 0x238   : > { %v2446_v38 = vmul.f32 %v2610_v27, %v3072_v31  ;;  %v2611_v40 = vadd.f32 -1.0, %v2430_v28  ;;  %2337 = vmatpush1.msra.mxu1 %v1031_v26  ;;  %2267 = vmatprep.subr.mxu0 %v768_v32  ;;  %v1200_v17 = vld [vmem:[#allocation6 + $0x1e78] sm:$0xff]  ;;  %v935_v22 = vld [vmem:[#allocation6 + $0x1630] sm:$0xff] }
 0x239   : > { %2338 = vmatprep.subr.mxu1 %v1024_v33  ;;  %2268 = vmatpush1.msra.mxu0 %v767_v34  ;;  %v936_v20 = vld [vmem:[#allocation6 + $0x1638] sm:$0xff]  ;;  %v1191_v23 = vld [vmem:[#allocation6 + $0x1e30] sm:$0xff] }
 0x23a   : > { %v2454_v45 = vadd.f32 %v3096_v35, %v2446_v38  ;;  %v2447_v46 = vmul.f32 %v2611_v40, %v3072_v31  ;;  %2339 = vmatpush1.msra.mxu1 %v1023_v37  ;;  %2269 = vmatprep.subr.mxu0 %v760_v41  ;;  %v743_v35 = vld [vmem:[#allocation6 + $0x1030] sm:$0xff]  ;;  %v1192_v21 = vld [vmem:[#allocation6 + $0x1e38] sm:$0xff] }
 0x23b   : > { %2340 = vmatprep.subr.mxu1 %v1016_v42  ;;  %2270 = vmatpush1.msra.mxu0 %v759_v43  ;;  %v928_v25 = vld [vmem:[#allocation6 + $0x15f8] sm:$0xff]  ;;  %v927_v27 = vld [vmem:[#allocation6 + $0x15f0] sm:$0xff] }
 0x23c   : > { %v2462_v51 = vmax.f32 %v2454_v45, 0.0  ;;  %v2455_v52 = vadd.f32 %v3091_v29, %v2447_v46  ;;  %2341 = vmatpush1.msra.mxu1 %v1015_v44  ;;  %2271 = vmatprep.subr.mxu0 %v752_v47  ;;  %v1247_v29 = vld [vmem:[#allocation6 + $0x1ff0] sm:$0xff]  ;;  %v1184_v26 = vld [vmem:[#allocation6 + $0x1df8] sm:$0xff] }
 0x23d   : > { %2342 = vmatprep.subr.mxu1 %v1008_v48  ;;  %2272 = vmatpush1.msra.mxu0 %v751_v49  ;;  %v1183_v28 = vld [vmem:[#allocation6 + $0x1df0] sm:$0xff]  ;;  %v920_v32 = vld [vmem:[#allocation6 + $0x15b8] sm:$0xff] }
 0x23e   : > { %v2470_v56 = vmin.f32 %v2462_v51, 1.0  ;;  %v2463_v57 = vmax.f32 %v2455_v52, 0.0  ;;  %2343 = vmatpush1.msra.mxu1 %v1007_v50  ;;  %2273 = vmatprep.subr.mxu0 %v744_v53  ;;  %v1176_v33 = vld [vmem:[#allocation6 + $0x1db8] sm:$0xff]  ;;  %v919_v34 = vld [vmem:[#allocation6 + $0x15b0] sm:$0xff] }
 0x23f   : > { %2344 = vmatprep.subr.mxu1 %v1000_v54  ;;  %2274 = vmatpush1.msra.mxu0 %v743_v35  ;;  %v1175_v37 = vld [vmem:[#allocation6 + $0x1db0] sm:$0xff]  ;;  %v912_v38 = vld [vmem:[#allocation6 + $0x1578] sm:$0xff] }
 0x240   : > { %2478 = vst [vmem:[%s3080_s28 + $0x10] sm:$0xff] %v2470_v56  ;;  %v2471_v60 = vmin.f32 %v2463_v57, 1.0  ;;  %2345 = vmatpush1.msra.mxu1 %v999_v55  ;;  %2275 = vmatprep.subr.mxu0 %v992_v39  ;;  %v1168_v40 = vld [vmem:[#allocation6 + $0x1d78] sm:$0xff]  ;;  %v911_v41 = vld [vmem:[#allocation6 + $0x1570] sm:$0xff] }
 0x241   : > { %2346 = vmatprep.subr.mxu1 %v1248_v58  ;;  %2276 = vmatpush2.msra.mxu0 %v991_v59  ;;  %v1167_v42 = vld [vmem:[#allocation6 + $0x1d70] sm:$0xff]  ;;  %v904_v43 = vld [vmem:[#allocation6 + $0x1538] sm:$0xff] }
 0x242   : > { %2479 = vst [vmem:[%s3080_s28 + $0x18] sm:$0xff] %v2471_v60  ;;  %2347 = vmatpush2.msra.mxu1 %v1247_v29  ;;  %2277 = vmatprep.subr.mxu0 %v984_v61  ;;  %v1160_v44 = vld [vmem:[#allocation6 + $0x1d38] sm:$0xff]  ;;  %v903_v45 = vld [vmem:[#allocation6 + $0x1530] sm:$0xff]  ;;  %v2728_v60 = vld [vmem:[%s3023_s25 + $0x28] sm:$0xff] }
 0x243   : > { %2348 = vmatprep.subr.mxu1 %v1240_v62  ;;  %2278 = vmatpush2.msra.mxu0 %v983_v63  ;;  %v1159_v46 = vld [vmem:[#allocation6 + $0x1d30] sm:$0xff]  ;;  %v896_v47 = vld [vmem:[#allocation6 + $0x14f8] sm:$0xff]  ;;  %v2730_v62 = vld [vmem:[%s3023_s25 + $0x20] sm:$0xff] }
 0x244   : > { %2349 = vmatpush2.msra.mxu1 %v1239_v0  ;;  %2279 = vmatprep.subr.mxu0 %v976_v30  ;;  %v1152_v48 = vld [vmem:[#allocation6 + $0x1cf8] sm:$0xff]  ;;  %v895_v49 = vld [vmem:[#allocation6 + $0x14f0] sm:$0xff] }
 0x245   : > { %2350 = vmatprep.subr.mxu1 %v1232_v1  ;;  %2280 = vmatpush2.msra.mxu0 %v975_v2  ;;  %v1151_v50 = vld [vmem:[#allocation6 + $0x1cf0] sm:$0xff]  ;;  %v888_v51 = vld [vmem:[#allocation6 + $0x14b8] sm:$0xff] }
 0x246   : > { %2351 = vmatpush2.msra.mxu1 %v1231_v3  ;;  %2281 = vmatprep.subr.mxu0 %v968_v4  ;;  %v1144_v52 = vld [vmem:[#allocation6 + $0x1cb8] sm:$0xff]  ;;  %v887_v53 = vld [vmem:[#allocation6 + $0x14b0] sm:$0xff] }
 0x247   : > { %2352 = vmatprep.subr.mxu1 %v1224_v5  ;;  %2282 = vmatpush2.msra.mxu0 %v967_v6  ;;  %v1143_v54 = vld [vmem:[#allocation6 + $0x1cb0] sm:$0xff]  ;;  %v880_v35 = vld [vmem:[#allocation6 + $0x1478] sm:$0xff] }
 0x248   : > { %2353 = vmatpush2.msra.mxu1 %v1223_v7  ;;  %2283 = vmatprep.subr.mxu0 %v960_v8  ;;  %v1136_v55 = vld [vmem:[#allocation6 + $0x1c78] sm:$0xff]  ;;  %v879_v56 = vld [vmem:[#allocation6 + $0x1470] sm:$0xff] }
 0x249   : > { %2354 = vmatprep.subr.mxu1 %v1216_v9  ;;  %2284 = vmatpush2.msra.mxu0 %v959_v10  ;;  %v1135_v57 = vld [vmem:[#allocation6 + $0x1c70] sm:$0xff]  ;;  %v872_v39 = vld [vmem:[#allocation6 + $0x1438] sm:$0xff] }
 0x24a   : > { %2355 = vmatpush2.msra.mxu1 %v1215_v11  ;;  %2285 = vmatprep.subr.mxu0 %v952_v12  ;;  %v1128_v58 = vld [vmem:[#allocation6 + $0x1c38] sm:$0xff]  ;;  %v871_v59 = vld [vmem:[#allocation6 + $0x1430] sm:$0xff] }
 0x24b   : > { %2356 = vmatprep.subr.mxu1 %v1208_v13  ;;  %2286 = vmatpush2.msra.mxu0 %v951_v14  ;;  %v1127_v29 = vld [vmem:[#allocation6 + $0x1c30] sm:$0xff]  ;;  %v3110_v61 = vld [vmem:[%s3023_s25 + $0x38] sm:$0xff] }
 0x24c   : > { %2357 = vmatpush2.msra.mxu1 %v1207_v15  ;;  %2287 = vmatprep.subr.mxu0 %v944_v16  ;;  %v3115_v63 = vld [vmem:[%s3023_s25 + $0x30] sm:$0xff] }
 0x24d   : > { %2358 = vmatprep.subr.mxu1 %v1200_v17  ;;  %2288 = vmatpush2.msra.mxu0 %v943_v18 }
 0x24e   : > { %2359 = vmatpush2.msra.mxu1 %v1199_v19  ;;  %2289 = vmatprep.subr.mxu0 %v936_v20 }
 0x24f   : > { %2360 = vmatprep.subr.mxu1 %v1192_v21  ;;  %2290 = vmatpush2.msra.mxu0 %v935_v22 }
 0x250   : > { %2361 = vmatpush2.msra.mxu1 %v1191_v23  ;;  %2291 = vmatprep.subr.mxu0 %v928_v25 }
 0x251   : > { %2362 = vmatprep.subr.mxu1 %v1184_v26  ;;  %2292 = vmatpush2.msra.mxu0 %v927_v27 }
 0x252   : > { %2363 = vmatpush2.msra.mxu1 %v1183_v28  ;;  %2293 = vmatprep.subr.mxu0 %v920_v32 }
 0x253   : > { %2364 = vmatprep.subr.mxu1 %v1176_v33  ;;  %2294 = vmatpush2.msra.mxu0 %v919_v34 }
 0x254   : > { %2365 = vmatpush2.msra.mxu1 %v1175_v37  ;;  %2295 = vmatprep.subr.mxu0 %v912_v38 }
 0x255   : > { %2366 = vmatprep.subr.mxu1 %v1168_v40  ;;  %2296 = vmatpush2.msra.mxu0 %v911_v41 }
 0x256   : > { %2367 = vmatpush2.msra.mxu1 %v1167_v42  ;;  %2297 = vmatprep.subr.mxu0 %v904_v43 }
 0x257   : > { %2368 = vmatprep.subr.mxu1 %v1160_v44  ;;  %2298 = vmatpush2.msra.mxu0 %v903_v45 }
 0x258   : > { %2369 = vmatpush2.msra.mxu1 %v1159_v46  ;;  %2299 = vmatprep.subr.mxu0 %v896_v47 }
 0x259   : > { %2370 = vmatprep.subr.mxu1 %v1152_v48  ;;  %2300 = vmatpush2.msra.mxu0 %v895_v49 }
 0x25a   : > { %2371 = vmatpush2.msra.mxu1 %v1151_v50  ;;  %2301 = vmatprep.subr.mxu0 %v888_v51 }
 0x25b   : > { %2372 = vmatprep.subr.mxu1 %v1144_v52  ;;  %2302 = vmatpush2.msra.mxu0 %v887_v53  ;;  %v1883_v0 = vpop.f32.mrf.mxu0 }
 0x25c   : > { %2373 = vmatpush2.msra.mxu1 %v1143_v54  ;;  %2303 = vmatprep.subr.mxu0 %v880_v35  ;;  %v1954_v30 = vpop.f32.mrf.mxu1 }
 0x25d   : > { %2374 = vmatprep.subr.mxu1 %v1136_v55  ;;  %2304 = vmatpush2.msra.mxu0 %v879_v56  ;;  %v1885_v1 = vpop.f32.mrf.mxu0  ;;  %v1955_v3 = vadd.f32 %v1954_v30, %v1883_v0 }
 0x25e   : > { %2375 = vmatpush2.msra.mxu1 %v1135_v57  ;;  %2305 = vmatprep.subr.mxu0 %v872_v39  ;;  %v1956_v2 = vpop.f32.mrf.mxu1 }
 0x25f   : > { %2376 = vmatprep.subr.mxu1 %v1128_v58  ;;  %2306 = vmatpush2.msra.mxu0 %v871_v59  ;;  %v1957_v5 = vadd.f32 %v1956_v2, %v1885_v1 }
 0x260   : > { %2307 = vmatprep.mubr.f32.mxu0 %v2728_v60  ;;  %2377 = vmatpush2.msra.mxu1 %v1127_v29 }
 0x261   : > { %2378 = vmatprep.mubr.f32.mxu1 %v3110_v61  ;;  %2308 = vmatmul.mubr.f32.vlgmr.msra.gmra.mxu0 %v2730_v62 }
 0x262   : > { %2379 = vmatmul.mubr.f32.vlgmr.msra.gmra.mxu1 %v3115_v63 }
 0x29d   : > { %v2025_v4 = vpop.f32.mrf.mxu0 }
 0x29e   : > { %v2026_v6 = vadd.f32 %v2025_v4, %v1955_v3 }
 0x29f   : > { %v2096_v7 = vpop.f32.mrf.mxu1  ;;  %v2027_v8 = vpop.f32.mrf.mxu0 }
 0x2a0   : > { %v2097_v9 = vadd.f32 %v2096_v7, %v2026_v6  ;;  %v2028_v10 = vadd.f32 %v2027_v8, %v1957_v5 }
 0x2a1   : > { %v2098_v11 = vpop.f32.mrf.mxu1 }
 0x2a2   : > { %v2390_v12 = vsub.f32 %v2097_v9, %v3050_v24  ;;  %v2099_v13 = vadd.f32 %v2098_v11, %v2028_v10 }
 0x2a4   : > { %v2398_v14 = vmul.f32 %v2390_v12, %v2390_v12  ;;  %v2391_v15 = vsub.f32 %v2099_v13, %v3050_v24 }
 0x2a6   : > { %v2407_v16 = vmul.f32 %v3059_v36, %v2398_v14  ;;  %v2399_v17 = vmul.f32 %v2391_v15, %v2391_v15 }
 0x2a8   : > { %v2419_v18 = vmul.f32 1.442695, %v2407_v16  ;;  %v2408_v19 = vmul.f32 %v3059_v36, %v2399_v17 }
 0x2aa   : > { %2700 = vpow2.f32 %v2419_v18  ;;  %v2421_v20 = vmul.f32 1.442695, %v2408_v19 }
 0x2ac   : > { %2702 = vpow2.f32 %v2421_v20 }
 0x2b7   : > { %v2701_v21 = vpop.eup %2700 }
 0x2b8   : > { %v2431_v22 = vmul.f32 2.0, %v2701_v21 }
 0x2b9   : > { %v2703_v23 = vpop.eup %2702 }
 0x2ba   : > { %v2612_v25 = vadd.f32 -1.0, %v2431_v22  ;;  %v2432_v26 = vmul.f32 2.0, %v2703_v23 }
 0x2bc   : > { %v2448_v27 = vmul.f32 %v2612_v25, %v3072_v31  ;;  %v2613_v28 = vadd.f32 -1.0, %v2432_v26 }
 0x2be   : > { %v2456_v32 = vadd.f32 %v2730_v62, %v2448_v27  ;;  %v2449_v33 = vmul.f32 %v2613_v28, %v3072_v31 }
 0x2c0   : > { %v2464_v34 = vmax.f32 %v2456_v32, 0.0  ;;  %v2457_v37 = vadd.f32 %v2728_v60, %v2449_v33 }
 0x2c2   : > { %v2472_v38 = vmin.f32 %v2464_v34, 1.0  ;;  %v2465_v40 = vmax.f32 %v2457_v37, 0.0 }
 0x2c4   : > { %2480 = vst [vmem:[%s3080_s28 + $0x20] sm:$0xff] %v2472_v38  ;;  %v2473_v41 = vmin.f32 %v2465_v40, 1.0 }
 0x2c6   : > { %2481 = vst [vmem:[%s3080_s28 + $0x28] sm:$0xff] %v2473_v41 }
 0x2df   : > { %v2167_v42 = vpop.f32.mrf.mxu0 }
 0x2e0   : > { %v2238_v43 = vpop.f32.mrf.mxu1 }
 0x2e1   : > { %v2169_v44 = vpop.f32.mrf.mxu0  ;;  %v2239_v46 = vadd.f32 %v2238_v43, %v2167_v42 }
 0x2e2   : > { %v2240_v45 = vpop.f32.mrf.mxu1 }
 0x2e3   : > { %v2241_v49 = vadd.f32 %v2240_v45, %v2169_v44 }
 0x321   : > { %v2309_v47 = vpop.f32.mrf.mxu0 }
 0x322   : > { %v2380_v48 = vpop.f32.mrf.mxu1  ;;  %v2310_v50 = vadd.f32 %v2309_v47, %v2239_v46 }
 0x323   : > { %v2311_v51 = vpop.f32.mrf.mxu0 }
 0x324   : > { %v2381_v52 = vadd.f32 %v2380_v48, %v2310_v50  ;;  %v2312_v53 = vadd.f32 %v2311_v51, %v2241_v49  ;;  %v2382_v54 = vpop.f32.mrf.mxu1 }
 0x326   : > { %v2392_v35 = vsub.f32 %v2381_v52, %v3050_v24  ;;  %v2383_v55 = vadd.f32 %v2382_v54, %v2312_v53 }
 0x328   : > { %v2400_v56 = vmul.f32 %v2392_v35, %v2392_v35  ;;  %v2393_v57 = vsub.f32 %v2383_v55, %v3050_v24 }
 0x32a   : > { %v2409_v39 = vmul.f32 %v3059_v36, %v2400_v56  ;;  %v2401_v58 = vmul.f32 %v2393_v57, %v2393_v57 }
 0x32c   : > { %v2423_v59 = vmul.f32 1.442695, %v2409_v39  ;;  %v2410_v29 = vmul.f32 %v3059_v36, %v2401_v58 }
 0x32e   : > { %2704 = vpow2.f32 %v2423_v59  ;;  %v2425_v60 = vmul.f32 1.442695, %v2410_v29 }
 0x330   : > { %2706 = vpow2.f32 %v2425_v60 }
 0x33b   : > { %v2705_v62 = vpop.eup %2704 }
 0x33c   : > { %v2433_v0 = vmul.f32 2.0, %v2705_v62 }
 0x33d   : > { %v2707_v30 = vpop.eup %2706 }
 0x33e   : > { %v2614_v1 = vadd.f32 -1.0, %v2433_v0  ;;  %v2434_v2 = vmul.f32 2.0, %v2707_v30 }
 0x340   : > { %v2450_v24 = vmul.f32 %v2614_v1, %v3072_v31  ;;  %v2615_v3 = vadd.f32 -1.0, %v2434_v2 }
 0x342   : > { %v2458_v4 = vadd.f32 %v3115_v63, %v2450_v24  ;;  %v2451_v36 = vmul.f32 %v2615_v3, %v3072_v31 }
 0x344   : > { %v2466_v5 = vmax.f32 %v2458_v4, 0.0  ;;  %v2459_v6 = vadd.f32 %v3110_v61, %v2451_v36 }
 0x346   : > { %v2474_v7 = vmin.f32 %v2466_v5, 1.0  ;;  %v2467_v8 = vmax.f32 %v2459_v6, 0.0 }
 0x348   : > { %2482 = vst [vmem:[%s3080_s28 + $0x30] sm:$0xff] %v2474_v7  ;;  %v2475_v9 = vmin.f32 %v2467_v8, 1.0 }
 0x34a   : > { %2483 = vst [vmem:[%s3080_s28 + $0x38] sm:$0xff] %v2475_v9 }
 0x34b   : > { %2810 = shalt.err (!%p2807_p10)
}
 0x34c   : > { %s2811_s21 = scalar_lea.hbm %s2497_s6, 1024  ;;  %s2815_s22 = scalar_lea.hbm %s3175_s3, 2048 }
 0x34d   : > { %p2812_p12 = scmp.ne.s32.totalorder %s2497_s6, %s2811_s21  ;;  %p2816_p6 = scmp.lt.s32.totalorder %s2497_s6, %s3175_s3 }
 0x34e   : > { %p2817_p7 = scmp.lt.s32.totalorder %s2815_s22, %s2811_s21 }
 0x34f   : > { %p2813_p9 = pnand %p2812_p12, %p3192_p3 }
 0x350   : > { %p2818_p4 = por %p2817_p7, %p2816_p6 }
 0x351   : > { %p2814_p1 = pneg %p2813_p9 }
 0x353   : > { %p2819_p8 = pnand %p2818_p4, %p2814_p1 }
 0x355   : > { %2822 = shalt.err (!%p2819_p8)
}
 0x356   : > { %2633 = dma.vmem_to_hbm [thread:$0]  (%p3192_p3), %s2500_s30, 1024, %s2497_s6, %s2485_s7  }
 0x357 PF: > { %s2511_s26 = sand.u32 1, %s2857_s12   ;;  %p3193_p11 = scmp.ne.s32.totalorder %s3181_s19, 0 }
 0x358   : > { %p3194_p13 = scmp.ge.s32.totalorder %s2869_s15, 2  ;;  %s2512_s27 = scalar_lea.sflag [#allocation4], %s2511_s26 }
 0x35a   : > { %p2647_p0 = pnand %p3194_p13, %p3193_p11 }
 0x35c   : > { %p2648_p5 = pneg %p2647_p0 }
 0x35e   : > { %2852 = dma.done.wait (%p2648_p5), %s2512_s27, 1024  }
 0x35f   : > { %2854 = vsyncadd (%p2648_p5), %s2512_s27, 4294966272  ;;  %p18_p2 = scmp.ge.s32.totalorder %s2951_s24, 4   ;;  %s3195_s12 = smov %s2861_s13 }
 0x360   : > { %s3196_s13 = smov %s2865_s14  ;;  %s3197_s14 = smov %s2972_s8 }
 0x361   : > { %s3198_s15 = smov %s2951_s24  ;;  %20 = sbr.rel (!%p18_p2) target bundleno = 7 (0x7), region = 87 }
 0x366   :  { %2517 = vsyncpa [#allocation3], 1 }
 0x367   :  { %2519 = vsyncpa [#allocation3 + $0x1], 1 }
 0x368   :  { %2520 = vsyncpa [#allocation8], 1 }
 0x369   :  { %2522 = vsyncpa [#allocation8 + $0x1], 1 }
 0x36a   :  { %2523 = vsyncpa [#allocation4], 1 }
 0x36b   :  { %2525 = vsyncpa [#allocation4 + $0x1], 1 }
 0x36c   :  { %2526 = vsyncpa [#allocation5], 1 }
 0x36d   :  { %2528 = vsyncpa [#allocation5 + $0x1], 1 }

</bundles_post_ra>
